<compile_context>
chip_gen: v7x
topology: tpu7x:2x2x1
jax: 0.10.0
libtpu: 0.0.40
codegen_flags: <defaults>
</compile_context>

<pallas_src>
import jax
import jax.numpy as jnp
from jax.experimental import pallas as pl
from jax.experimental.pallas import tpu as pltpu

# (in_features, out_features) for the 6 Linear layers of the PyTorch module.
_DIMS = [(184, 160), (160, 140), (140, 120), (120, 140), (140, 160), (160, 552)]
_IN_DIM = 184
_OUT_DIM = 552
_MAX_TILE = 2048    # VMEM-safe cap on v7x (64 MiB physical, 32 MiB scoped).


def _autoencoder_kernel(
    x_ref,
    w1_ref, b1_ref, w2_ref, b2_ref, w3_ref, b3_ref,
    w4_ref, b4_ref, w5_ref, b5_ref, w6_ref, b6_ref,
    out_ref,
):
    def linear(h_bf16, w_ref, b_ref):
        # bf16 x bf16 on the MXU with f32 accumulation; bias add in f32.
        return (
            jnp.dot(h_bf16, w_ref[...], preferred_element_type=jnp.float32)
            + b_ref[...]
        )

    def relu_to_bf16(h_f32):
        # ReLU in f32 (v5e VPU has no bf16), downcast for the next MXU pass.
        return jnp.maximum(h_f32, 0.0).astype(jnp.bfloat16)

    # In-kernel f32 -> bf16 cast: free on the VPU, saves a wrapper HBM pass.
    h = x_ref[...].astype(jnp.bfloat16)              # [TB, 184]
    # Encoder
    h = relu_to_bf16(linear(h, w1_ref, b1_ref))      # 184 -> 160
    h = relu_to_bf16(linear(h, w2_ref, b2_ref))      # 160 -> 140
    h = relu_to_bf16(linear(h, w3_ref, b3_ref))      # 140 -> 120
    # Decoder
    h = relu_to_bf16(linear(h, w4_ref, b4_ref))      # 120 -> 140
    h = relu_to_bf16(linear(h, w5_ref, b5_ref))      # 140 -> 160
    h = linear(h, w6_ref, b6_ref)                    # 160 -> 552, f32
    out_ref[...] = h.astype(out_ref.dtype)


def _pick_tile_batch(batch: int) -> int:
    """Tile: multiple of 256, ~batch/2 (feeds both v7x TCs), capped at 2048."""
    half = -(-batch // 2)
    tb = 256 * (-(-half // 256))
    return max(256, min(tb, _MAX_TILE))


def init_params(key):
    """Deterministic PyTorch-style (uniform +/- 1/sqrt(fan_in)) init.

    Weights are stored already transposed as [in, out] (f32); biases as [1, out].
    """
    params = []
    for i, (fan_in, fan_out) in enumerate(_DIMS):
        kw, kb = jax.random.split(jax.random.fold_in(key, i))
        bound = 1.0 / jnp.sqrt(jnp.float32(fan_in))
        w = jax.random.uniform(kw, (fan_in, fan_out), jnp.float32, -bound, bound)
        b = jax.random.uniform(kb, (1, fan_out), jnp.float32, -bound, bound)
        params.append((w, b))
    return params


@jax.jit
def autoencoder_forward(x, params):
    batch = x.shape[0]
    tb = _pick_tile_batch(batch)
    n_tiles = pl.cdiv(batch, tb)

    # Flatten params; bf16 weights (MXU input dtype), f32 biases.
    flat_params = []
    for w, b in params:
        flat_params.append(w.astype(jnp.bfloat16))
        flat_params.append(b.astype(jnp.float32))

    # x / out: tiled over the batch grid axis (partial last block is clipped
    # by Pallas). Weights/biases: constant block index -> DMA'd once, resident.
    x_spec = pl.BlockSpec((tb, _IN_DIM), lambda i: (i, 0))
    out_spec = pl.BlockSpec((tb, _OUT_DIM), lambda i: (i, 0))
    param_specs = [pl.BlockSpec(p.shape, lambda i: (0, 0)) for p in flat_params]

    flops = 2 * batch * sum(fi * fo for fi, fo in _DIMS)
    param_bytes = sum(w.size * 2 + b.size * 4 for w, b in params)
    bytes_accessed = batch * (_IN_DIM * 4 + _OUT_DIM * 4) + param_bytes

    grid_spec = pltpu.PrefetchScalarGridSpec(
        num_scalar_prefetch=0,
        grid=(n_tiles,),
        in_specs=[x_spec] + param_specs,
        out_specs=out_spec,
    )

    return pl.pallas_call(
        _autoencoder_kernel,
        out_shape=jax.ShapeDtypeStruct((batch, _OUT_DIM), jnp.float32),
        grid_spec=grid_spec,
        compiler_params=pltpu.CompilerParams(
            dimension_semantics=("parallel",),       # batch tiles -> both v7x TCs
            vmem_limit_bytes=32 * 1024 * 1024,       # safe on v5e/v6e/v7x
        ),
        cost_estimate=pl.CostEstimate(
            flops=flops, transcendentals=0, bytes_accessed=bytes_accessed),
    )(x, *flat_params)


if __name__ == "__main__":
    key = jax.random.PRNGKey(0)
    k_x, k_p = jax.random.split(key)

    # batch not a multiple of the tile -> exercises the 2-tile + partial-tail
    # (Pallas clipping) path on a small problem.
    batch = 300
    x = jax.random.normal(k_x, (batch, _IN_DIM), dtype=jnp.float32)
    params = init_params(k_p)

    out = jax.block_until_ready(autoencoder_forward(x, params))

    # Plain-JAX reference using the same bf16-weight / f32-accumulate math.
    h = x.astype(jnp.bfloat16)
    ref = None
    for i, (w, b) in enumerate(params):
        h32 = jnp.dot(h, w.astype(jnp.bfloat16),
                      preferred_element_type=jnp.float32) + b
        if i < len(params) - 1:
            h = jnp.maximum(h32, 0.0).astype(jnp.bfloat16)
        else:
            ref = h32
    ref = jax.block_until_ready(ref)

    assert out.shape == (batch, _OUT_DIM), out.shape
    max_err = float(jnp.max(jnp.abs(out - ref)))
    assert jnp.allclose(out, ref, atol=5e-2, rtol=5e-2), max_err

    print("KERNEL_OK")
</pallas_src>

<mosaic_0001>
module attributes {stable_mosaic.version = 11 : i64} {
  func.func @_autoencoder_kernel(%arg0: i32, %arg1: memref<256x184xf32, #tpu.memory_space<vmem>>, %arg2: memref<184x160xbf16, #tpu.memory_space<vmem>>, %arg3: memref<1x160xf32, #tpu.memory_space<vmem>>, %arg4: memref<160x140xbf16, #tpu.memory_space<vmem>>, %arg5: memref<1x140xf32, #tpu.memory_space<vmem>>, %arg6: memref<140x120xbf16, #tpu.memory_space<vmem>>, %arg7: memref<1x120xf32, #tpu.memory_space<vmem>>, %arg8: memref<120x140xbf16, #tpu.memory_space<vmem>>, %arg9: memref<1x140xf32, #tpu.memory_space<vmem>>, %arg10: memref<140x160xbf16, #tpu.memory_space<vmem>>, %arg11: memref<1x160xf32, #tpu.memory_space<vmem>>, %arg12: memref<160x552xbf16, #tpu.memory_space<vmem>>, %arg13: memref<1x552xf32, #tpu.memory_space<vmem>>, %arg14: memref<256x552xf32, #tpu.memory_space<vmem>>) attributes {dimension_semantics = [#tpu.dimension_semantics<parallel>], iteration_bounds = array<i64: 2>, scalar_prefetch = 0 : i64, scratch_operands = 0 : i64, tpu.core_type = #tpu.core_type<tc>, window_params = [{transform_indices = @transform_0, window_bounds = array<i64: 256, 184>}, {pipeline_mode = #tpu.pipeline_mode<synchronous>, transform_indices = @transform_1, window_bounds = array<i64: 184, 160>}, {pipeline_mode = #tpu.pipeline_mode<synchronous>, transform_indices = @transform_2, window_bounds = array<i64: 1, 160>}, {pipeline_mode = #tpu.pipeline_mode<synchronous>, transform_indices = @transform_3, window_bounds = array<i64: 160, 140>}, {pipeline_mode = #tpu.pipeline_mode<synchronous>, transform_indices = @transform_4, window_bounds = array<i64: 1, 140>}, {pipeline_mode = #tpu.pipeline_mode<synchronous>, transform_indices = @transform_5, window_bounds = array<i64: 140, 120>}, {pipeline_mode = #tpu.pipeline_mode<synchronous>, transform_indices = @transform_6, window_bounds = array<i64: 1, 120>}, {pipeline_mode = #tpu.pipeline_mode<synchronous>, transform_indices = @transform_7, window_bounds = array<i64: 120, 140>}, {pipeline_mode = #tpu.pipeline_mode<synchronous>, transform_indices = @transform_8, window_bounds = array<i64: 1, 140>}, {pipeline_mode = #tpu.pipeline_mode<synchronous>, transform_indices = @transform_9, window_bounds = array<i64: 140, 160>}, {pipeline_mode = #tpu.pipeline_mode<synchronous>, transform_indices = @transform_10, window_bounds = array<i64: 1, 160>}, {pipeline_mode = #tpu.pipeline_mode<synchronous>, transform_indices = @transform_11, window_bounds = array<i64: 160, 552>}, {pipeline_mode = #tpu.pipeline_mode<synchronous>, transform_indices = @transform_12, window_bounds = array<i64: 1, 552>}, {transform_indices = @transform_13, window_bounds = array<i64: 256, 552>}]} {
    %c0 = arith.constant 0 : index
    %c0_0 = arith.constant 0 : index
    %0 = vector.load %arg1[%c0, %c0_0] : memref<256x184xf32, #tpu.memory_space<vmem>>, vector<256x184xf32>
    %1 = arith.truncf %0 : vector<256x184xf32> to vector<256x184xbf16>
    %c0_1 = arith.constant 0 : index
    %c0_2 = arith.constant 0 : index
    %2 = vector.load %arg2[%c0_1, %c0_2] : memref<184x160xbf16, #tpu.memory_space<vmem>>, vector<184x160xbf16>
    %cst = arith.constant dense<0.000000e+00> : vector<256x160xf32>
    %3 = tpu.matmul %1, %2, %cst {dimension_numbers = #tpu.dot_dimension_numbers<[1], [0], [0], [1], [0, 0, 1, 1], [], []>} : vector<256x184xbf16>, vector<184x160xbf16>, vector<256x160xf32> -> vector<256x160xf32>
    %c0_3 = arith.constant 0 : index
    %c0_4 = arith.constant 0 : index
    %4 = vector.load %arg3[%c0_3, %c0_4] : memref<1x160xf32, #tpu.memory_space<vmem>>, vector<1x160xf32>
    %5 = vector.broadcast %4 : vector<1x160xf32> to vector<256x160xf32>
    %6 = arith.addf %3, %5 : vector<256x160xf32>
    %cst_5 = arith.constant 0.000000e+00 : f32
    %7 = vector.broadcast %cst_5 : f32 to vector<256x160xf32>
    %8 = arith.maximumf %6, %7 : vector<256x160xf32>
    %9 = arith.truncf %8 : vector<256x160xf32> to vector<256x160xbf16>
    %c0_6 = arith.constant 0 : index
    %c0_7 = arith.constant 0 : index
    %10 = vector.load %arg4[%c0_6, %c0_7] : memref<160x140xbf16, #tpu.memory_space<vmem>>, vector<160x140xbf16>
    %cst_8 = arith.constant dense<0.000000e+00> : vector<256x140xf32>
    %11 = tpu.matmul %9, %10, %cst_8 {dimension_numbers = #tpu.dot_dimension_numbers<[1], [0], [0], [1], [0, 0, 1, 1], [], []>} : vector<256x160xbf16>, vector<160x140xbf16>, vector<256x140xf32> -> vector<256x140xf32>
    %c0_9 = arith.constant 0 : index
    %c0_10 = arith.constant 0 : index
    %12 = vector.load %arg5[%c0_9, %c0_10] : memref<1x140xf32, #tpu.memory_space<vmem>>, vector<1x140xf32>
    %13 = vector.broadcast %12 : vector<1x140xf32> to vector<256x140xf32>
    %14 = arith.addf %11, %13 : vector<256x140xf32>
    %cst_11 = arith.constant 0.000000e+00 : f32
    %15 = vector.broadcast %cst_11 : f32 to vector<256x140xf32>
    %16 = arith.maximumf %14, %15 : vector<256x140xf32>
    %17 = arith.truncf %16 : vector<256x140xf32> to vector<256x140xbf16>
    %c0_12 = arith.constant 0 : index
    %c0_13 = arith.constant 0 : index
    %18 = vector.load %arg6[%c0_12, %c0_13] : memref<140x120xbf16, #tpu.memory_space<vmem>>, vector<140x120xbf16>
    %cst_14 = arith.constant dense<0.000000e+00> : vector<256x120xf32>
    %19 = tpu.matmul %17, %18, %cst_14 {dimension_numbers = #tpu.dot_dimension_numbers<[1], [0], [0], [1], [0, 0, 1, 1], [], []>} : vector<256x140xbf16>, vector<140x120xbf16>, vector<256x120xf32> -> vector<256x120xf32>
    %c0_15 = arith.constant 0 : index
    %c0_16 = arith.constant 0 : index
    %20 = vector.load %arg7[%c0_15, %c0_16] : memref<1x120xf32, #tpu.memory_space<vmem>>, vector<1x120xf32>
    %21 = vector.broadcast %20 : vector<1x120xf32> to vector<256x120xf32>
    %22 = arith.addf %19, %21 : vector<256x120xf32>
    %cst_17 = arith.constant 0.000000e+00 : f32
    %23 = vector.broadcast %cst_17 : f32 to vector<256x120xf32>
    %24 = arith.maximumf %22, %23 : vector<256x120xf32>
    %25 = arith.truncf %24 : vector<256x120xf32> to vector<256x120xbf16>
    %c0_18 = arith.constant 0 : index
    %c0_19 = arith.constant 0 : index
    %26 = vector.load %arg8[%c0_18, %c0_19] : memref<120x140xbf16, #tpu.memory_space<vmem>>, vector<120x140xbf16>
    %cst_20 = arith.constant dense<0.000000e+00> : vector<256x140xf32>
    %27 = tpu.matmul %25, %26, %cst_20 {dimension_numbers = #tpu.dot_dimension_numbers<[1], [0], [0], [1], [0, 0, 1, 1], [], []>} : vector<256x120xbf16>, vector<120x140xbf16>, vector<256x140xf32> -> vector<256x140xf32>
    %c0_21 = arith.constant 0 : index
    %c0_22 = arith.constant 0 : index
    %28 = vector.load %arg9[%c0_21, %c0_22] : memref<1x140xf32, #tpu.memory_space<vmem>>, vector<1x140xf32>
    %29 = vector.broadcast %28 : vector<1x140xf32> to vector<256x140xf32>
    %30 = arith.addf %27, %29 : vector<256x140xf32>
    %cst_23 = arith.constant 0.000000e+00 : f32
    %31 = vector.broadcast %cst_23 : f32 to vector<256x140xf32>
    %32 = arith.maximumf %30, %31 : vector<256x140xf32>
    %33 = arith.truncf %32 : vector<256x140xf32> to vector<256x140xbf16>
    %c0_24 = arith.constant 0 : index
    %c0_25 = arith.constant 0 : index
    %34 = vector.load %arg10[%c0_24, %c0_25] : memref<140x160xbf16, #tpu.memory_space<vmem>>, vector<140x160xbf16>
    %cst_26 = arith.constant dense<0.000000e+00> : vector<256x160xf32>
    %35 = tpu.matmul %33, %34, %cst_26 {dimension_numbers = #tpu.dot_dimension_numbers<[1], [0], [0], [1], [0, 0, 1, 1], [], []>} : vector<256x140xbf16>, vector<140x160xbf16>, vector<256x160xf32> -> vector<256x160xf32>
    %c0_27 = arith.constant 0 : index
    %c0_28 = arith.constant 0 : index
    %36 = vector.load %arg11[%c0_27, %c0_28] : memref<1x160xf32, #tpu.memory_space<vmem>>, vector<1x160xf32>
    %37 = vector.broadcast %36 : vector<1x160xf32> to vector<256x160xf32>
    %38 = arith.addf %35, %37 : vector<256x160xf32>
    %cst_29 = arith.constant 0.000000e+00 : f32
    %39 = vector.broadcast %cst_29 : f32 to vector<256x160xf32>
    %40 = arith.maximumf %38, %39 : vector<256x160xf32>
    %41 = arith.truncf %40 : vector<256x160xf32> to vector<256x160xbf16>
    %c0_30 = arith.constant 0 : index
    %c0_31 = arith.constant 0 : index
    %42 = vector.load %arg12[%c0_30, %c0_31] : memref<160x552xbf16, #tpu.memory_space<vmem>>, vector<160x552xbf16>
    %cst_32 = arith.constant dense<0.000000e+00> : vector<256x552xf32>
    %43 = tpu.matmul %41, %42, %cst_32 {dimension_numbers = #tpu.dot_dimension_numbers<[1], [0], [0], [1], [0, 0, 1, 1], [], []>} : vector<256x160xbf16>, vector<160x552xbf16>, vector<256x552xf32> -> vector<256x552xf32>
    %c0_33 = arith.constant 0 : index
    %c0_34 = arith.constant 0 : index
    %44 = vector.load %arg13[%c0_33, %c0_34] : memref<1x552xf32, #tpu.memory_space<vmem>>, vector<1x552xf32>
    %45 = vector.broadcast %44 : vector<1x552xf32> to vector<256x552xf32>
    %46 = arith.addf %43, %45 : vector<256x552xf32>
    %c0_35 = arith.constant 0 : index
    %c0_36 = arith.constant 0 : index
    %47 = vector.load %arg14[%c0_35, %c0_36] : memref<256x552xf32, #tpu.memory_space<vmem>>, vector<256x552xf32>
    tpu.vector_store %arg14[%c0_35, %c0_36], %46 {strides = array<i32>} : memref<256x552xf32, #tpu.memory_space<vmem>>, vector<256x552xf32>,
    return
  }
  func.func @transform_0(%arg0: i32) -> (i32, i32) {
    %c0_i32 = arith.constant 0 : i32
    %c0_i32_0 = arith.constant 0 : i32
    return %arg0, %c0_i32 : i32, i32
  }
  func.func @transform_1(%arg0: i32) -> (i32, i32) {
    %c0_i32 = arith.constant 0 : i32
    %c0_i32_0 = arith.constant 0 : i32
    %c0_i32_1 = arith.constant 0 : i32
    return %c0_i32, %c0_i32_0 : i32, i32
  }
  func.func @transform_2(%arg0: i32) -> (i32, i32) {
    %c0_i32 = arith.constant 0 : i32
    %c0_i32_0 = arith.constant 0 : i32
    %c0_i32_1 = arith.constant 0 : i32
    return %c0_i32, %c0_i32_0 : i32, i32
  }
  func.func @transform_3(%arg0: i32) -> (i32, i32) {
    %c0_i32 = arith.constant 0 : i32
    %c0_i32_0 = arith.constant 0 : i32
    %c0_i32_1 = arith.constant 0 : i32
    return %c0_i32, %c0_i32_0 : i32, i32
  }
  func.func @transform_4(%arg0: i32) -> (i32, i32) {
    %c0_i32 = arith.constant 0 : i32
    %c0_i32_0 = arith.constant 0 : i32
    %c0_i32_1 = arith.constant 0 : i32
    return %c0_i32, %c0_i32_0 : i32, i32
  }
  func.func @transform_5(%arg0: i32) -> (i32, i32) {
    %c0_i32 = arith.constant 0 : i32
    %c0_i32_0 = arith.constant 0 : i32
    %c0_i32_1 = arith.constant 0 : i32
    return %c0_i32, %c0_i32_0 : i32, i32
  }
  func.func @transform_6(%arg0: i32) -> (i32, i32) {
    %c0_i32 = arith.constant 0 : i32
    %c0_i32_0 = arith.constant 0 : i32
    %c0_i32_1 = arith.constant 0 : i32
    return %c0_i32, %c0_i32_0 : i32, i32
  }
  func.func @transform_7(%arg0: i32) -> (i32, i32) {
    %c0_i32 = arith.constant 0 : i32
    %c0_i32_0 = arith.constant 0 : i32
    %c0_i32_1 = arith.constant 0 : i32
    return %c0_i32, %c0_i32_0 : i32, i32
  }
  func.func @transform_8(%arg0: i32) -> (i32, i32) {
    %c0_i32 = arith.constant 0 : i32
    %c0_i32_0 = arith.constant 0 : i32
    %c0_i32_1 = arith.constant 0 : i32
    return %c0_i32, %c0_i32_0 : i32, i32
  }
  func.func @transform_9(%arg0: i32) -> (i32, i32) {
    %c0_i32 = arith.constant 0 : i32
    %c0_i32_0 = arith.constant 0 : i32
    %c0_i32_1 = arith.constant 0 : i32
    return %c0_i32, %c0_i32_0 : i32, i32
  }
  func.func @transform_10(%arg0: i32) -> (i32, i32) {
    %c0_i32 = arith.constant 0 : i32
    %c0_i32_0 = arith.constant 0 : i32
    %c0_i32_1 = arith.constant 0 : i32
    return %c0_i32, %c0_i32_0 : i32, i32
  }
  func.func @transform_11(%arg0: i32) -> (i32, i32) {
    %c0_i32 = arith.constant 0 : i32
    %c0_i32_0 = arith.constant 0 : i32
    %c0_i32_1 = arith.constant 0 : i32
    return %c0_i32, %c0_i32_0 : i32, i32
  }
  func.func @transform_12(%arg0: i32) -> (i32, i32) {
    %c0_i32 = arith.constant 0 : i32
    %c0_i32_0 = arith.constant 0 : i32
    %c0_i32_1 = arith.constant 0 : i32
    return %c0_i32, %c0_i32_0 : i32, i32
  }
  func.func @transform_13(%arg0: i32) -> (i32, i32) {
    %c0_i32 = arith.constant 0 : i32
    %c0_i32_0 = arith.constant 0 : i32
    return %arg0, %c0_i32 : i32, i32
  }
}

</mosaic_0001>

<bundles_post_ra>
// kernel: autoencoder_forward.1
= control target key start
LH: loop header
LB: loop body
LE: loop exit
PB: predicated region body
PF: predicated region fallthrough
CT: control target
= control target key end

     0   :  { %18 = vsyncpa [#allocation3], 0  ;;  %s6271_s0 = inlined_call_operand.vmem [shape: f32[300,184], index: 0, kind: input, shape index: {}]   ;;  %s6272_s1 = inlined_call_operand.vmem [shape: bf16[184,160], index: 1, kind: input, shape index: {}]   ;;  %s6273_s2 = inlined_call_operand.vmem [shape: f32[1,160], index: 2, kind: input, shape index: {}]   ;;  %s6274_s3 = inlined_call_operand.vmem [shape: bf16[160,140], index: 3, kind: input, shape index: {}]   ;;  %s6275_s4 = inlined_call_operand.vmem [shape: f32[1,140], index: 4, kind: input, shape index: {}]   ;;  %s6276_s5 = inlined_call_operand.vmem [shape: bf16[140,120], index: 5, kind: input, shape index: {}]   ;;  %s6277_s6 = inlined_call_operand.vmem [shape: f32[1,120], index: 6, kind: input, shape index: {}]   ;;  %s6278_s7 = inlined_call_operand.vmem [shape: bf16[120,140], index: 7, kind: input, shape index: {}]   ;;  %s6279_s8 = inlined_call_operand.vmem [shape: f32[1,140], index: 8, kind: input, shape index: {}]   ;;  %s6280_s9 = inlined_call_operand.vmem [shape: bf16[140,160], index: 9, kind: input, shape index: {}]   ;;  %s6281_s10 = inlined_call_operand.vmem [shape: f32[1,160], index: 10, kind: input, shape index: {}]   ;;  %s6282_s11 = inlined_call_operand.vmem [shape: bf16[160,552], index: 11, kind: input, shape index: {}]   ;;  %s6283_s12 = inlined_call_operand.vmem [shape: f32[1,552], index: 12, kind: input, shape index: {}]   ;;  %s6284_s13 = inlined_call_operand.hbm [shape: f32[300,552], index: 13, kind: output, shape index: {}]  }
   0x1   :  { %20 = vsyncpa [#allocation3 + $0x1], 0  ;;  %s4632_s25 = smov 0   ;;  %s4634_s26 = smov 0  }
   0x2   :  { %s4636_s27 = smov 0   ;;  %s4638_s28 = smov 0  }
   0x3 LB: > { %6290 = sst [smem:[#allocation5_spill]] %s4544_s25  ;;  %s4653_s29 = sadd.s32 4294967295, %s4556_s28   ;;  %s4556_s28 = sphi %s4638_s28, %s6299_s28   ;;  %s4552_s27 = sphi %s4636_s27, %s6301_s27   ;;  %s4548_s26 = sphi %s4634_s26, %s6303_s26   ;;  %s4544_s25 = sphi %s4632_s25, %s6302_s25  }
   0x4   : > { %6291 = sst [smem:[#allocation6_spill]] %s4552_s27  ;;  %s3971_s30 = sadd.s32 4294967294, %s4556_s28  }
   0x5   : > { %s4657_s14 = sadd.s32 1, %s4556_s28   ;;  %s311_s15 = sadd.s32 1, %s4552_s27 }
   0x6   : > { %6292 = sst [smem:[#allocation7_spill]] %s4657_s14  ;;  %s308_s16 = ssub.s32 %s4556_s28, %s4657_s14 }
   0x7   : > { %p321_p0 = scmp.ne.s32.totalorder %s4552_s27, %s4548_s26  ;;  %p309_p1 = scmp.eq.s32.totalorder %s308_s16, 0 }
   0x8   : > { %p322_p2 = scmp.eq.s32.totalorder %s4653_s29, 1  ;;  %p327_p3 = scmp.ne.s32.totalorder %s4548_s26, %s4544_s25 }
   0x9   : > { %p328_p4 = scmp.eq.s32.totalorder %s3971_s30, 1  ;;  %p3974_p7 = scmp.ge.s32.totalorder %s4556_s28, 1 }
   0xa   : > { %s4668_s17 = scalar_select %p309_p1, %s4552_s27, %s311_s15  }
   0xb   : > { %p4670_p5 = por %p322_p2, %p321_p0  ;;  %p4674_p6 = por %p328_p4, %p327_p3 }
   0xc   : > { %6293 = sst [smem:[#allocation8_spill]] %s4668_s17  ;;  %p402_p8 = scmp.lt.s32.totalorder %s4556_s28, 3 }
   0xd   : > { %s6295_s19 = scalar_select %p4674_p6, 1, 0 }
   0xe   : > { %p403_p9 = pnand %p3974_p7, %p402_p8 }
   0xf   : > { %6296 = sst [smem:[#allocation9_spill]] %s6295_s19  ;;  %v4300_v0 = vld [vmem:[%s6272_s1 + $0x4] ss:$8 sps:$4 sm:$0xff] (!%p403_p9)   ;;  %s4684_s22 = sshll.u32 (!%p403_p9), %s4653_s29, 5  ;;  %v4302_v1 = vld [vmem:[%s6272_s1] ss:$8 sps:$4 sm:$0xff] (!%p403_p9)  }
  0x10   : > { %406 = sbr.rel (%p403_p9) target bundleno = 1666 (0x682), region = 72  ;;  %p458_p10 = scmp.lt.s32.totalorder (!%p403_p9), %s4684_s22, 37  ;;  %778 = vmatprep.subr.bf16.mxu0 (!%p403_p9), %v4300_v0  ;;  %v4303_v2 = vld [vmem:[%s6272_s1 + $0x14] ss:$8 sps:$4 sm:$0xff] (!%p403_p9)   ;;  %v4305_v3 = vld [vmem:[%s6272_s1 + $0x10] ss:$8 sps:$4 sm:$0xff] (!%p403_p9)  }
  0x11   : > { %779 = vmatpush1.bf16.msra.mxu0 (!%p403_p9), %v4302_v1  ;;  %v4306_v4 = vld [vmem:[%s6272_s1 + $0x24] ss:$8 sps:$4 sm:$0xff] (!%p403_p9)   ;;  %v4308_v5 = vld [vmem:[%s6272_s1 + $0x20] ss:$8 sps:$4 sm:$0xff] (!%p403_p9)   ;;  %v4309_v6 = vld [vmem:[%s6272_s1 + $0x34] ss:$8 sps:$4 sm:$0xff] (!%p403_p9)  }
  0x12   : > { %780 = vmatprep.subr.bf16.mxu0 (!%p403_p9), %v4303_v2  ;;  %v4311_v7 = vld [vmem:[%s6272_s1 + $0x30] ss:$8 sps:$4 sm:$0xff] (!%p403_p9)   ;;  %v4312_v8 = vld [vmem:[%s6272_s1 + $0x44] ss:$8 sps:$4 sm:$0xff] (!%p403_p9)   ;;  %v4314_v9 = vld [vmem:[%s6272_s1 + $0x40] ss:$8 sps:$4 sm:$0xff] (!%p403_p9)  }
  0x13   : > { %vm722_vm0 = vcmask (!%p403_p9), 457728   ;;  %v4315_v12 = vld [vmem:[%s6272_s1 + $0x54] ss:$8 sps:$4 sm:$0xff] (!%p403_p9)   ;;  %v4317_v14 = vld [vmem:[%s6272_s1 + $0x50] ss:$8 sps:$4 sm:$0xff] (!%p403_p9)   ;;  %vm771_vm1 = vcmask (!%p403_p9), 1043456  }
  0x14   : > { %v4318_v15 = vld [vmem:[%s6272_s1 + $0x64] ss:$8 sps:$4 sm:$0xff] (!%p403_p9)   ;;  %v4320_v16 = vld [vmem:[%s6272_s1 + $0x60] ss:$8 sps:$4 sm:$0xff] (!%p403_p9)   ;;  %v4321_v17 = vld [vmem:[%s6272_s1 + $0x74] ss:$8 sps:$4 sm:$0xff] (!%p403_p9)  }
  0x15   : > { %781 = vmatpush1.bf16.msra.mxu0 (!%p403_p9), %v4305_v3  ;;  %v4323_v18 = vld [vmem:[%s6272_s1 + $0x70] ss:$8 sps:$4 sm:$0xff] (!%p403_p9)   ;;  %v4324_v19 = vld [vmem:[%s6272_s1 + $0x84] ss:$8 sps:$4 sm:$0xff] (!%p403_p9)   ;;  %v4326_v20 = vld [vmem:[%s6272_s1 + $0x80] ss:$8 sps:$4 sm:$0xff] (!%p403_p9)  }
  0x16   : > { %782 = vmatprep.subr.bf16.mxu0 (!%p403_p9), %v4306_v4  ;;  %v4327_v21 = vld [vmem:[%s6272_s1 + $0x94] ss:$8 sps:$4 sm:$0xff] (!%p403_p9)   ;;  %v4329_v22 = vld [vmem:[%s6272_s1 + $0x90] ss:$8 sps:$4 sm:$0xff] (!%p403_p9)   ;;  %v4330_v23 = vld [vmem:[%s6272_s1 + $0xa4] ss:$8 sps:$4 sm:$0xff] (!%p403_p9)  }
  0x17   : > { %s459_s23 = scalar_select %p458_p10, %s4684_s22, 37  ;;  %v594_v24 = vld [vmem:[%s6272_s1 + $0xb0] sm:$0xff]  ;;  %v4332_v25 = vld [vmem:[%s6272_s1 + $0xa0] ss:$8 sps:$4 sm:$0xff]   ;;  %v4335_v28 = vld [vmem:[%s6274_s3 + $0x4] ss:$8 sps:$4 sm:$0xff]  }
  0x18   : > { %v4001_v26 = vcombine.high %v594_v24, %v594_v24  ;;  %v4000_v27 = vcombine.low %v594_v24, %v594_v24  ;;  %v4337_v29 = vld [vmem:[%s6274_s3] ss:$8 sps:$4 sm:$0xff]   ;;  %v4338_v30 = vld [vmem:[%s6274_s3 + $0x14] ss:$8 sps:$4 sm:$0xff]   ;;  %1248 = vmatprep.subr.bf16.mxu1 %v4335_v28  ;;  %v4340_v36 = vld [vmem:[%s6274_s3 + $0x10] ss:$8 sps:$4 sm:$0xff]  }
  0x19   : > { %s4256_s15 = sshll.u32 %s459_s23, 4  ;;  %783 = vmatpush1.bf16.msra.mxu0 %v4308_v5  ;;  %1249 = vmatpush1.bf16.msra.mxu1 %v4337_v29  ;;  %v4341_v38 = vld [vmem:[%s6274_s3 + $0x24] ss:$8 sps:$4 sm:$0xff]   ;;  %v4343_v40 = vld [vmem:[%s6274_s3 + $0x20] ss:$8 sps:$4 sm:$0xff]   ;;  %vm1199_vm2 = vcmask 261120  }
  0x1a   : > { %784 = vmatprep.subr.bf16.mxu0 %v4309_v6  ;;  %s4715_s27 = scalar_lea.vmem %s6271_s0, %s4256_s15  ;;  %v773_v33 = vsel %vm771_vm1, %v4000_v27, 0  ;;  %1250 = vmatprep.subr.bf16.mxu1 %v4338_v30  ;;  %v4344_v41 = vld [vmem:[%s6274_s3 + $0x34] ss:$8 sps:$4 sm:$0xff]   ;;  %v4346_v46 = vld [vmem:[%s6274_s3 + $0x30] ss:$8 sps:$4 sm:$0xff]   ;;  %vm1664_vm3 = vcmask 1045504  }
  0x1b   : > { %v477_v10 = vld [vmem:[%s4715_s27 + $0x8] sm:$0xff]  ;;  %v479_v11 = vld [vmem:[%s4715_s27 + $0x18] sm:$0xff]  ;;  %v476_v31 = vld [vmem:[%s4715_s27] sm:$0xff]  ;;  %vm1615_vm4 = vcmask 97280   ;;  %vm1979_vm5 = vcmask 982016   ;;  %vm3730_vm6 = vcmask 326656  }
  0x1c   : > { %v541_v13 = vpack.c.bf16 %v479_v11, %v477_v10  ;;  %v478_v32 = vld [vmem:[%s4715_s27 + $0x10] sm:$0xff]  ;;  %v481_v34 = vld [vmem:[%s4715_s27 + $0x28] sm:$0xff]  ;;  %v483_v35 = vld [vmem:[%s4715_s27 + $0x38] sm:$0xff]  ;;  %s3896_s20 = ssub.s32 (%p4670_p5), 38, %s4684_s22 }
  0x1d   : > { %785 = vmatpush1.bf16.msra.mxu0 %v4311_v7  ;;  %v540_v37 = vpack.c.bf16 %v478_v32, %v476_v31  ;;  %v543_v39 = vpack.c.bf16 %v483_v35, %v481_v34  ;;  %v480_v42 = vld [vmem:[%s4715_s27 + $0x20] sm:$0xff]  ;;  %v482_v43 = vld [vmem:[%s4715_s27 + $0x30] sm:$0xff]  ;;  %1251 = vmatpush1.bf16.msra.mxu1 %v4340_v36  ;;  %v485_v44 = vld [vmem:[%s4715_s27 + $0x48] sm:$0xff]  ;;  %p3897_p11 = scmp.lt.s32.totalorder (%p4670_p5), %s3896_s20, 32 }
  0x1e   : > { %786 = vmatprep.subr.bf16.mxu0 %v4312_v8  ;;  %4003 = vmatprep.mubr.msk.bf16.mxu0 %vm722_vm0, %v541_v13  ;;  %v487_v45 = vld [vmem:[%s4715_s27 + $0x58] sm:$0xff]  ;;  %v4347_v47 = vld [vmem:[%s6274_s3 + $0x44] ss:$8 sps:$4 sm:$0xff]   ;;  %v542_v48 = vpack.c.bf16 %v482_v43, %v480_v42  ;;  %v4349_v50 = vld [vmem:[%s6274_s3 + $0x40] ss:$8 sps:$4 sm:$0xff]  }
  0x1f   : > { %1252 = vmatprep.subr.bf16.mxu1 %v4341_v38  ;;  %v545_v49 = vpack.c.bf16 %v487_v45, %v485_v44  ;;  %v4350_v51 = vld [vmem:[%s6274_s3 + $0x54] ss:$8 sps:$4 sm:$0xff]   ;;  %v484_v52 = vld [vmem:[%s4715_s27 + $0x40] sm:$0xff]  ;;  %v489_v54 = vld [vmem:[%s4715_s27 + $0x68] sm:$0xff] }
  0x20   : > { %v486_v53 = vld [vmem:[%s4715_s27 + $0x50] sm:$0xff]  ;;  %v491_v55 = vld [vmem:[%s4715_s27 + $0x78] sm:$0xff]  ;;  %v4353_v57 = vld [vmem:[%s6274_s3 + $0x64] ss:$8 sps:$4 sm:$0xff]  }
  0x21   : > { %787 = vmatpush1.bf16.msra.mxu0 %v4314_v9  ;;  %1253 = vmatpush1.bf16.msra.mxu1 %v4343_v40  ;;  %v4352_v56 = vld [vmem:[%s6274_s3 + $0x50] ss:$8 sps:$4 sm:$0xff]   ;;  %v544_v58 = vpack.c.bf16 %v486_v53, %v484_v52  ;;  %v547_v59 = vpack.c.bf16 %v491_v55, %v489_v54  ;;  %v4355_v60 = vld [vmem:[%s6274_s3 + $0x60] ss:$8 sps:$4 sm:$0xff]   ;;  %v4356_v61 = vld [vmem:[%s6274_s3 + $0x74] ss:$8 sps:$4 sm:$0xff]  }
  0x22   : > { %788 = vmatprep.subr.bf16.mxu0 %v4315_v12  ;;  %1254 = vmatprep.subr.bf16.mxu1 %v4344_v41  ;;  %v488_v62 = vld [vmem:[%s4715_s27 + $0x60] sm:$0xff]  ;;  %v490_v63 = vld [vmem:[%s4715_s27 + $0x70] sm:$0xff]  ;;  %v493_v0 = vld [vmem:[%s4715_s27 + $0x88] sm:$0xff] }
  0x23   : > { %v495_v1 = vld [vmem:[%s4715_s27 + $0x98] sm:$0xff]  ;;  %v546_v2 = vpack.c.bf16 %v490_v63, %v488_v62  ;;  %v492_v4 = vld [vmem:[%s4715_s27 + $0x80] sm:$0xff]  ;;  %v494_v5 = vld [vmem:[%s4715_s27 + $0x90] sm:$0xff] }
  0x24   : > { %v549_v3 = vpack.c.bf16 %v495_v1, %v493_v0  ;;  %v497_v6 = vld [vmem:[%s4715_s27 + $0xa8] sm:$0xff]  ;;  %v499_v7 = vld [vmem:[%s4715_s27 + $0xb8] sm:$0xff]  ;;  %v548_v8 = vpack.c.bf16 %v494_v5, %v492_v4  ;;  %v496_v10 = vld [vmem:[%s4715_s27 + $0xa0] sm:$0xff] }
  0x25   : > { %789 = vmatpush1.bf16.msra.mxu0 %v4317_v14  ;;  %1255 = vmatpush1.bf16.msra.mxu1 %v4346_v46  ;;  %v551_v9 = vpack.c.bf16 %v499_v7, %v497_v6  ;;  %v498_v11 = vld [vmem:[%s4715_s27 + $0xb0] sm:$0xff]  ;;  %v501_v12 = vld [vmem:[%s4715_s27 + $0xc8] sm:$0xff]  ;;  %v503_v13 = vld [vmem:[%s4715_s27 + $0xd8] sm:$0xff] }
  0x26   : > { %790 = vmatprep.subr.bf16.mxu0 %v4318_v15  ;;  %1256 = vmatprep.subr.bf16.mxu1 %v4347_v47  ;;  %v550_v14 = vpack.c.bf16 %v498_v11, %v496_v10  ;;  %v553_v15 = vpack.c.bf16 %v503_v13, %v501_v12  ;;  %v509_v24 = vld [vmem:[%s4715_s27 + $0x108] sm:$0xff]  ;;  %v508_v28 = vld [vmem:[%s4715_s27 + $0x100] sm:$0xff]  ;;  %v510_v29 = vld [vmem:[%s4715_s27 + $0x110] sm:$0xff] }
  0x27   : > { %v513_v30 = vld [vmem:[%s4715_s27 + $0x128] sm:$0xff]  ;;  %v515_v31 = vld [vmem:[%s4715_s27 + $0x138] sm:$0xff]  ;;  %v556_v32 = vpack.c.bf16 %v510_v29, %v508_v28  ;;  %v512_v34 = vld [vmem:[%s4715_s27 + $0x120] sm:$0xff] }
  0x28   : > { %v514_v35 = vld [vmem:[%s4715_s27 + $0x130] sm:$0xff]  ;;  %v517_v36 = vld [vmem:[%s4715_s27 + $0x148] sm:$0xff]  ;;  %v516_v40 = vld [vmem:[%s4715_s27 + $0x140] sm:$0xff] }
  0x29   : > { %791 = vmatpush1.bf16.msra.mxu0 %v4320_v16  ;;  %1257 = vmatpush1.bf16.msra.mxu1 %v4349_v50  ;;  %v500_v16 = vld [vmem:[%s4715_s27 + $0xc0] sm:$0xff]  ;;  %v558_v38 = vpack.c.bf16 %v514_v35, %v512_v34  ;;  %v518_v41 = vld [vmem:[%s4715_s27 + $0x150] sm:$0xff]  ;;  %v521_v42 = vld [vmem:[%s4715_s27 + $0x168] sm:$0xff] }
  0x2a   : > { %792 = vmatprep.subr.bf16.mxu0 %v4321_v17  ;;  %1258 = vmatprep.subr.bf16.mxu1 %v4350_v51  ;;  %v502_v17 = vld [vmem:[%s4715_s27 + $0xd0] sm:$0xff]  ;;  %v523_v43 = vld [vmem:[%s4715_s27 + $0x178] sm:$0xff]  ;;  %v560_v44 = vpack.c.bf16 %v518_v41, %v516_v40  ;;  %v520_v46 = vld [vmem:[%s4715_s27 + $0x160] sm:$0xff] }
  0x2b   : > { %v563_v45 = vpack.c.bf16 %v523_v43, %v521_v42  ;;  %v522_v47 = vld [vmem:[%s4715_s27 + $0x170] sm:$0xff]  ;;  %v527_v50 = vld [vmem:[%s4715_s27 + $0x198] sm:$0xff]  ;;  %v4359_v52 = vld [vmem:[%s6274_s3 + $0x84] ss:$8 sps:$4 sm:$0xff]  }
  0x2c   : > { %v562_v51 = vpack.c.bf16 %v522_v47, %v520_v46  ;;  %v4361_v54 = vld [vmem:[%s6274_s3 + $0x80] ss:$8 sps:$4 sm:$0xff]   ;;  %v4362_v55 = vld [vmem:[%s6274_s3 + $0x94] ss:$8 sps:$4 sm:$0xff]  }
  0x2d   : > { %793 = vmatpush1.bf16.msra.mxu0 %v4323_v18  ;;  %1259 = vmatpush1.bf16.msra.mxu1 %v4352_v56  ;;  %v505_v18 = vld [vmem:[%s4715_s27 + $0xe8] sm:$0xff]  ;;  %v524_v56 = vld [vmem:[%s4715_s27 + $0x180] sm:$0xff]  ;;  %v530_v0 = vld [vmem:[%s4715_s27 + $0x1b0] sm:$0xff] }
  0x2e   : > { %794 = vmatprep.subr.bf16.mxu0 %v4324_v19  ;;  %1260 = vmatprep.subr.bf16.mxu1 %v4353_v57  ;;  %v507_v19 = vld [vmem:[%s4715_s27 + $0xf8] sm:$0xff]  ;;  %v526_v57 = vld [vmem:[%s4715_s27 + $0x190] sm:$0xff]  ;;  %v528_v63 = vld [vmem:[%s4715_s27 + $0x1a0] sm:$0xff] }
  0x2f   : > { %v533_v1 = vld [vmem:[%s4715_s27 + $0x1c8] sm:$0xff]  ;;  %v532_v5 = vld [vmem:[%s4715_s27 + $0x1c0] sm:$0xff]  ;;  %v534_v6 = vld [vmem:[%s4715_s27 + $0x1d0] sm:$0xff] }
  0x30   : > { %v537_v7 = vld [vmem:[%s4715_s27 + $0x1e8] sm:$0xff]  ;;  %v536_v11 = vld [vmem:[%s4715_s27 + $0x1e0] sm:$0xff]  ;;  %v538_v12 = vld [vmem:[%s4715_s27 + $0x1f0] sm:$0xff] }
  0x31   : > { %795 = vmatpush1.bf16.msra.mxu0 %v4326_v20  ;;  %1261 = vmatpush1.bf16.msra.mxu1 %v4355_v60  ;;  %v552_v20 = vpack.c.bf16 %v502_v17, %v500_v16  ;;  %v531_v60 = vld [vmem:[%s4715_s27 + $0x1b8] sm:$0xff]  ;;  %v570_v13 = vpack.c.bf16 %v538_v12, %v536_v11 }
  0x32   : > { %796 = vmatprep.subr.bf16.mxu0 %v4327_v21  ;;  %1262 = vmatprep.subr.bf16.mxu1 %v4356_v61  ;;  %v555_v21 = vpack.c.bf16 %v507_v19, %v505_v18  ;;  %v564_v61 = vpack.c.bf16 %v526_v57, %v524_v56  ;;  %v595_v18 = vld [vmem:[%s6273_s2] sm:$0x3] }
  0x35   : > { %797 = vmatpush1.bf16.msra.mxu0 %v4329_v22  ;;  %v504_v22 = vld [vmem:[%s4715_s27 + $0xe0] sm:$0xff] }
  0x36   : > { %798 = vmatprep.subr.bf16.mxu0 %v4330_v23  ;;  %v506_v23 = vld [vmem:[%s4715_s27 + $0xf0] sm:$0xff] }
  0x39   : > { %799 = vmatpush1.bf16.msra.mxu0 %v4332_v25  ;;  %v511_v25 = vld [vmem:[%s4715_s27 + $0x118] sm:$0xff] }
  0x3a   : > { %4002 = vmatprep.subr.msk.bf16.mxu0 %vm771_vm1, %v4001_v26  ;;  %v554_v26 = vpack.c.bf16 %v506_v23, %v504_v22  ;;  %v557_v27 = vpack.c.bf16 %v511_v25, %v509_v24 }
  0x3d   : > { %801 = vmatpush1.bf16.msra.mxu0 %v773_v33  ;;  %v559_v33 = vpack.c.bf16 %v515_v31, %v513_v30 }
  0x40   : > { %811 = vmatmul.mubr.bf16.vlgmr.msra.gmra.mrb[0].mxu0 %v540_v37  ;;  %v519_v37 = vld [vmem:[%s4715_s27 + $0x158] sm:$0xff] }
  0x41   : > { %4004 = vmatprep.mubr.msk.bf16.mxu0 %vm722_vm0, %v543_v39  ;;  %v561_v39 = vpack.c.bf16 %v519_v37, %v517_v36  ;;  %v4365_v37 = vld [vmem:[%s6276_s5] sm:$0xff]  }
  0x48   : > { %821 = vmatmul.mubr.bf16.gmra.mrb[4].mxu0 %v542_v48  ;;  %v4358_v48 = vld [vmem:[%s6274_s3 + $0x70] ss:$8 sps:$4 sm:$0xff]  }
  0x49   : > { %4005 = vmatprep.mubr.msk.bf16.mxu0 %vm722_vm0, %v545_v49  ;;  %v525_v49 = vld [vmem:[%s4715_s27 + $0x188] sm:$0xff]  ;;  %1263 = vmatpush1.bf16.msra.mxu1 %v4358_v48 }
  0x4a   : > { %v565_v53 = vpack.c.bf16 %v527_v50, %v525_v49  ;;  %1264 = vmatprep.subr.bf16.mxu1 %v4359_v52 }
  0x4d   : > { %1265 = vmatpush1.bf16.msra.mxu1 %v4361_v54 }
  0x4e   : > { %1266 = vmatprep.subr.bf16.mxu1 %v4362_v55 }
  0x50   : > { %831 = vmatmul.mubr.bf16.gmra.mrb[8].mxu0 %v544_v58  ;;  %v4364_v58 = vld [vmem:[%s6274_s3 + $0x90] ss:$8 sps:$4 sm:$0xff]  }
  0x51   : > { %4006 = vmatprep.mubr.msk.bf16.mxu0 %vm722_vm0, %v547_v59  ;;  %v529_v59 = vld [vmem:[%s4715_s27 + $0x1a8] sm:$0xff]  ;;  %1267 = vmatpush1.bf16.msra.mxu1 %v4364_v58 }
  0x52   : > { %v567_v62 = vpack.c.bf16 %v531_v60, %v529_v59 }
  0x58   : > { %841 = vmatmul.mubr.bf16.gmra.mrb[12].mxu0 %v546_v2  ;;  %v535_v2 = vld [vmem:[%s4715_s27 + $0x1d8] sm:$0xff] }
  0x59   : > { %4007 = vmatprep.mubr.msk.bf16.mxu0 %vm722_vm0, %v549_v3  ;;  %v566_v3 = vpack.c.bf16 %v530_v0, %v528_v63  ;;  %v569_v4 = vpack.c.bf16 %v535_v2, %v533_v1 }
  0x60   : > { %851 = vmatmul.mubr.bf16.gmra.mrb[16].mxu0 %v548_v8  ;;  %v539_v8 = vld [vmem:[%s4715_s27 + $0x1f8] sm:$0xff]  ;;  %s449_s27 = sand.u32 1, %s4548_s26  }
  0x61   : > { %4008 = vmatprep.mubr.msk.bf16.mxu0 %vm722_vm0, %v551_v9  ;;  %v568_v9 = vpack.c.bf16 %v534_v6, %v532_v5  ;;  %v571_v10 = vpack.c.bf16 %v539_v8, %v537_v7  ;;  %v4369_v5 = vld [vmem:[%s6276_s5 + $0x20] sm:$0xff]   ;;  %s4257_s15 = smul.u32 1280, %s449_s27  ;;  %s6210_s16 = scalar_lea.sflag [#allocation3], %s449_s27 }
  0x63   : > { %s5841_s17 = scalar_lea.vmem [#allocation2], %s4257_s15 }
  0x68   : > { %861 = vmatmul.mubr.bf16.gmra.mrb[20].mxu0 %v550_v14  ;;  %v4558_v14 = vmov 0  }
  0x69   : > { %4009 = vmatprep.mubr.msk.bf16.mxu0 %vm722_vm0, %v553_v15  ;;  %1668 = vmatprep.subr.bf16.mxu1 %v4558_v14  ;;  %v597_v15 = vlaneseq }
  0x6b   : > { %v4903_v16 = vshrl.u32 %v597_v15, 7 }
  0x6d   : > { %v4906_v17 = vsub.s32 0, %v4903_v16  ;;  %v4912_v19 = vsub.s32 1, %v4903_v16 }
  0x70   : > { %871 = vmatmul.mubr.bf16.gmra.mrb[24].mxu0 %v552_v20  ;;  %v4915_v20 = vrot.slane %v595_v18, %v4906_v17 }
  0x71   : > { %4010 = vmatprep.mubr.msk.bf16.mxu0 %vm722_vm0, %v555_v21  ;;  %v4918_v21 = vrot.slane %v595_v18, %v4912_v19 }
  0x78   : > { %881 = vmatmul.mubr.bf16.gmra.mrb[28].mxu0 %v554_v26 }
  0x79   : > { %4011 = vmatprep.mubr.msk.bf16.mxu0 %vm722_vm0, %v557_v27 }
  0x80   : > { %891 = vmatmul.mubr.bf16.gmra.mrb[32].mxu0 %v556_v32 }
  0x81   : > { %4012 = vmatprep.mubr.msk.bf16.mxu0 %vm722_vm0, %v559_v33 }
  0x88   : > { %901 = vmatmul.mubr.bf16.gmra.mrb[36].mxu0 %v558_v38 }
  0x89   : > { %4013 = vmatprep.mubr.msk.bf16.mxu0 %vm722_vm0, %v561_v39 }
  0x90   : > { %911 = vmatmul.mubr.bf16.gmra.mrb[40].mxu0 %v560_v44 }
  0x91   : > { %4014 = vmatprep.mubr.msk.bf16.mxu0 %vm722_vm0, %v563_v45  ;;  %v4366_v45 = vld [vmem:[%s6276_s5 + $0x8] sm:$0xff]  }
  0x98   : > { %921 = vmatmul.mubr.bf16.gmra.mrb[44].mxu0 %v562_v51 }
  0x99   : > { %4015 = vmatprep.mubr.msk.bf16.mxu0 %vm722_vm0, %v565_v53  ;;  %v4367_v53 = vld [vmem:[%s6276_s5 + $0x10] sm:$0xff]  }
  0xa0   : > { %931 = vmatmul.mubr.bf16.gmra.mrb[48].mxu0 %v564_v61  ;;  %v4368_v61 = vld [vmem:[%s6276_s5 + $0x18] sm:$0xff]  }
  0xa1   : > { %4016 = vmatprep.mubr.msk.bf16.mxu0 %vm722_vm0, %v567_v62 }
  0xa8   : > { %941 = vmatmul.mubr.bf16.gmra.mrb[52].mxu0 %v566_v3 }
  0xa9   : > { %4017 = vmatprep.mubr.msk.bf16.mxu0 %vm722_vm0, %v569_v4 }
  0xb0   : > { %951 = vmatmul.mubr.bf16.gmra.mrb[56].mxu0 %v568_v9 }
  0xb1   : > { %4018 = vmatprep.mubr.msk.bf16.mxu0 %vm722_vm0, %v571_v10 }
  0xb8   : > { %961 = vmatmul.mubr.bf16.gmra.mrb[60].mxu0 %v570_v13  ;;  %v4370_v13 = vld [vmem:[%s6276_s5 + $0x28] sm:$0xff]  }
  0xb9   : > { %2066 = vmatprep.mubr.bf16.mxu0 %v4558_v14 }
 0x113   : > { %v812_v22 = vpop.f32.mrb[0].mxu0 }
 0x114   : > { %v813_v23 = vadd.f32 %v812_v22, %v4915_v20  ;;  %v814_v24 = vpop.f32.mrb[1].mxu0 }
 0x115   : > { %v815_v25 = vadd.f32 %v814_v24, %v4918_v21  ;;  %v816_v26 = vpop.f32.mrb[2].mxu0 }
 0x116   : > { %v817_v27 = vadd.f32 %v816_v26, %v4915_v20  ;;  %v818_v28 = vpop.f32.mrb[3].mxu0  ;;  %v971_v30 = vmax.f32 %v813_v23, 0.0 }
 0x117   : > { %v819_v29 = vadd.f32 %v818_v28, %v4918_v21  ;;  %v972_v32 = vmax.f32 %v815_v25, 0.0 }
 0x118   : > { %v973_v31 = vmax.f32 %v817_v27, 0.0  ;;  %v4371_v27 = vld [vmem:[%s6276_s5 + $0x30] sm:$0xff]  }
 0x119   : > { %v974_v33 = vmax.f32 %v819_v29, 0.0 }
 0x11a   : > { %v1035_v34 = vpack.c.bf16 %v973_v31, %v971_v30 }
 0x11b   : > { %v822_v35 = vpop.f32.mrb[4].mxu0  ;;  %v1036_v36 = vpack.c.bf16 %v974_v33, %v972_v32 }
 0x11c   : > { %v823_v38 = vadd.f32 %v822_v35, %v4915_v20  ;;  %v824_v39 = vpop.f32.mrb[5].mxu0  ;;  %v4372_v35 = vld [vmem:[%s6276_s5 + $0x38] sm:$0xff]  }
 0x11d   : > { %v825_v40 = vadd.f32 %v824_v39, %v4918_v21  ;;  %v826_v41 = vpop.f32.mrb[6].mxu0  ;;  %4039 = vmatprep.mubr.msk.bf16.mxu1 %vm1199_vm2, %v1036_v36 }
 0x11e   : > { %v827_v42 = vadd.f32 %v826_v41, %v4915_v20  ;;  %v828_v43 = vpop.f32.mrb[7].mxu0  ;;  %1281 = vmatmul.mubr.bf16.vlgmr.msra.gmra.mrb[0].mxu1 %v1035_v34  ;;  %v975_v46 = vmax.f32 %v823_v38, 0.0  ;;  %v4373_v38 = vld [vmem:[%s6276_s5 + $0x40] sm:$0x3f]  }
 0x11f   : > { %v829_v44 = vadd.f32 %v828_v43, %v4918_v21  ;;  %1669 = vmatpush1.bf16.msra.mxu1 %v4365_v37  ;;  %v976_v48 = vmax.f32 %v825_v40, 0.0 }
 0x120   : > { %v977_v47 = vmax.f32 %v827_v42, 0.0  ;;  %1670 = vmatprep.subr.bf16.mxu1 %v4558_v14 }
 0x121   : > { %v978_v49 = vmax.f32 %v829_v44, 0.0 }
 0x122   : > { %v1037_v50 = vpack.c.bf16 %v977_v47, %v975_v46  ;;  %v1666_v46 = vsel %vm1664_vm3, %v4373_v38, 0 }
 0x123   : > { %v1038_v51 = vpack.c.bf16 %v978_v49, %v976_v48  ;;  %v832_v52 = vpop.f32.mrb[8].mxu0  ;;  %1671 = vmatpush1.bf16.msra.mxu1 %v4366_v45 }
 0x124   : > { %v833_v54 = vadd.f32 %v832_v52, %v4915_v20  ;;  %v834_v55 = vpop.f32.mrb[9].mxu0  ;;  %1672 = vmatprep.subr.bf16.mxu1 %v4558_v14 }
 0x125   : > { %v835_v56 = vadd.f32 %v834_v55, %v4918_v21  ;;  %v836_v57 = vpop.f32.mrb[10].mxu0  ;;  %4040 = vmatprep.mubr.msk.bf16.mxu1 %vm1199_vm2, %v1038_v51 }
 0x126   : > { %v837_v58 = vadd.f32 %v836_v57, %v4915_v20  ;;  %v838_v59 = vpop.f32.mrb[11].mxu0  ;;  %1291 = vmatmul.mubr.bf16.gmra.mrb[4].mxu1 %v1037_v50  ;;  %v979_v62 = vmax.f32 %v833_v54, 0.0 }
 0x127   : > { %v839_v60 = vadd.f32 %v838_v59, %v4918_v21  ;;  %1673 = vmatpush1.bf16.msra.mxu1 %v4367_v53  ;;  %v980_v0 = vmax.f32 %v835_v56, 0.0 }
 0x128   : > { %v981_v63 = vmax.f32 %v837_v58, 0.0  ;;  %1674 = vmatprep.subr.bf16.mxu1 %v4558_v14 }
 0x129   : > { %v982_v1 = vmax.f32 %v839_v60, 0.0 }
 0x12a   : > { %v1039_v2 = vpack.c.bf16 %v981_v63, %v979_v62 }
 0x12b   : > { %v1040_v3 = vpack.c.bf16 %v982_v1, %v980_v0  ;;  %v842_v4 = vpop.f32.mrb[12].mxu0  ;;  %1675 = vmatpush1.bf16.msra.mxu1 %v4368_v61 }
 0x12c   : > { %v843_v6 = vadd.f32 %v842_v4, %v4915_v20  ;;  %v844_v7 = vpop.f32.mrb[13].mxu0  ;;  %1676 = vmatprep.subr.bf16.mxu1 %v4558_v14 }
 0x12d   : > { %v845_v8 = vadd.f32 %v844_v7, %v4918_v21  ;;  %v846_v9 = vpop.f32.mrb[14].mxu0  ;;  %4041 = vmatprep.mubr.msk.bf16.mxu1 %vm1199_vm2, %v1040_v3 }
 0x12e   : > { %v847_v10 = vadd.f32 %v846_v9, %v4915_v20  ;;  %v848_v11 = vpop.f32.mrb[15].mxu0  ;;  %1301 = vmatmul.mubr.bf16.gmra.mrb[8].mxu1 %v1039_v2  ;;  %v983_v15 = vmax.f32 %v843_v6, 0.0 }
 0x12f   : > { %v849_v12 = vadd.f32 %v848_v11, %v4918_v21  ;;  %1677 = vmatpush1.bf16.msra.mxu1 %v4369_v5  ;;  %v984_v22 = vmax.f32 %v845_v8, 0.0 }
 0x130   : > { %v985_v18 = vmax.f32 %v847_v10, 0.0  ;;  %1678 = vmatprep.subr.bf16.mxu1 %v4558_v14 }
 0x131   : > { %v986_v23 = vmax.f32 %v849_v12, 0.0 }
 0x132   : > { %v1041_v24 = vpack.c.bf16 %v985_v18, %v983_v15 }
 0x133   : > { %v1042_v25 = vpack.c.bf16 %v986_v23, %v984_v22  ;;  %v852_v26 = vpop.f32.mrb[16].mxu0  ;;  %1679 = vmatpush1.bf16.msra.mxu1 %v4370_v13 }
 0x134   : > { %v853_v28 = vadd.f32 %v852_v26, %v4915_v20  ;;  %v854_v29 = vpop.f32.mrb[17].mxu0  ;;  %1680 = vmatprep.subr.bf16.mxu1 %v4558_v14 }
 0x135   : > { %v855_v30 = vadd.f32 %v854_v29, %v4918_v21  ;;  %v856_v31 = vpop.f32.mrb[18].mxu0  ;;  %4042 = vmatprep.mubr.msk.bf16.mxu1 %vm1199_vm2, %v1042_v25 }
 0x136   : > { %v857_v32 = vadd.f32 %v856_v31, %v4915_v20  ;;  %v858_v33 = vpop.f32.mrb[19].mxu0  ;;  %1311 = vmatmul.mubr.bf16.gmra.mrb[12].mxu1 %v1041_v24  ;;  %v987_v36 = vmax.f32 %v853_v28, 0.0 }
 0x137   : > { %v859_v34 = vadd.f32 %v858_v33, %v4918_v21  ;;  %1681 = vmatpush1.bf16.msra.mxu1 %v4371_v27  ;;  %v988_v39 = vmax.f32 %v855_v30, 0.0 }
 0x138   : > { %v989_v37 = vmax.f32 %v857_v32, 0.0  ;;  %1682 = vmatprep.subr.bf16.mxu1 %v4558_v14 }
 0x139   : > { %v990_v40 = vmax.f32 %v859_v34, 0.0 }
 0x13a   : > { %v1043_v41 = vpack.c.bf16 %v989_v37, %v987_v36 }
 0x13b   : > { %v1044_v42 = vpack.c.bf16 %v990_v40, %v988_v39  ;;  %v862_v43 = vpop.f32.mrb[20].mxu0  ;;  %1683 = vmatpush1.bf16.msra.mxu1 %v4372_v35 }
 0x13c   : > { %v863_v44 = vadd.f32 %v862_v43, %v4915_v20  ;;  %v864_v45 = vpop.f32.mrb[21].mxu0  ;;  %1684 = vmatprep.subr.bf16.mxu1 %v4558_v14 }
 0x13d   : > { %v865_v47 = vadd.f32 %v864_v45, %v4918_v21  ;;  %v866_v48 = vpop.f32.mrb[22].mxu0  ;;  %4043 = vmatprep.mubr.msk.bf16.mxu1 %vm1199_vm2, %v1044_v42 }
 0x13e   : > { %v867_v49 = vadd.f32 %v866_v48, %v4915_v20  ;;  %v868_v50 = vpop.f32.mrb[23].mxu0  ;;  %1321 = vmatmul.mubr.bf16.gmra.mrb[16].mxu1 %v1043_v41  ;;  %v991_v52 = vmax.f32 %v863_v44, 0.0 }
 0x13f   : > { %v869_v51 = vadd.f32 %v868_v50, %v4918_v21  ;;  %1685 = vmatpush1.bf16.msra.mxu1 %v1666_v46  ;;  %v992_v54 = vmax.f32 %v865_v47, 0.0 }
 0x140   : > { %v993_v53 = vmax.f32 %v867_v49, 0.0 }
 0x141   : > { %v994_v55 = vmax.f32 %v869_v51, 0.0 }
 0x142   : > { %v1045_v56 = vpack.c.bf16 %v993_v53, %v991_v52 }
 0x143   : > { %v1046_v57 = vpack.c.bf16 %v994_v55, %v992_v54  ;;  %v872_v58 = vpop.f32.mrb[24].mxu0 }
 0x144   : > { %v873_v59 = vadd.f32 %v872_v58, %v4915_v20  ;;  %v874_v60 = vpop.f32.mrb[25].mxu0 }
 0x145   : > { %v875_v61 = vadd.f32 %v874_v60, %v4918_v21  ;;  %v876_v62 = vpop.f32.mrb[26].mxu0  ;;  %4044 = vmatprep.mubr.msk.bf16.mxu1 %vm1199_vm2, %v1046_v57 }
 0x146   : > { %v877_v63 = vadd.f32 %v876_v62, %v4915_v20  ;;  %v878_v0 = vpop.f32.mrb[27].mxu0  ;;  %1331 = vmatmul.mubr.bf16.gmra.mrb[20].mxu1 %v1045_v56  ;;  %v995_v2 = vmax.f32 %v873_v59, 0.0 }
 0x147   : > { %v879_v1 = vadd.f32 %v878_v0, %v4918_v21  ;;  %v996_v4 = vmax.f32 %v875_v61, 0.0 }
 0x148   : > { %v997_v3 = vmax.f32 %v877_v63, 0.0 }
 0x149   : > { %v998_v5 = vmax.f32 %v879_v1, 0.0 }
 0x14a   : > { %v1047_v6 = vpack.c.bf16 %v997_v3, %v995_v2 }
 0x14b   : > { %v1048_v7 = vpack.c.bf16 %v998_v5, %v996_v4  ;;  %v882_v8 = vpop.f32.mrb[28].mxu0 }
 0x14c   : > { %v883_v9 = vadd.f32 %v882_v8, %v4915_v20  ;;  %v884_v10 = vpop.f32.mrb[29].mxu0 }
 0x14d   : > { %v885_v11 = vadd.f32 %v884_v10, %v4918_v21  ;;  %v886_v12 = vpop.f32.mrb[30].mxu0  ;;  %4045 = vmatprep.mubr.msk.bf16.mxu1 %vm1199_vm2, %v1048_v7 }
 0x14e   : > { %v887_v13 = vadd.f32 %v886_v12, %v4915_v20  ;;  %v888_v15 = vpop.f32.mrb[31].mxu0  ;;  %1341 = vmatmul.mubr.bf16.gmra.mrb[24].mxu1 %v1047_v6  ;;  %v999_v22 = vmax.f32 %v883_v9, 0.0 }
 0x14f   : > { %v889_v18 = vadd.f32 %v888_v15, %v4918_v21  ;;  %v1000_v24 = vmax.f32 %v885_v11, 0.0 }
 0x150   : > { %v1001_v23 = vmax.f32 %v887_v13, 0.0 }
 0x151   : > { %v1002_v25 = vmax.f32 %v889_v18, 0.0 }
 0x152   : > { %v1049_v26 = vpack.c.bf16 %v1001_v23, %v999_v22 }
 0x153   : > { %v1050_v27 = vpack.c.bf16 %v1002_v25, %v1000_v24  ;;  %v892_v28 = vpop.f32.mrb[32].mxu0 }
 0x154   : > { %v893_v29 = vadd.f32 %v892_v28, %v4915_v20  ;;  %v894_v30 = vpop.f32.mrb[33].mxu0 }
 0x155   : > { %v895_v31 = vadd.f32 %v894_v30, %v4918_v21  ;;  %v896_v32 = vpop.f32.mrb[34].mxu0  ;;  %4046 = vmatprep.mubr.msk.bf16.mxu1 %vm1199_vm2, %v1050_v27 }
 0x156   : > { %v897_v33 = vadd.f32 %v896_v32, %v4915_v20  ;;  %v898_v34 = vpop.f32.mrb[35].mxu0  ;;  %1351 = vmatmul.mubr.bf16.gmra.mrb[28].mxu1 %v1049_v26  ;;  %v1003_v36 = vmax.f32 %v893_v29, 0.0 }
 0x157   : > { %v899_v35 = vadd.f32 %v898_v34, %v4918_v21  ;;  %v1004_v38 = vmax.f32 %v895_v31, 0.0 }
 0x158   : > { %v1005_v37 = vmax.f32 %v897_v33, 0.0 }
 0x159   : > { %v1006_v39 = vmax.f32 %v899_v35, 0.0 }
 0x15a   : > { %v1051_v40 = vpack.c.bf16 %v1005_v37, %v1003_v36 }
 0x15b   : > { %v1052_v41 = vpack.c.bf16 %v1006_v39, %v1004_v38  ;;  %v902_v42 = vpop.f32.mrb[36].mxu0 }
 0x15c   : > { %v903_v43 = vadd.f32 %v902_v42, %v4915_v20  ;;  %v904_v44 = vpop.f32.mrb[37].mxu0 }
 0x15d   : > { %v905_v45 = vadd.f32 %v904_v44, %v4918_v21  ;;  %v906_v46 = vpop.f32.mrb[38].mxu0  ;;  %4047 = vmatprep.mubr.msk.bf16.mxu1 %vm1199_vm2, %v1052_v41 }
 0x15e   : > { %v907_v47 = vadd.f32 %v906_v46, %v4915_v20  ;;  %v908_v48 = vpop.f32.mrb[39].mxu0  ;;  %1361 = vmatmul.mubr.bf16.gmra.mrb[32].mxu1 %v1051_v40  ;;  %v1007_v50 = vmax.f32 %v903_v43, 0.0 }
 0x15f   : > { %v909_v49 = vadd.f32 %v908_v48, %v4918_v21  ;;  %v1008_v52 = vmax.f32 %v905_v45, 0.0 }
 0x160   : > { %v1009_v51 = vmax.f32 %v907_v47, 0.0 }
 0x161   : > { %v1010_v53 = vmax.f32 %v909_v49, 0.0 }
 0x162   : > { %v1053_v54 = vpack.c.bf16 %v1009_v51, %v1007_v50 }
 0x163   : > { %v1054_v55 = vpack.c.bf16 %v1010_v53, %v1008_v52  ;;  %v912_v56 = vpop.f32.mrb[40].mxu0 }
 0x164   : > { %v913_v57 = vadd.f32 %v912_v56, %v4915_v20  ;;  %v914_v58 = vpop.f32.mrb[41].mxu0 }
 0x165   : > { %v915_v59 = vadd.f32 %v914_v58, %v4918_v21  ;;  %v916_v60 = vpop.f32.mrb[42].mxu0  ;;  %4048 = vmatprep.mubr.msk.bf16.mxu1 %vm1199_vm2, %v1054_v55 }
 0x166   : > { %v917_v61 = vadd.f32 %v916_v60, %v4915_v20  ;;  %v918_v62 = vpop.f32.mrb[43].mxu0  ;;  %1371 = vmatmul.mubr.bf16.gmra.mrb[36].mxu1 %v1053_v54  ;;  %v1011_v0 = vmax.f32 %v913_v57, 0.0 }
 0x167   : > { %v919_v63 = vadd.f32 %v918_v62, %v4918_v21  ;;  %v1012_v2 = vmax.f32 %v915_v59, 0.0 }
 0x168   : > { %v1013_v1 = vmax.f32 %v917_v61, 0.0 }
 0x169   : > { %v1014_v3 = vmax.f32 %v919_v63, 0.0 }
 0x16a   : > { %v1055_v4 = vpack.c.bf16 %v1013_v1, %v1011_v0 }
 0x16b   : > { %v1056_v5 = vpack.c.bf16 %v1014_v3, %v1012_v2  ;;  %v922_v6 = vpop.f32.mrb[44].mxu0 }
 0x16c   : > { %v923_v7 = vadd.f32 %v922_v6, %v4915_v20  ;;  %v924_v8 = vpop.f32.mrb[45].mxu0 }
 0x16d   : > { %v925_v9 = vadd.f32 %v924_v8, %v4918_v21  ;;  %v926_v10 = vpop.f32.mrb[46].mxu0  ;;  %4049 = vmatprep.mubr.msk.bf16.mxu1 %vm1199_vm2, %v1056_v5 }
 0x16e   : > { %v927_v11 = vadd.f32 %v926_v10, %v4915_v20  ;;  %v928_v12 = vpop.f32.mrb[47].mxu0  ;;  %1381 = vmatmul.mubr.bf16.gmra.mrb[40].mxu1 %v1055_v4  ;;  %v1015_v15 = vmax.f32 %v923_v7, 0.0 }
 0x16f   : > { %v929_v13 = vadd.f32 %v928_v12, %v4918_v21  ;;  %v1016_v22 = vmax.f32 %v925_v9, 0.0 }
 0x170   : > { %v1017_v18 = vmax.f32 %v927_v11, 0.0 }
 0x171   : > { %v1018_v23 = vmax.f32 %v929_v13, 0.0 }
 0x172   : > { %v1057_v24 = vpack.c.bf16 %v1017_v18, %v1015_v15 }
 0x173   : > { %v1058_v25 = vpack.c.bf16 %v1018_v23, %v1016_v22  ;;  %v932_v26 = vpop.f32.mrb[48].mxu0 }
 0x174   : > { %v933_v27 = vadd.f32 %v932_v26, %v4915_v20  ;;  %v934_v28 = vpop.f32.mrb[49].mxu0  ;;  %v1087_v26 = vld [vmem:[%s6275_s4] sm:$0x3] }
 0x175   : > { %v935_v29 = vadd.f32 %v934_v28, %v4918_v21  ;;  %v936_v30 = vpop.f32.mrb[50].mxu0  ;;  %4050 = vmatprep.mubr.msk.bf16.mxu1 %vm1199_vm2, %v1058_v25  ;;  %v4379_v25 = vld [vmem:[%s6278_s7 + $0x14] ss:$8 sps:$4 sm:$0xff]   ;;  %v5055_v28 = vrot.slane %v1087_v26, %v4912_v19 }
 0x176   : > { %v937_v31 = vadd.f32 %v936_v30, %v4915_v20  ;;  %v938_v32 = vpop.f32.mrb[51].mxu0  ;;  %1391 = vmatmul.mubr.bf16.gmra.mrb[44].mxu1 %v1057_v24  ;;  %v1019_v34 = vmax.f32 %v933_v27, 0.0  ;;  %v4374_v24 = vld [vmem:[%s6278_s7] ss:$8 sps:$4 sm:$0xff]   ;;  %v5052_v27 = vrot.slane %v1087_v26, %v4906_v17 }
 0x177   : > { %v939_v33 = vadd.f32 %v938_v32, %v4918_v21  ;;  %v1020_v36 = vmax.f32 %v935_v29, 0.0 }
 0x178   : > { %v1021_v35 = vmax.f32 %v937_v31, 0.0 }
 0x179   : > { %v1022_v37 = vmax.f32 %v939_v33, 0.0 }
 0x17a   : > { %v1059_v38 = vpack.c.bf16 %v1021_v35, %v1019_v34 }
 0x17b   : > { %v1060_v39 = vpack.c.bf16 %v1022_v37, %v1020_v36  ;;  %v942_v40 = vpop.f32.mrb[52].mxu0  ;;  %v4380_v36 = vld [vmem:[%s6278_s7 + $0x20] ss:$8 sps:$4 sm:$0xff]   ;;  %v4382_v37 = vld [vmem:[%s6278_s7 + $0x24] ss:$8 sps:$4 sm:$0xff]  }
 0x17c   : > { %v943_v41 = vadd.f32 %v942_v40, %v4915_v20  ;;  %v944_v42 = vpop.f32.mrb[53].mxu0 }
 0x17d   : > { %v945_v43 = vadd.f32 %v944_v42, %v4918_v21  ;;  %v946_v44 = vpop.f32.mrb[54].mxu0  ;;  %4051 = vmatprep.mubr.msk.bf16.mxu1 %vm1199_vm2, %v1060_v39  ;;  %v4385_v39 = vld [vmem:[%s6278_s7 + $0x34] ss:$8 sps:$4 sm:$0xff]  }
 0x17e   : > { %v947_v45 = vadd.f32 %v946_v44, %v4915_v20  ;;  %v948_v46 = vpop.f32.mrb[55].mxu0  ;;  %1401 = vmatmul.mubr.bf16.gmra.mrb[48].mxu1 %v1059_v38  ;;  %v1023_v48 = vmax.f32 %v943_v41, 0.0  ;;  %v4383_v44 = vld [vmem:[%s6278_s7 + $0x30] ss:$8 sps:$4 sm:$0xff]  }
 0x17f   : > { %v949_v47 = vadd.f32 %v948_v46, %v4918_v21  ;;  %v1024_v50 = vmax.f32 %v945_v43, 0.0  ;;  %v4388_v46 = vld [vmem:[%s6278_s7 + $0x44] ss:$8 sps:$4 sm:$0xff]  }
 0x180   : > { %v1025_v49 = vmax.f32 %v947_v45, 0.0 }
 0x181   : > { %v1026_v51 = vmax.f32 %v949_v47, 0.0 }
 0x182   : > { %v1061_v52 = vpack.c.bf16 %v1025_v49, %v1023_v48 }
 0x183   : > { %v1062_v53 = vpack.c.bf16 %v1026_v51, %v1024_v50  ;;  %v952_v54 = vpop.f32.mrb[56].mxu0 }
 0x184   : > { %v953_v55 = vadd.f32 %v952_v54, %v4915_v20  ;;  %v954_v56 = vpop.f32.mrb[57].mxu0 }
 0x185   : > { %v955_v57 = vadd.f32 %v954_v56, %v4918_v21  ;;  %v956_v58 = vpop.f32.mrb[58].mxu0  ;;  %4052 = vmatprep.mubr.msk.bf16.mxu1 %vm1199_vm2, %v1062_v53  ;;  %v4386_v53 = vld [vmem:[%s6278_s7 + $0x40] ss:$8 sps:$4 sm:$0xff]   ;;  %v4391_v56 = vld [vmem:[%s6278_s7 + $0x54] ss:$8 sps:$4 sm:$0xff]  }
 0x186   : > { %v957_v59 = vadd.f32 %v956_v58, %v4915_v20  ;;  %v958_v60 = vpop.f32.mrb[59].mxu0  ;;  %1411 = vmatmul.mubr.bf16.gmra.mrb[52].mxu1 %v1061_v52  ;;  %v1027_v62 = vmax.f32 %v953_v55, 0.0 }
 0x187   : > { %v959_v61 = vadd.f32 %v958_v60, %v4918_v21  ;;  %v1028_v0 = vmax.f32 %v955_v57, 0.0 }
 0x188   : > { %v1029_v63 = vmax.f32 %v957_v59, 0.0 }
 0x189   : > { %v1030_v1 = vmax.f32 %v959_v61, 0.0 }
 0x18a   : > { %v1063_v2 = vpack.c.bf16 %v1029_v63, %v1027_v62  ;;  %v4389_v62 = vld [vmem:[%s6278_s7 + $0x50] ss:$8 sps:$4 sm:$0xff]  }
 0x18b   : > { %v1064_v3 = vpack.c.bf16 %v1030_v1, %v1028_v0  ;;  %v962_v4 = vpop.f32.mrb[60].mxu0  ;;  %v4394_v0 = vld [vmem:[%s6278_s7 + $0x64] ss:$8 sps:$4 sm:$0xff]  }
 0x18c   : > { %v963_v5 = vadd.f32 %v962_v4, %v4915_v20  ;;  %v964_v6 = vpop.f32.mrb[61].mxu0 }
 0x18d   : > { %v965_v7 = vadd.f32 %v964_v6, %v4918_v21  ;;  %v966_v8 = vpop.f32.mrb[62].mxu0  ;;  %4053 = vmatprep.mubr.msk.bf16.mxu1 %vm1199_vm2, %v1064_v3  ;;  %v1891_v3 = vld [vmem:[%s6278_s7 + $0x70] sm:$0xff] }
 0x18e   : > { %v967_v9 = vadd.f32 %v966_v8, %v4915_v20  ;;  %v968_v10 = vpop.f32.mrb[63].mxu0  ;;  %1421 = vmatmul.mubr.bf16.gmra.mrb[56].mxu1 %v1063_v2  ;;  %v1031_v12 = vmax.f32 %v963_v5, 0.0  ;;  %v4376_v20 = vld [vmem:[%s6278_s7 + $0x4] ss:$8 sps:$4 sm:$0xff]   ;;  %v4392_v8 = vld [vmem:[%s6278_s7 + $0x60] ss:$8 sps:$4 sm:$0xff]  }
 0x18f   : > { %v969_v11 = vadd.f32 %v968_v10, %v4918_v21  ;;  %v1032_v15 = vmax.f32 %v965_v7, 0.0  ;;  %2034 = vmatprep.subr.bf16.mxu0 %v4376_v20  ;;  %v4377_v21 = vld [vmem:[%s6278_s7 + $0x10] ss:$8 sps:$4 sm:$0xff]  }
 0x190   : > { %v1033_v13 = vmax.f32 %v967_v9, 0.0  ;;  %2035 = vmatpush1.bf16.msra.mxu0 %v4374_v24 }
 0x191   : > { %v1034_v18 = vmax.f32 %v969_v11, 0.0  ;;  %2036 = vmatprep.subr.bf16.mxu0 %v4379_v25  ;;  %v4096_v11 = vcombine.high %v1891_v3, %v1891_v3 }
 0x192   : > { %v1065_v22 = vpack.c.bf16 %v1033_v13, %v1031_v12  ;;  %v4095_v12 = vcombine.low %v1891_v3, %v1891_v3 }
 0x193   : > { %v1066_v23 = vpack.c.bf16 %v1034_v18, %v1032_v15 }
 0x194   : > { %2037 = vmatpush1.bf16.msra.mxu0 %v4377_v21  ;;  %v2029_v20 = vsel %vm771_vm1, %v4095_v12, 0 }
 0x195   : > { %4054 = vmatprep.mubr.msk.bf16.mxu1 %vm1199_vm2, %v1066_v23  ;;  %2038 = vmatprep.subr.bf16.mxu0 %v4382_v37 }
 0x196   : > { %1431 = vmatmul.mubr.bf16.gmra.mrb[60].mxu1 %v1065_v22 }
 0x198   : > { %2039 = vmatpush1.bf16.msra.mxu0 %v4380_v36 }
 0x199   : > { %2040 = vmatprep.subr.bf16.mxu0 %v4385_v39 }
 0x19c   : > { %2041 = vmatpush1.bf16.msra.mxu0 %v4383_v44 }
 0x19d   : > { %2042 = vmatprep.subr.bf16.mxu0 %v4388_v46 }
 0x1a0   : > { %2043 = vmatpush1.bf16.msra.mxu0 %v4386_v53 }
 0x1a1   : > { %2044 = vmatprep.subr.bf16.mxu0 %v4391_v56 }
 0x1a4   : > { %2045 = vmatpush1.bf16.msra.mxu0 %v4389_v62 }
 0x1a5   : > { %2046 = vmatprep.subr.bf16.mxu0 %v4394_v0 }
 0x1a8   : > { %2047 = vmatpush1.bf16.msra.mxu0 %v4392_v8 }
 0x1a9   : > { %4097 = vmatprep.subr.msk.bf16.mxu0 %vm771_vm1, %v4096_v11 }
 0x1ac   : > { %2049 = vmatpush1.bf16.msra.mxu0 %v2029_v20 }
 0x1f1   : > { %v1282_v29 = vpop.f32.mrb[0].mxu1 }
 0x1f2   : > { %v1283_v30 = vadd.f32 %v1282_v29, %v5052_v27  ;;  %v1284_v31 = vpop.f32.mrb[1].mxu1 }
 0x1f3   : > { %v1285_v32 = vadd.f32 %v1284_v31, %v5055_v28  ;;  %v1286_v33 = vpop.f32.mrb[2].mxu1 }
 0x1f4   : > { %v1287_v34 = vadd.f32 %v1286_v33, %v5052_v27  ;;  %v1288_v35 = vpop.f32.mrb[3].mxu1  ;;  %v1441_v40 = vmax.f32 %v1283_v30, 0.0 }
 0x1f5   : > { %v1289_v38 = vadd.f32 %v1288_v35, %v5055_v28  ;;  %v1442_v42 = vmax.f32 %v1285_v32, 0.0 }
 0x1f6   : > { %v1443_v41 = vmax.f32 %v1287_v34, 0.0 }
 0x1f7   : > { %v1444_v43 = vmax.f32 %v1289_v38, 0.0 }
 0x1f8   : > { %v1505_v45 = vpack.c.bf16 %v1443_v41, %v1441_v40 }
 0x1f9   : > { %v1506_v47 = vpack.c.bf16 %v1444_v43, %v1442_v42  ;;  %v1292_v48 = vpop.f32.mrb[4].mxu1 }
 0x1fa   : > { %v1293_v49 = vadd.f32 %v1292_v48, %v5052_v27  ;;  %v1294_v50 = vpop.f32.mrb[5].mxu1 }
 0x1fb   : > { %v1295_v51 = vadd.f32 %v1294_v50, %v5055_v28  ;;  %v1296_v52 = vpop.f32.mrb[6].mxu1  ;;  %4065 = vmatprep.mubr.msk.bf16.mxu1 %vm1615_vm4, %v1506_v47 }
 0x1fc   : > { %v1297_v54 = vadd.f32 %v1296_v52, %v5052_v27  ;;  %v1298_v55 = vpop.f32.mrb[7].mxu1  ;;  %1701 = vmatmul.mubr.bf16.vlgmr.msra.gmra.mrb[64].mxu1 %v1505_v45  ;;  %v1445_v58 = vmax.f32 %v1293_v49, 0.0 }
 0x1fd   : > { %v1299_v57 = vadd.f32 %v1298_v55, %v5055_v28  ;;  %v1446_v60 = vmax.f32 %v1295_v51, 0.0 }
 0x1fe   : > { %v1447_v59 = vmax.f32 %v1297_v54, 0.0 }
 0x1ff   : > { %v1448_v61 = vmax.f32 %v1299_v57, 0.0 }
 0x200   : > { %v1507_v63 = vpack.c.bf16 %v1447_v59, %v1445_v58 }
 0x201   : > { %v1508_v1 = vpack.c.bf16 %v1448_v61, %v1446_v60  ;;  %v1302_v2 = vpop.f32.mrb[8].mxu1 }
 0x202   : > { %v1303_v4 = vadd.f32 %v1302_v2, %v5052_v27  ;;  %v1304_v5 = vpop.f32.mrb[9].mxu1 }
 0x203   : > { %v1305_v6 = vadd.f32 %v1304_v5, %v5055_v28  ;;  %v1306_v7 = vpop.f32.mrb[10].mxu1  ;;  %4066 = vmatprep.mubr.msk.bf16.mxu1 %vm1615_vm4, %v1508_v1 }
 0x204   : > { %v1307_v9 = vadd.f32 %v1306_v7, %v5052_v27  ;;  %v1308_v10 = vpop.f32.mrb[11].mxu1  ;;  %1709 = vmatmul.mubr.bf16.gmra.mrb[68].mxu1 %v1507_v63  ;;  %v1449_v15 = vmax.f32 %v1303_v4, 0.0 }
 0x205   : > { %v1309_v13 = vadd.f32 %v1308_v10, %v5055_v28  ;;  %v1450_v22 = vmax.f32 %v1305_v6, 0.0 }
 0x206   : > { %v1451_v18 = vmax.f32 %v1307_v9, 0.0 }
 0x207   : > { %v1452_v23 = vmax.f32 %v1309_v13, 0.0 }
 0x208   : > { %v1509_v24 = vpack.c.bf16 %v1451_v18, %v1449_v15 }
 0x209   : > { %v1510_v21 = vpack.c.bf16 %v1452_v23, %v1450_v22  ;;  %v1312_v25 = vpop.f32.mrb[12].mxu1 }
 0x20a   : > { %v1313_v26 = vadd.f32 %v1312_v25, %v5052_v27  ;;  %v1314_v29 = vpop.f32.mrb[13].mxu1 }
 0x20b   : > { %v1315_v30 = vadd.f32 %v1314_v29, %v5055_v28  ;;  %v1316_v31 = vpop.f32.mrb[14].mxu1  ;;  %4067 = vmatprep.mubr.msk.bf16.mxu1 %vm1615_vm4, %v1510_v21 }
 0x20c   : > { %v1317_v32 = vadd.f32 %v1316_v31, %v5052_v27  ;;  %v1318_v33 = vpop.f32.mrb[15].mxu1  ;;  %1717 = vmatmul.mubr.bf16.gmra.mrb[72].mxu1 %v1509_v24  ;;  %v1453_v35 = vmax.f32 %v1313_v26, 0.0 }
 0x20d   : > { %v1319_v34 = vadd.f32 %v1318_v33, %v5055_v28  ;;  %v1454_v37 = vmax.f32 %v1315_v30, 0.0 }
 0x20e   : > { %v1455_v36 = vmax.f32 %v1317_v32, 0.0 }
 0x20f   : > { %v1456_v38 = vmax.f32 %v1319_v34, 0.0 }
 0x210   : > { %v1511_v39 = vpack.c.bf16 %v1455_v36, %v1453_v35 }
 0x211   : > { %v1512_v40 = vpack.c.bf16 %v1456_v38, %v1454_v37  ;;  %v1322_v41 = vpop.f32.mrb[16].mxu1 }
 0x212   : > { %v1323_v42 = vadd.f32 %v1322_v41, %v5052_v27  ;;  %v1324_v43 = vpop.f32.mrb[17].mxu1 }
 0x213   : > { %v1325_v44 = vadd.f32 %v1324_v43, %v5055_v28  ;;  %v1326_v45 = vpop.f32.mrb[18].mxu1  ;;  %4068 = vmatprep.mubr.msk.bf16.mxu1 %vm1615_vm4, %v1512_v40 }
 0x214   : > { %v1327_v46 = vadd.f32 %v1326_v45, %v5052_v27  ;;  %v1328_v47 = vpop.f32.mrb[19].mxu1  ;;  %1725 = vmatmul.mubr.bf16.gmra.mrb[76].mxu1 %v1511_v39  ;;  %v1457_v49 = vmax.f32 %v1323_v42, 0.0 }
 0x215   : > { %v1329_v48 = vadd.f32 %v1328_v47, %v5055_v28  ;;  %v1458_v51 = vmax.f32 %v1325_v44, 0.0 }
 0x216   : > { %v1459_v50 = vmax.f32 %v1327_v46, 0.0 }
 0x217   : > { %v1460_v52 = vmax.f32 %v1329_v48, 0.0 }
 0x218   : > { %v1513_v53 = vpack.c.bf16 %v1459_v50, %v1457_v49 }
 0x219   : > { %v1514_v54 = vpack.c.bf16 %v1460_v52, %v1458_v51  ;;  %v1332_v55 = vpop.f32.mrb[20].mxu1 }
 0x21a   : > { %v1333_v56 = vadd.f32 %v1332_v55, %v5052_v27  ;;  %v1334_v57 = vpop.f32.mrb[21].mxu1 }
 0x21b   : > { %v1335_v58 = vadd.f32 %v1334_v57, %v5055_v28  ;;  %v1336_v59 = vpop.f32.mrb[22].mxu1  ;;  %4069 = vmatprep.mubr.msk.bf16.mxu1 %vm1615_vm4, %v1514_v54 }
 0x21c   : > { %v1337_v60 = vadd.f32 %v1336_v59, %v5052_v27  ;;  %v1338_v61 = vpop.f32.mrb[23].mxu1  ;;  %1733 = vmatmul.mubr.bf16.gmra.mrb[80].mxu1 %v1513_v53  ;;  %v1461_v63 = vmax.f32 %v1333_v56, 0.0 }
 0x21d   : > { %v1339_v62 = vadd.f32 %v1338_v61, %v5055_v28  ;;  %v1462_v1 = vmax.f32 %v1335_v58, 0.0 }
 0x21e   : > { %v1463_v0 = vmax.f32 %v1337_v60, 0.0 }
 0x21f   : > { %v1464_v2 = vmax.f32 %v1339_v62, 0.0 }
 0x220   : > { %v1515_v3 = vpack.c.bf16 %v1463_v0, %v1461_v63 }
 0x221   : > { %v1516_v4 = vpack.c.bf16 %v1464_v2, %v1462_v1  ;;  %v1342_v5 = vpop.f32.mrb[24].mxu1 }
 0x222   : > { %v1343_v6 = vadd.f32 %v1342_v5, %v5052_v27  ;;  %v1344_v7 = vpop.f32.mrb[25].mxu1 }
 0x223   : > { %v1345_v8 = vadd.f32 %v1344_v7, %v5055_v28  ;;  %v1346_v9 = vpop.f32.mrb[26].mxu1  ;;  %4070 = vmatprep.mubr.msk.bf16.mxu1 %vm1615_vm4, %v1516_v4 }
 0x224   : > { %v1347_v10 = vadd.f32 %v1346_v9, %v5052_v27  ;;  %v1348_v11 = vpop.f32.mrb[27].mxu1  ;;  %1741 = vmatmul.mubr.bf16.gmra.mrb[84].mxu1 %v1515_v3  ;;  %v1465_v13 = vmax.f32 %v1343_v6, 0.0 }
 0x225   : > { %v1349_v12 = vadd.f32 %v1348_v11, %v5055_v28  ;;  %v1466_v18 = vmax.f32 %v1345_v8, 0.0 }
 0x226   : > { %v1467_v15 = vmax.f32 %v1347_v10, 0.0 }
 0x227   : > { %v1468_v22 = vmax.f32 %v1349_v12, 0.0 }
 0x228   : > { %v1517_v23 = vpack.c.bf16 %v1467_v15, %v1465_v13 }
 0x229   : > { %v1518_v24 = vpack.c.bf16 %v1468_v22, %v1466_v18  ;;  %v1352_v20 = vpop.f32.mrb[28].mxu1 }
 0x22a   : > { %v1353_v21 = vadd.f32 %v1352_v20, %v5052_v27  ;;  %v1354_v25 = vpop.f32.mrb[29].mxu1 }
 0x22b   : > { %v1355_v26 = vadd.f32 %v1354_v25, %v5055_v28  ;;  %v1356_v29 = vpop.f32.mrb[30].mxu1  ;;  %4071 = vmatprep.mubr.msk.bf16.mxu1 %vm1615_vm4, %v1518_v24 }
 0x22c   : > { %v1357_v30 = vadd.f32 %v1356_v29, %v5052_v27  ;;  %v1358_v31 = vpop.f32.mrb[31].mxu1  ;;  %1749 = vmatmul.mubr.bf16.gmra.mrb[88].mxu1 %v1517_v23  ;;  %v1469_v33 = vmax.f32 %v1353_v21, 0.0 }
 0x22d   : > { %v1359_v32 = vadd.f32 %v1358_v31, %v5055_v28  ;;  %v1470_v35 = vmax.f32 %v1355_v26, 0.0 }
 0x22e   : > { %v1471_v34 = vmax.f32 %v1357_v30, 0.0 }
 0x22f   : > { %v1472_v36 = vmax.f32 %v1359_v32, 0.0 }
 0x230   : > { %v1519_v37 = vpack.c.bf16 %v1471_v34, %v1469_v33 }
 0x231   : > { %v1520_v38 = vpack.c.bf16 %v1472_v36, %v1470_v35  ;;  %v1362_v39 = vpop.f32.mrb[32].mxu1 }
 0x232   : > { %v1363_v40 = vadd.f32 %v1362_v39, %v5052_v27  ;;  %v1364_v41 = vpop.f32.mrb[33].mxu1 }
 0x233   : > { %v1365_v42 = vadd.f32 %v1364_v41, %v5055_v28  ;;  %v1366_v43 = vpop.f32.mrb[34].mxu1  ;;  %4072 = vmatprep.mubr.msk.bf16.mxu1 %vm1615_vm4, %v1520_v38 }
 0x234   : > { %v1367_v44 = vadd.f32 %v1366_v43, %v5052_v27  ;;  %v1368_v45 = vpop.f32.mrb[35].mxu1  ;;  %1757 = vmatmul.mubr.bf16.gmra.mrb[92].mxu1 %v1519_v37  ;;  %v1473_v47 = vmax.f32 %v1363_v40, 0.0 }
 0x235   : > { %v1369_v46 = vadd.f32 %v1368_v45, %v5055_v28  ;;  %v1474_v49 = vmax.f32 %v1365_v42, 0.0 }
 0x236   : > { %v1475_v48 = vmax.f32 %v1367_v44, 0.0 }
 0x237   : > { %v1476_v50 = vmax.f32 %v1369_v46, 0.0 }
 0x238   : > { %v1521_v51 = vpack.c.bf16 %v1475_v48, %v1473_v47 }
 0x239   : > { %v1522_v52 = vpack.c.bf16 %v1476_v50, %v1474_v49  ;;  %v1372_v53 = vpop.f32.mrb[36].mxu1 }
 0x23a   : > { %v1373_v54 = vadd.f32 %v1372_v53, %v5052_v27  ;;  %v1374_v55 = vpop.f32.mrb[37].mxu1 }
 0x23b   : > { %v1375_v56 = vadd.f32 %v1374_v55, %v5055_v28  ;;  %v1376_v57 = vpop.f32.mrb[38].mxu1  ;;  %4073 = vmatprep.mubr.msk.bf16.mxu1 %vm1615_vm4, %v1522_v52 }
 0x23c   : > { %v1377_v58 = vadd.f32 %v1376_v57, %v5052_v27  ;;  %v1378_v59 = vpop.f32.mrb[39].mxu1  ;;  %1765 = vmatmul.mubr.bf16.gmra.mrb[96].mxu1 %v1521_v51  ;;  %v1477_v61 = vmax.f32 %v1373_v54, 0.0 }
 0x23d   : > { %v1379_v60 = vadd.f32 %v1378_v59, %v5055_v28  ;;  %v1478_v63 = vmax.f32 %v1375_v56, 0.0 }
 0x23e   : > { %v1479_v62 = vmax.f32 %v1377_v58, 0.0 }
 0x23f   : > { %v1480_v0 = vmax.f32 %v1379_v60, 0.0 }
 0x240   : > { %v1523_v1 = vpack.c.bf16 %v1479_v62, %v1477_v61 }
 0x241   : > { %v1524_v2 = vpack.c.bf16 %v1480_v0, %v1478_v63  ;;  %v1382_v3 = vpop.f32.mrb[40].mxu1 }
 0x242   : > { %v1383_v4 = vadd.f32 %v1382_v3, %v5052_v27  ;;  %v1384_v5 = vpop.f32.mrb[41].mxu1 }
 0x243   : > { %v1385_v6 = vadd.f32 %v1384_v5, %v5055_v28  ;;  %v1386_v7 = vpop.f32.mrb[42].mxu1  ;;  %4074 = vmatprep.mubr.msk.bf16.mxu1 %vm1615_vm4, %v1524_v2 }
 0x244   : > { %v1387_v8 = vadd.f32 %v1386_v7, %v5052_v27  ;;  %v1388_v9 = vpop.f32.mrb[43].mxu1  ;;  %1773 = vmatmul.mubr.bf16.gmra.mrb[100].mxu1 %v1523_v1  ;;  %v1481_v11 = vmax.f32 %v1383_v4, 0.0 }
 0x245   : > { %v1389_v10 = vadd.f32 %v1388_v9, %v5055_v28  ;;  %v1482_v13 = vmax.f32 %v1385_v6, 0.0 }
 0x246   : > { %v1483_v12 = vmax.f32 %v1387_v8, 0.0 }
 0x247   : > { %v1484_v15 = vmax.f32 %v1389_v10, 0.0 }
 0x248   : > { %v1525_v18 = vpack.c.bf16 %v1483_v12, %v1481_v11 }
 0x249   : > { %v1526_v22 = vpack.c.bf16 %v1484_v15, %v1482_v13  ;;  %v1392_v23 = vpop.f32.mrb[44].mxu1 }
 0x24a   : > { %v1393_v24 = vadd.f32 %v1392_v23, %v5052_v27  ;;  %v1394_v20 = vpop.f32.mrb[45].mxu1 }
 0x24b   : > { %v1395_v21 = vadd.f32 %v1394_v20, %v5055_v28  ;;  %v1396_v25 = vpop.f32.mrb[46].mxu1  ;;  %4075 = vmatprep.mubr.msk.bf16.mxu1 %vm1615_vm4, %v1526_v22 }
 0x24c   : > { %v1397_v26 = vadd.f32 %v1396_v25, %v5052_v27  ;;  %v1398_v29 = vpop.f32.mrb[47].mxu1  ;;  %1781 = vmatmul.mubr.bf16.gmra.mrb[104].mxu1 %v1525_v18  ;;  %v1485_v31 = vmax.f32 %v1393_v24, 0.0 }
 0x24d   : > { %v1399_v30 = vadd.f32 %v1398_v29, %v5055_v28  ;;  %v1486_v33 = vmax.f32 %v1395_v21, 0.0 }
 0x24e   : > { %v1487_v32 = vmax.f32 %v1397_v26, 0.0 }
 0x24f   : > { %v1488_v34 = vmax.f32 %v1399_v30, 0.0 }
 0x250   : > { %v1527_v35 = vpack.c.bf16 %v1487_v32, %v1485_v31 }
 0x251   : > { %v1528_v36 = vpack.c.bf16 %v1488_v34, %v1486_v33  ;;  %v1402_v37 = vpop.f32.mrb[48].mxu1 }
 0x252   : > { %v1403_v38 = vadd.f32 %v1402_v37, %v5052_v27  ;;  %v1404_v39 = vpop.f32.mrb[49].mxu1  ;;  %v5187_v37 = vld [vmem:[%s6277_s6] ss:$0 sm:$0xff] }
 0x253   : > { %v1405_v40 = vadd.f32 %v1404_v39, %v5055_v28  ;;  %v1406_v41 = vpop.f32.mrb[50].mxu1  ;;  %4076 = vmatprep.mubr.msk.bf16.mxu1 %vm1615_vm4, %v1528_v36  ;;  %v4402_v36 = vld [vmem:[%s6280_s9 + $0x14] ss:$8 sps:$4 sm:$0xff]  }
 0x254   : > { %v1407_v42 = vadd.f32 %v1406_v41, %v5052_v27  ;;  %v1408_v43 = vpop.f32.mrb[51].mxu1  ;;  %1789 = vmatmul.mubr.bf16.gmra.mrb[108].mxu1 %v1527_v35  ;;  %v1489_v45 = vmax.f32 %v1403_v38, 0.0  ;;  %v4397_v35 = vld [vmem:[%s6280_s9] ss:$8 sps:$4 sm:$0xff]  }
 0x255   : > { %v1409_v44 = vadd.f32 %v1408_v43, %v5055_v28  ;;  %v1490_v47 = vmax.f32 %v1405_v40, 0.0  ;;  %v4403_v41 = vld [vmem:[%s6280_s9 + $0x20] ss:$8 sps:$4 sm:$0xff]  }
 0x256   : > { %v1491_v46 = vmax.f32 %v1407_v42, 0.0  ;;  %v4405_v42 = vld [vmem:[%s6280_s9 + $0x24] ss:$8 sps:$4 sm:$0xff]  }
 0x257   : > { %v1492_v48 = vmax.f32 %v1409_v44, 0.0  ;;  %v4408_v44 = vld [vmem:[%s6280_s9 + $0x34] ss:$8 sps:$4 sm:$0xff]  }
 0x258   : > { %v1529_v49 = vpack.c.bf16 %v1491_v46, %v1489_v45 }
 0x259   : > { %v1530_v50 = vpack.c.bf16 %v1492_v48, %v1490_v47  ;;  %v1412_v51 = vpop.f32.mrb[52].mxu1  ;;  %v4406_v47 = vld [vmem:[%s6280_s9 + $0x30] ss:$8 sps:$4 sm:$0xff]  }
 0x25a   : > { %v1413_v52 = vadd.f32 %v1412_v51, %v5052_v27  ;;  %v1414_v53 = vpop.f32.mrb[53].mxu1 }
 0x25b   : > { %v1415_v54 = vadd.f32 %v1414_v53, %v5055_v28  ;;  %v1416_v55 = vpop.f32.mrb[54].mxu1  ;;  %4077 = vmatprep.mubr.msk.bf16.mxu1 %vm1615_vm4, %v1530_v50  ;;  %v4411_v50 = vld [vmem:[%s6280_s9 + $0x44] ss:$8 sps:$4 sm:$0xff]   ;;  %v4409_v53 = vld [vmem:[%s6280_s9 + $0x40] ss:$8 sps:$4 sm:$0xff]  }
 0x25c   : > { %v1417_v56 = vadd.f32 %v1416_v55, %v5052_v27  ;;  %v1418_v57 = vpop.f32.mrb[55].mxu1  ;;  %1797 = vmatmul.mubr.bf16.gmra.mrb[112].mxu1 %v1529_v49  ;;  %v1493_v59 = vmax.f32 %v1413_v52, 0.0 }
 0x25d   : > { %v1419_v58 = vadd.f32 %v1418_v57, %v5055_v28  ;;  %v1494_v61 = vmax.f32 %v1415_v54, 0.0 }
 0x25e   : > { %v1495_v60 = vmax.f32 %v1417_v56, 0.0  ;;  %v4414_v56 = vld [vmem:[%s6280_s9 + $0x54] ss:$8 sps:$4 sm:$0xff]  }
 0x25f   : > { %v1496_v62 = vmax.f32 %v1419_v58, 0.0 }
 0x260   : > { %v1531_v63 = vpack.c.bf16 %v1495_v60, %v1493_v59  ;;  %v4412_v60 = vld [vmem:[%s6280_s9 + $0x50] ss:$8 sps:$4 sm:$0xff]  }
 0x261   : > { %v1532_v0 = vpack.c.bf16 %v1496_v62, %v1494_v61  ;;  %v1422_v1 = vpop.f32.mrb[56].mxu1 }
 0x262   : > { %v1423_v2 = vadd.f32 %v1422_v1, %v5052_v27  ;;  %v1424_v3 = vpop.f32.mrb[57].mxu1 }
 0x263   : > { %v1425_v4 = vadd.f32 %v1424_v3, %v5055_v28  ;;  %v1426_v5 = vpop.f32.mrb[58].mxu1  ;;  %4078 = vmatprep.mubr.msk.bf16.mxu1 %vm1615_vm4, %v1532_v0 }
 0x264   : > { %v1427_v6 = vadd.f32 %v1426_v5, %v5052_v27  ;;  %v1428_v7 = vpop.f32.mrb[59].mxu1  ;;  %1805 = vmatmul.mubr.bf16.gmra.mrb[116].mxu1 %v1531_v63  ;;  %v1497_v9 = vmax.f32 %v1423_v2, 0.0  ;;  %v4417_v63 = vld [vmem:[%s6280_s9 + $0x64] ss:$8 sps:$4 sm:$0xff]   ;;  %v4415_v2 = vld [vmem:[%s6280_s9 + $0x60] ss:$8 sps:$4 sm:$0xff]  }
 0x265   : > { %v1429_v8 = vadd.f32 %v1428_v7, %v5055_v28  ;;  %v1498_v11 = vmax.f32 %v1425_v4, 0.0  ;;  %v4420_v5 = vld [vmem:[%s6280_s9 + $0x74] ss:$8 sps:$4 sm:$0xff]  }
 0x266   : > { %v1499_v10 = vmax.f32 %v1427_v6, 0.0 }
 0x267   : > { %v1500_v12 = vmax.f32 %v1429_v8, 0.0 }
 0x268   : > { %v1533_v13 = vpack.c.bf16 %v1499_v10, %v1497_v9  ;;  %v4418_v9 = vld [vmem:[%s6280_s9 + $0x70] ss:$8 sps:$4 sm:$0xff]   ;;  %v4421_v10 = vld [vmem:[%s6280_s9 + $0x84] ss:$8 sps:$4 sm:$0x3f]  }
 0x269   : > { %v1534_v15 = vpack.c.bf16 %v1500_v12, %v1498_v11  ;;  %v1432_v18 = vpop.f32.mrb[60].mxu1 }
 0x26a   : > { %v1433_v22 = vadd.f32 %v1432_v18, %v5052_v27  ;;  %v1434_v23 = vpop.f32.mrb[61].mxu1 }
 0x26b   : > { %v1435_v24 = vadd.f32 %v1434_v23, %v5055_v28  ;;  %v1436_v20 = vpop.f32.mrb[62].mxu1  ;;  %4079 = vmatprep.mubr.msk.bf16.mxu1 %vm1615_vm4, %v1534_v15 }
 0x26c   : > { %v1437_v21 = vadd.f32 %v1436_v20, %v5052_v27  ;;  %v1438_v25 = vpop.f32.mrb[63].mxu1  ;;  %1813 = vmatmul.mubr.bf16.gmra.mrb[120].mxu1 %v1533_v13  ;;  %v1501_v29 = vmax.f32 %v1433_v22, 0.0  ;;  %v4399_v27 = vld [vmem:[%s6280_s9 + $0x4] ss:$8 sps:$4 sm:$0xff]  }
 0x26d   : > { %v1439_v26 = vadd.f32 %v1438_v25, %v5055_v28  ;;  %v1502_v31 = vmax.f32 %v1435_v24, 0.0  ;;  %2495 = vmatprep.subr.bf16.mxu1 %v4399_v27  ;;  %v4400_v28 = vld [vmem:[%s6280_s9 + $0x10] ss:$8 sps:$4 sm:$0xff]   ;;  %v4423_v13 = vld [vmem:[%s6280_s9 + $0x80] ss:$8 sps:$4 sm:$0x3f]  }
 0x26e   : > { %v1503_v30 = vmax.f32 %v1437_v21, 0.0  ;;  %2496 = vmatpush1.bf16.msra.mxu1 %v4397_v35  ;;  %v2490_v24 = vsel %vm1664_vm3, %v4423_v13, 0 }
 0x26f   : > { %v1504_v32 = vmax.f32 %v1439_v26, 0.0  ;;  %2497 = vmatprep.subr.bf16.mxu1 %v4402_v36 }
 0x270   : > { %v1535_v33 = vpack.c.bf16 %v1503_v30, %v1501_v29 }
 0x271   : > { %v1536_v34 = vpack.c.bf16 %v1504_v32, %v1502_v31 }
 0x272   : > { %2498 = vmatpush1.bf16.msra.mxu1 %v4400_v28 }
 0x273   : > { %4080 = vmatprep.mubr.msk.bf16.mxu1 %vm1615_vm4, %v1536_v34  ;;  %2499 = vmatprep.subr.bf16.mxu1 %v4405_v42 }
 0x274   : > { %1821 = vmatmul.mubr.bf16.gmra.mrb[124].mxu1 %v1535_v33 }
 0x276   : > { %2500 = vmatpush1.bf16.msra.mxu1 %v4403_v41 }
 0x277   : > { %2501 = vmatprep.subr.bf16.mxu1 %v4408_v44 }
 0x27a   : > { %2502 = vmatpush1.bf16.msra.mxu1 %v4406_v47 }
 0x27b   : > { %2503 = vmatprep.subr.bf16.mxu1 %v4411_v50 }
 0x27e   : > { %2504 = vmatpush1.bf16.msra.mxu1 %v4409_v53 }
 0x27f   : > { %2505 = vmatprep.subr.bf16.mxu1 %v4414_v56 }
 0x282   : > { %2506 = vmatpush1.bf16.msra.mxu1 %v4412_v60 }
 0x283   : > { %2507 = vmatprep.subr.bf16.mxu1 %v4417_v63 }
 0x286   : > { %2508 = vmatpush1.bf16.msra.mxu1 %v4415_v2 }
 0x287   : > { %2509 = vmatprep.subr.bf16.mxu1 %v4420_v5 }
 0x28a   : > { %2510 = vmatpush1.bf16.msra.mxu1 %v4418_v9 }
 0x28b   : > { %4132 = vmatprep.subr.msk.bf16.mxu1 %vm1664_vm3, %v4421_v10 }
 0x28e   : > { %2512 = vmatpush1.bf16.msra.mxu1 %v2490_v24 }
 0x2cf   : > { %v1702_v38 = vpop.f32.mrb[64].mxu1 }
 0x2d0   : > { %v1703_v39 = vadd.f32 %v5187_v37, %v1702_v38  ;;  %v1704_v40 = vpop.f32.mrb[65].mxu1 }
 0x2d1   : > { %v1705_v43 = vpop.f32.mrb[66].mxu1 }
 0x2d2   : > { %v1706_v45 = vadd.f32 %v5187_v37, %v1705_v43  ;;  %v1707_v46 = vpop.f32.mrb[67].mxu1  ;;  %v1829_v48 = vmax.f32 %v1703_v39, 0.0 }
 0x2d4   : > { %v1830_v49 = vmax.f32 %v1706_v45, 0.0 }
 0x2d6   : > { %v1861_v51 = vpack.c.bf16 %v1830_v49, %v1829_v48 }
 0x2d7   : > { %v1710_v52 = vpop.f32.mrb[68].mxu1 }
 0x2d8   : > { %v1711_v54 = vadd.f32 %v5187_v37, %v1710_v52  ;;  %v1712_v55 = vpop.f32.mrb[69].mxu1  ;;  %4098 = vmatmul.mubr.msk.bf16.vlgmr.msra.gmra.mrb[64].mxu0 %vm1979_vm5, %v1861_v51 }
 0x2d9   : > { %v1713_v57 = vpop.f32.mrb[70].mxu1  ;;  %2076 = vmatprep.mubr.bf16.mxu0 %v4558_v14 }
 0x2da   : > { %v1714_v58 = vadd.f32 %v5187_v37, %v1713_v57  ;;  %v1715_v59 = vpop.f32.mrb[71].mxu1  ;;  %v1831_v61 = vmax.f32 %v1711_v54, 0.0 }
 0x2dc   : > { %v1832_v62 = vmax.f32 %v1714_v58, 0.0 }
 0x2de   : > { %v1862_v0 = vpack.c.bf16 %v1832_v62, %v1831_v61 }
 0x2df   : > { %v1718_v1 = vpop.f32.mrb[72].mxu1 }
 0x2e0   : > { %v1719_v3 = vadd.f32 %v5187_v37, %v1718_v1  ;;  %v1720_v4 = vpop.f32.mrb[73].mxu1  ;;  %4099 = vmatmul.mubr.msk.bf16.gmra.mrb[68].mxu0 %vm1979_vm5, %v1862_v0 }
 0x2e1   : > { %v1721_v6 = vpop.f32.mrb[74].mxu1  ;;  %2086 = vmatprep.mubr.bf16.mxu0 %v4558_v14 }
 0x2e2   : > { %v1722_v7 = vadd.f32 %v5187_v37, %v1721_v6  ;;  %v1723_v8 = vpop.f32.mrb[75].mxu1  ;;  %v1833_v11 = vmax.f32 %v1719_v3, 0.0 }
 0x2e4   : > { %v1834_v12 = vmax.f32 %v1722_v7, 0.0 }
 0x2e6   : > { %v1863_v15 = vpack.c.bf16 %v1834_v12, %v1833_v11 }
 0x2e7   : > { %v1726_v18 = vpop.f32.mrb[76].mxu1 }
 0x2e8   : > { %v1727_v22 = vadd.f32 %v5187_v37, %v1726_v18  ;;  %v1728_v23 = vpop.f32.mrb[77].mxu1  ;;  %4100 = vmatmul.mubr.msk.bf16.gmra.mrb[72].mxu0 %vm1979_vm5, %v1863_v15 }
 0x2e9   : > { %v1729_v20 = vpop.f32.mrb[78].mxu1  ;;  %2096 = vmatprep.mubr.bf16.mxu0 %v4558_v14 }
 0x2ea   : > { %v1730_v21 = vadd.f32 %v5187_v37, %v1729_v20  ;;  %v1731_v25 = vpop.f32.mrb[79].mxu1  ;;  %v1835_v26 = vmax.f32 %v1727_v22, 0.0 }
 0x2ec   : > { %v1836_v29 = vmax.f32 %v1730_v21, 0.0 }
 0x2ee   : > { %v1864_v30 = vpack.c.bf16 %v1836_v29, %v1835_v26 }
 0x2ef   : > { %v1734_v31 = vpop.f32.mrb[80].mxu1 }
 0x2f0   : > { %v1735_v32 = vadd.f32 %v5187_v37, %v1734_v31  ;;  %v1736_v33 = vpop.f32.mrb[81].mxu1  ;;  %4101 = vmatmul.mubr.msk.bf16.gmra.mrb[76].mxu0 %vm1979_vm5, %v1864_v30 }
 0x2f1   : > { %v1737_v34 = vpop.f32.mrb[82].mxu1  ;;  %2106 = vmatprep.mubr.bf16.mxu0 %v4558_v14 }
 0x2f2   : > { %v1738_v35 = vadd.f32 %v5187_v37, %v1737_v34  ;;  %v1739_v27 = vpop.f32.mrb[83].mxu1  ;;  %v1837_v28 = vmax.f32 %v1735_v32, 0.0 }
 0x2f4   : > { %v1838_v36 = vmax.f32 %v1738_v35, 0.0 }
 0x2f6   : > { %v1865_v38 = vpack.c.bf16 %v1838_v36, %v1837_v28 }
 0x2f7   : > { %v1742_v39 = vpop.f32.mrb[84].mxu1 }
 0x2f8   : > { %v1743_v40 = vadd.f32 %v5187_v37, %v1742_v39  ;;  %v1744_v41 = vpop.f32.mrb[85].mxu1  ;;  %4102 = vmatmul.mubr.msk.bf16.gmra.mrb[80].mxu0 %vm1979_vm5, %v1865_v38 }
 0x2f9   : > { %v1745_v42 = vpop.f32.mrb[86].mxu1  ;;  %2116 = vmatprep.mubr.bf16.mxu0 %v4558_v14 }
 0x2fa   : > { %v1746_v43 = vadd.f32 %v5187_v37, %v1745_v42  ;;  %v1747_v44 = vpop.f32.mrb[87].mxu1  ;;  %v1839_v45 = vmax.f32 %v1743_v40, 0.0 }
 0x2fc   : > { %v1840_v46 = vmax.f32 %v1746_v43, 0.0 }
 0x2fe   : > { %v1866_v47 = vpack.c.bf16 %v1840_v46, %v1839_v45 }
 0x2ff   : > { %v1750_v48 = vpop.f32.mrb[88].mxu1 }
 0x300   : > { %v1751_v49 = vadd.f32 %v5187_v37, %v1750_v48  ;;  %v1752_v50 = vpop.f32.mrb[89].mxu1  ;;  %4103 = vmatmul.mubr.msk.bf16.gmra.mrb[84].mxu0 %vm1979_vm5, %v1866_v47 }
 0x301   : > { %v1753_v51 = vpop.f32.mrb[90].mxu1  ;;  %2126 = vmatprep.mubr.bf16.mxu0 %v4558_v14 }
 0x302   : > { %v1754_v52 = vadd.f32 %v5187_v37, %v1753_v51  ;;  %v1755_v53 = vpop.f32.mrb[91].mxu1  ;;  %v1841_v54 = vmax.f32 %v1751_v49, 0.0 }
 0x304   : > { %v1842_v55 = vmax.f32 %v1754_v52, 0.0 }
 0x306   : > { %v1867_v56 = vpack.c.bf16 %v1842_v55, %v1841_v54 }
 0x307   : > { %v1758_v57 = vpop.f32.mrb[92].mxu1 }
 0x308   : > { %v1759_v58 = vadd.f32 %v5187_v37, %v1758_v57  ;;  %v1760_v59 = vpop.f32.mrb[93].mxu1  ;;  %4104 = vmatmul.mubr.msk.bf16.gmra.mrb[88].mxu0 %vm1979_vm5, %v1867_v56 }
 0x309   : > { %v1761_v60 = vpop.f32.mrb[94].mxu1  ;;  %2136 = vmatprep.mubr.bf16.mxu0 %v4558_v14 }
 0x30a   : > { %v1762_v61 = vadd.f32 %v5187_v37, %v1761_v60  ;;  %v1763_v62 = vpop.f32.mrb[95].mxu1  ;;  %v1843_v63 = vmax.f32 %v1759_v58, 0.0 }
 0x30c   : > { %v1844_v0 = vmax.f32 %v1762_v61, 0.0 }
 0x30e   : > { %v1868_v1 = vpack.c.bf16 %v1844_v0, %v1843_v63 }
 0x30f   : > { %v1766_v2 = vpop.f32.mrb[96].mxu1 }
 0x310   : > { %v1767_v3 = vadd.f32 %v5187_v37, %v1766_v2  ;;  %v1768_v4 = vpop.f32.mrb[97].mxu1  ;;  %4105 = vmatmul.mubr.msk.bf16.gmra.mrb[92].mxu0 %vm1979_vm5, %v1868_v1 }
 0x311   : > { %v1769_v5 = vpop.f32.mrb[98].mxu1  ;;  %2146 = vmatprep.mubr.bf16.mxu0 %v4558_v14 }
 0x312   : > { %v1770_v6 = vadd.f32 %v5187_v37, %v1769_v5  ;;  %v1771_v7 = vpop.f32.mrb[99].mxu1  ;;  %v1845_v8 = vmax.f32 %v1767_v3, 0.0 }
 0x314   : > { %v1846_v9 = vmax.f32 %v1770_v6, 0.0 }
 0x316   : > { %v1869_v10 = vpack.c.bf16 %v1846_v9, %v1845_v8 }
 0x317   : > { %v1774_v11 = vpop.f32.mrb[100].mxu1 }
 0x318   : > { %v1775_v12 = vadd.f32 %v5187_v37, %v1774_v11  ;;  %v1776_v13 = vpop.f32.mrb[101].mxu1  ;;  %4106 = vmatmul.mubr.msk.bf16.gmra.mrb[96].mxu0 %vm1979_vm5, %v1869_v10 }
 0x319   : > { %v1777_v15 = vpop.f32.mrb[102].mxu1  ;;  %2156 = vmatprep.mubr.bf16.mxu0 %v4558_v14 }
 0x31a   : > { %v1778_v18 = vadd.f32 %v5187_v37, %v1777_v15  ;;  %v1779_v22 = vpop.f32.mrb[103].mxu1  ;;  %v1847_v23 = vmax.f32 %v1775_v12, 0.0 }
 0x31b   : > { %v4426_v22 = vld [vmem:[%s6282_s11 + $0x4] ss:$20 sps:$4 sm:$0xff]  }
 0x31c   : > { %v1848_v24 = vmax.f32 %v1778_v18, 0.0  ;;  %v4424_v18 = vld [vmem:[%s6282_s11] ss:$20 sps:$4 sm:$0xff]   ;;  %3179 = vmatprep.subr.bf16.mxu0 %v4426_v22 }
 0x31d   : > { %3180 = vmatpush1.bf16.msra.mxu0 %v4424_v18  ;;  %v4457_v22 = vld [vmem:[%s6282_s11 + $0x80] ss:$20 sps:$4 sm:$0xff]  }
 0x31e   : > { %v1870_v20 = vpack.c.bf16 %v1848_v24, %v1847_v23  ;;  %v4429_v23 = vld [vmem:[%s6282_s11 + $0x2c] ss:$20 sps:$4 sm:$0xff]  }
 0x31f   : > { %v1782_v21 = vpop.f32.mrb[104].mxu1  ;;  %v1892_v24 = vld [vmem:[%s6279_s8] sm:$0x3]  ;;  %3181 = vmatprep.subr.bf16.mxu0 %v4429_v23 }
 0x320   : > { %v1783_v25 = vadd.f32 %v5187_v37, %v1782_v21  ;;  %v1784_v26 = vpop.f32.mrb[105].mxu1  ;;  %4107 = vmatmul.mubr.msk.bf16.gmra.mrb[100].mxu0 %vm1979_vm5, %v1870_v20  ;;  %v5312_v20 = vrot.slane %v1892_v24, %v4906_v17  ;;  %v5315_v21 = vrot.slane %v1892_v24, %v4912_v19  ;;  %v4448_v24 = vld [vmem:[%s6282_s11 + $0x118] ss:$20 sps:$4 sm:$0xff]  }
 0x321   : > { %v1785_v29 = vpop.f32.mrb[106].mxu1  ;;  %2166 = vmatprep.mubr.bf16.mxu0 %v4558_v14 }
 0x322   : > { %v1786_v30 = vadd.f32 %v5187_v37, %v1785_v29  ;;  %v1787_v31 = vpop.f32.mrb[107].mxu1  ;;  %v1849_v32 = vmax.f32 %v1783_v25, 0.0 }
 0x324   : > { %v1850_v33 = vmax.f32 %v1786_v30, 0.0 }
 0x326   : > { %v1871_v34 = vpack.c.bf16 %v1850_v33, %v1849_v32  ;;  %v4430_v32 = vld [vmem:[%s6282_s11 + $0x50] ss:$20 sps:$4 sm:$0xff]   ;;  %v4432_v33 = vld [vmem:[%s6282_s11 + $0x54] ss:$20 sps:$4 sm:$0xff]  }
 0x327   : > { %v1790_v35 = vpop.f32.mrb[108].mxu1 }
 0x328   : > { %v1791_v27 = vadd.f32 %v5187_v37, %v1790_v35  ;;  %v1792_v28 = vpop.f32.mrb[109].mxu1  ;;  %4108 = vmatmul.mubr.msk.bf16.gmra.mrb[104].mxu0 %vm1979_vm5, %v1871_v34 }
 0x329   : > { %v1793_v36 = vpop.f32.mrb[110].mxu1  ;;  %2176 = vmatprep.mubr.bf16.mxu0 %v4558_v14 }
 0x32a   : > { %v1794_v38 = vadd.f32 %v5187_v37, %v1793_v36  ;;  %v1795_v39 = vpop.f32.mrb[111].mxu1  ;;  %v1851_v40 = vmax.f32 %v1791_v27, 0.0  ;;  %v4435_v27 = vld [vmem:[%s6282_s11 + $0x7c] ss:$20 sps:$4 sm:$0xff]  }
 0x32b   : > { %v4433_v39 = vld [vmem:[%s6282_s11 + $0x78] ss:$20 sps:$4 sm:$0xff]  }
 0x32c   : > { %v1852_v41 = vmax.f32 %v1794_v38, 0.0 }
 0x32e   : > { %v1872_v42 = vpack.c.bf16 %v1852_v41, %v1851_v40 }
 0x32f   : > { %v1798_v43 = vpop.f32.mrb[112].mxu1 }
 0x330   : > { %v1799_v44 = vadd.f32 %v5187_v37, %v1798_v43  ;;  %v1800_v45 = vpop.f32.mrb[113].mxu1  ;;  %4109 = vmatmul.mubr.msk.bf16.gmra.mrb[108].mxu0 %vm1979_vm5, %v1872_v42  ;;  %v4438_v42 = vld [vmem:[%s6282_s11 + $0xa4] ss:$20 sps:$4 sm:$0xff]  }
 0x331   : > { %v1801_v46 = vpop.f32.mrb[114].mxu1  ;;  %2186 = vmatprep.mubr.bf16.mxu0 %v4558_v14 }
 0x332   : > { %v1802_v47 = vadd.f32 %v5187_v37, %v1801_v46  ;;  %v1803_v48 = vpop.f32.mrb[115].mxu1  ;;  %v1853_v49 = vmax.f32 %v1799_v44, 0.0  ;;  %v4447_v44 = vld [vmem:[%s6282_s11 + $0xc] ss:$20 sps:$4 sm:$0xff]  }
 0x333   : > { %3372 = vmatprep.subr.bf16.mxu1 %v4447_v44  ;;  %v4466_v44 = vld [vmem:[%s6282_s11 + $0xd0] ss:$20 sps:$4 sm:$0xff]  }
 0x334   : > { %v1854_v50 = vmax.f32 %v1802_v47, 0.0  ;;  %v4445_v47 = vld [vmem:[%s6282_s11 + $0x8] ss:$20 sps:$4 sm:$0xff]  }
 0x336   : > { %v1873_v51 = vpack.c.bf16 %v1854_v50, %v1853_v49  ;;  %v4436_v50 = vld [vmem:[%s6282_s11 + $0xa0] ss:$20 sps:$4 sm:$0xff]  }
 0x337   : > { %v1806_v52 = vpop.f32.mrb[116].mxu1 }
 0x338   : > { %v1807_v53 = vadd.f32 %v5187_v37, %v1806_v52  ;;  %v1808_v54 = vpop.f32.mrb[117].mxu1  ;;  %4110 = vmatmul.mubr.msk.bf16.gmra.mrb[112].mxu0 %vm1979_vm5, %v1873_v51  ;;  %v4453_v51 = vld [vmem:[%s6282_s11 + $0x34] ss:$20 sps:$4 sm:$0xff]  }
 0x339   : > { %v1809_v55 = vpop.f32.mrb[118].mxu1  ;;  %2196 = vmatprep.mubr.bf16.mxu0 %v4558_v14  ;;  %v4441_v54 = vld [vmem:[%s6282_s11 + $0xcc] ss:$20 sps:$4 sm:$0xff]  }
 0x33a   : > { %v1810_v56 = vadd.f32 %v5187_v37, %v1809_v55  ;;  %v1811_v57 = vpop.f32.mrb[119].mxu1  ;;  %v1855_v58 = vmax.f32 %v1807_v53, 0.0 }
 0x33c   : > { %v1856_v59 = vmax.f32 %v1810_v56, 0.0 }
 0x33e   : > { %v1874_v60 = vpack.c.bf16 %v1856_v59, %v1855_v58  ;;  %v4451_v58 = vld [vmem:[%s6282_s11 + $0x30] ss:$20 sps:$4 sm:$0xff]  }
 0x33f   : > { %v1814_v61 = vpop.f32.mrb[120].mxu1 }
 0x340   : > { %v1815_v62 = vadd.f32 %v5187_v37, %v1814_v61  ;;  %v1816_v63 = vpop.f32.mrb[121].mxu1  ;;  %4111 = vmatmul.mubr.msk.bf16.gmra.mrb[116].mxu0 %vm1979_vm5, %v1874_v60  ;;  %v4439_v61 = vld [vmem:[%s6282_s11 + $0xc8] ss:$20 sps:$4 sm:$0xff]  }
 0x341   : > { %v1817_v0 = vpop.f32.mrb[122].mxu1  ;;  %2206 = vmatprep.mubr.bf16.mxu0 %v4558_v14 }
 0x342   : > { %v1818_v1 = vadd.f32 %v5187_v37, %v1817_v0  ;;  %v1819_v2 = vpop.f32.mrb[123].mxu1  ;;  %v1857_v3 = vmax.f32 %v1815_v62, 0.0  ;;  %v4456_v62 = vld [vmem:[%s6282_s11 + $0x5c] ss:$20 sps:$4 sm:$0xff]  }
 0x344   : > { %v1858_v4 = vmax.f32 %v1818_v1, 0.0  ;;  %v4444_v1 = vld [vmem:[%s6282_s11 + $0xf4] ss:$20 sps:$4 sm:$0xff]  }
 0x346   : > { %v1875_v5 = vpack.c.bf16 %v1858_v4, %v1857_v3 }
 0x347   : > { %v1822_v6 = vpop.f32.mrb[124].mxu1 }
 0x348   : > { %v1823_v7 = vadd.f32 %v5187_v37, %v1822_v6  ;;  %v1824_v8 = vpop.f32.mrb[125].mxu1  ;;  %4112 = vmatmul.mubr.msk.bf16.gmra.mrb[120].mxu0 %vm1979_vm5, %v1875_v5  ;;  %v4454_v5 = vld [vmem:[%s6282_s11 + $0x58] ss:$20 sps:$4 sm:$0xff]  }
 0x349   : > { %v1825_v9 = vpop.f32.mrb[126].mxu1  ;;  %2216 = vmatprep.mubr.bf16.mxu0 %v4558_v14  ;;  %v4442_v8 = vld [vmem:[%s6282_s11 + $0xf0] ss:$20 sps:$4 sm:$0xff]  }
 0x34a   : > { %v1826_v10 = vadd.f32 %v5187_v37, %v1825_v9  ;;  %v1827_v11 = vpop.f32.mrb[127].mxu1  ;;  %v1859_v12 = vmax.f32 %v1823_v7, 0.0  ;;  %v4427_v37 = vld [vmem:[%s6282_s11 + $0x28] ss:$20 sps:$4 sm:$0xff]   ;;  %v4459_v9 = vld [vmem:[%s6282_s11 + $0x84] ss:$20 sps:$4 sm:$0xff]  }
 0x34b   : > { %3182 = vmatpush1.bf16.msra.mxu0 %v4427_v37 }
 0x34c   : > { %v1860_v13 = vmax.f32 %v1826_v10, 0.0  ;;  %3183 = vmatprep.subr.bf16.mxu0 %v4432_v33 }
 0x34e   : > { %v1876_v15 = vpack.c.bf16 %v1860_v13, %v1859_v12  ;;  %v4450_v12 = vld [vmem:[%s6282_s11 + $0x11c] ss:$20 sps:$4 sm:$0xff]  }
 0x34f   : > { %3184 = vmatpush1.bf16.msra.mxu0 %v4430_v32 }
 0x350   : > { %4113 = vmatmul.mubr.msk.bf16.gmra.mrb[124].mxu0 %vm1979_vm5, %v1876_v15  ;;  %3185 = vmatprep.subr.bf16.mxu0 %v4435_v27 }
 0x353   : > { %3186 = vmatpush1.bf16.msra.mxu0 %v4433_v39 }
 0x354   : > { %3187 = vmatprep.subr.bf16.mxu0 %v4438_v42 }
 0x357   : > { %3188 = vmatpush1.bf16.msra.mxu0 %v4436_v50 }
 0x358   : > { %3189 = vmatprep.subr.bf16.mxu0 %v4441_v54  ;;  %v4469_v54 = vld [vmem:[%s6282_s11 + $0xf8] ss:$20 sps:$4 sm:$0xff]  }
 0x35b   : > { %3190 = vmatpush1.bf16.msra.mxu0 %v4439_v61 }
 0x35c   : > { %3191 = vmatprep.subr.bf16.mxu0 %v4444_v1 }
 0x35f   : > { %3192 = vmatpush1.bf16.msra.mxu0 %v4442_v8 }
 0x360   : > { %3193 = vmatprep.subr.bf16.mxu0 %v4450_v12 }
 0x363   : > { %3194 = vmatpush1.bf16.msra.mxu0 %v4448_v24 }
 0x3ab   : > { %v2068_v25 = vpop.f32.mrb[64].mxu0 }
 0x3ac   : > { %v2069_v26 = vadd.f32 %v2068_v25, %v5312_v20  ;;  %v2070_v29 = vpop.f32.mrb[65].mxu0  ;;  %v4465_v25 = vld [vmem:[%s6282_s11 + $0xac] ss:$20 sps:$4 sm:$0xff]  }
 0x3ad   : > { %v2071_v30 = vadd.f32 %v2070_v29, %v5315_v21  ;;  %v2072_v31 = vpop.f32.mrb[66].mxu0 }
 0x3ae   : > { %v2073_v34 = vadd.f32 %v2072_v31, %v5312_v20  ;;  %v2074_v35 = vpop.f32.mrb[67].mxu0  ;;  %v2227_v36 = vmax.f32 %v2069_v26, 0.0 }
 0x3af   : > { %v2075_v28 = vadd.f32 %v2074_v35, %v5315_v21  ;;  %v2228_v40 = vmax.f32 %v2071_v30, 0.0  ;;  %v4462_v30 = vld [vmem:[%s6282_s11 + $0x144] ss:$20 sps:$4 sm:$0xff]  }
 0x3b0   : > { %v2229_v38 = vmax.f32 %v2073_v34, 0.0  ;;  %v4463_v34 = vld [vmem:[%s6282_s11 + $0xa8] ss:$20 sps:$4 sm:$0xff]   ;;  %3195 = vmatprep.subr.bf16.mxu0 %v4462_v30 }
 0x3b1   : > { %v2230_v41 = vmax.f32 %v2075_v28, 0.0  ;;  %v4460_v28 = vld [vmem:[%s6282_s11 + $0x140] ss:$20 sps:$4 sm:$0xff]  }
 0x3b2   : > { %v2291_v43 = vpack.c.bf16 %v2229_v38, %v2227_v36  ;;  %v4468_v36 = vld [vmem:[%s6282_s11 + $0xd4] ss:$20 sps:$4 sm:$0xff]   ;;  %3196 = vmatpush1.bf16.msra.mxu0 %v4460_v28 }
 0x3b3   : > { %v2292_v45 = vpack.c.bf16 %v2230_v41, %v2228_v40  ;;  %v2078_v46 = vpop.f32.mrb[68].mxu0  ;;  %v4474_v40 = vld [vmem:[%s6282_s11 + $0x16c] ss:$20 sps:$4 sm:$0xff]  }
 0x3b4   : > { %v2079_v48 = vadd.f32 %v2078_v46, %v5312_v20  ;;  %v2080_v49 = vpop.f32.mrb[69].mxu0  ;;  %3197 = vmatprep.subr.bf16.mxu0 %v4474_v40 }
 0x3b5   : > { %v2081_v52 = vadd.f32 %v2080_v49, %v5315_v21  ;;  %v2082_v53 = vpop.f32.mrb[70].mxu0  ;;  %4133 = vmatprep.mubr.msk.bf16.mxu1 %vm1615_vm4, %v2292_v45 }
 0x3b6   : > { %v2083_v55 = vadd.f32 %v2082_v53, %v5312_v20  ;;  %v2084_v56 = vpop.f32.mrb[71].mxu0  ;;  %2528 = vmatmul.mubr.bf16.vlgmr.msra.gmra.mrb[128].mxu1 %v2291_v43  ;;  %v2231_v59 = vmax.f32 %v2079_v48, 0.0  ;;  %v4472_v48 = vld [vmem:[%s6282_s11 + $0x168] ss:$20 sps:$4 sm:$0xff]  }
 0x3b7   : > { %v2085_v57 = vadd.f32 %v2084_v56, %v5315_v21  ;;  %3373 = vmatpush1.bf16.msra.mxu1 %v4445_v47  ;;  %v2232_v63 = vmax.f32 %v2081_v52, 0.0  ;;  %v4471_v47 = vld [vmem:[%s6282_s11 + $0xfc] ss:$20 sps:$4 sm:$0xff]   ;;  %3198 = vmatpush1.bf16.msra.mxu0 %v4472_v48 }
 0x3b8   : > { %v2233_v60 = vmax.f32 %v2083_v55, 0.0  ;;  %3374 = vmatprep.subr.bf16.mxu1 %v4453_v51  ;;  %3565 = vmatprep.subr.bf16.mxu0 %v4558_v14 }
 0x3b9   : > { %v2234_v0 = vmax.f32 %v2085_v57, 0.0  ;;  %v4477_v57 = vld [vmem:[%s6282_s11 + $0x124] ss:$20 sps:$4 sm:$0xff]  }
 0x3ba   : > { %v2293_v2 = vpack.c.bf16 %v2233_v60, %v2231_v59 }
 0x3bb   : > { %v2294_v3 = vpack.c.bf16 %v2234_v0, %v2232_v63  ;;  %v2088_v4 = vpop.f32.mrb[72].mxu0  ;;  %3375 = vmatpush1.bf16.msra.mxu1 %v4451_v58  ;;  %v4475_v63 = vld [vmem:[%s6282_s11 + $0x120] ss:$20 sps:$4 sm:$0xff]  }
 0x3bc   : > { %v2089_v6 = vadd.f32 %v2088_v4, %v5312_v20  ;;  %v2090_v7 = vpop.f32.mrb[73].mxu0  ;;  %3376 = vmatprep.subr.bf16.mxu1 %v4456_v62 }
 0x3bd   : > { %v2091_v10 = vadd.f32 %v2090_v7, %v5315_v21  ;;  %v2092_v11 = vpop.f32.mrb[74].mxu0  ;;  %4134 = vmatprep.mubr.msk.bf16.mxu1 %vm1615_vm4, %v2294_v3 }
 0x3be   : > { %v2093_v13 = vadd.f32 %v2092_v11, %v5312_v20  ;;  %v2094_v15 = vpop.f32.mrb[75].mxu0  ;;  %2538 = vmatmul.mubr.bf16.gmra.mrb[132].mxu1 %v2293_v2  ;;  %v2235_v37 = vmax.f32 %v2089_v6, 0.0 }
 0x3bf   : > { %v2095_v18 = vadd.f32 %v2094_v15, %v5315_v21  ;;  %3377 = vmatpush1.bf16.msra.mxu1 %v4454_v5  ;;  %v2236_v26 = vmax.f32 %v2091_v10, 0.0 }
 0x3c0   : > { %v2237_v23 = vmax.f32 %v2093_v13, 0.0  ;;  %3378 = vmatprep.subr.bf16.mxu1 %v4459_v9 }
 0x3c1   : > { %v2238_v29 = vmax.f32 %v2095_v18, 0.0 }
 0x3c2   : > { %v2295_v31 = vpack.c.bf16 %v2237_v23, %v2235_v37 }
 0x3c3   : > { %v2296_v32 = vpack.c.bf16 %v2238_v29, %v2236_v26  ;;  %v2098_v33 = vpop.f32.mrb[76].mxu0  ;;  %3379 = vmatpush1.bf16.msra.mxu1 %v4457_v22 }
 0x3c4   : > { %v2099_v35 = vadd.f32 %v2098_v33, %v5312_v20  ;;  %v2100_v27 = vpop.f32.mrb[77].mxu0  ;;  %3380 = vmatprep.subr.bf16.mxu1 %v4465_v25 }
 0x3c5   : > { %v2101_v38 = vadd.f32 %v2100_v27, %v5315_v21  ;;  %v2102_v39 = vpop.f32.mrb[78].mxu0  ;;  %4135 = vmatprep.mubr.msk.bf16.mxu1 %vm1615_vm4, %v2296_v32 }
 0x3c6   : > { %v2103_v41 = vadd.f32 %v2102_v39, %v5312_v20  ;;  %v2104_v42 = vpop.f32.mrb[79].mxu0  ;;  %2548 = vmatmul.mubr.bf16.gmra.mrb[136].mxu1 %v2295_v31  ;;  %v2239_v45 = vmax.f32 %v2099_v35, 0.0 }
 0x3c7   : > { %v2105_v43 = vadd.f32 %v2104_v42, %v5315_v21  ;;  %3381 = vmatpush1.bf16.msra.mxu1 %v4463_v34  ;;  %v2240_v49 = vmax.f32 %v2101_v38, 0.0 }
 0x3c8   : > { %v2241_v46 = vmax.f32 %v2103_v41, 0.0  ;;  %3382 = vmatprep.subr.bf16.mxu1 %v4468_v36 }
 0x3c9   : > { %v2242_v50 = vmax.f32 %v2105_v43, 0.0 }
 0x3ca   : > { %v2297_v51 = vpack.c.bf16 %v2241_v46, %v2239_v45 }
 0x3cb   : > { %v2298_v52 = vpack.c.bf16 %v2242_v50, %v2240_v49  ;;  %v2108_v53 = vpop.f32.mrb[80].mxu0  ;;  %3383 = vmatpush1.bf16.msra.mxu1 %v4466_v44 }
 0x3cc   : > { %v2109_v55 = vadd.f32 %v2108_v53, %v5312_v20  ;;  %v2110_v56 = vpop.f32.mrb[81].mxu0  ;;  %3384 = vmatprep.subr.bf16.mxu1 %v4471_v47 }
 0x3cd   : > { %v2111_v58 = vadd.f32 %v2110_v56, %v5315_v21  ;;  %v2112_v59 = vpop.f32.mrb[82].mxu0  ;;  %4136 = vmatprep.mubr.msk.bf16.mxu1 %vm1615_vm4, %v2298_v52 }
 0x3ce   : > { %v2113_v60 = vadd.f32 %v2112_v59, %v5312_v20  ;;  %v2114_v61 = vpop.f32.mrb[83].mxu0  ;;  %2558 = vmatmul.mubr.bf16.gmra.mrb[140].mxu1 %v2297_v51  ;;  %v2243_v0 = vmax.f32 %v2109_v55, 0.0 }
 0x3cf   : > { %v2115_v62 = vadd.f32 %v2114_v61, %v5315_v21  ;;  %3385 = vmatpush1.bf16.msra.mxu1 %v4469_v54  ;;  %v2244_v2 = vmax.f32 %v2111_v58, 0.0 }
 0x3d0   : > { %v2245_v1 = vmax.f32 %v2113_v60, 0.0  ;;  %3386 = vmatprep.subr.bf16.mxu1 %v4477_v57 }
 0x3d1   : > { %v2246_v3 = vmax.f32 %v2115_v62, 0.0 }
 0x3d2   : > { %v2299_v4 = vpack.c.bf16 %v2245_v1, %v2243_v0 }
 0x3d3   : > { %v2300_v5 = vpack.c.bf16 %v2246_v3, %v2244_v2  ;;  %v2118_v6 = vpop.f32.mrb[84].mxu0  ;;  %3387 = vmatpush1.bf16.msra.mxu1 %v4475_v63 }
 0x3d4   : > { %v2119_v7 = vadd.f32 %v2118_v6, %v5312_v20  ;;  %v2120_v8 = vpop.f32.mrb[85].mxu0 }
 0x3d5   : > { %v2121_v9 = vadd.f32 %v2120_v8, %v5315_v21  ;;  %v2122_v10 = vpop.f32.mrb[86].mxu0  ;;  %4137 = vmatprep.mubr.msk.bf16.mxu1 %vm1615_vm4, %v2300_v5 }
 0x3d6   : > { %v2123_v11 = vadd.f32 %v2122_v10, %v5312_v20  ;;  %v2124_v12 = vpop.f32.mrb[87].mxu0  ;;  %2568 = vmatmul.mubr.bf16.gmra.mrb[144].mxu1 %v2299_v4  ;;  %v2247_v15 = vmax.f32 %v2119_v7, 0.0 }
 0x3d7   : > { %v2125_v13 = vadd.f32 %v2124_v12, %v5315_v21  ;;  %v2248_v22 = vmax.f32 %v2121_v9, 0.0 }
 0x3d8   : > { %v2249_v18 = vmax.f32 %v2123_v11, 0.0 }
 0x3d9   : > { %v2250_v37 = vmax.f32 %v2125_v13, 0.0 }
 0x3da   : > { %v2301_v23 = vpack.c.bf16 %v2249_v18, %v2247_v15 }
 0x3db   : > { %v2302_v24 = vpack.c.bf16 %v2250_v37, %v2248_v22  ;;  %v2128_v25 = vpop.f32.mrb[88].mxu0 }
 0x3dc   : > { %v2129_v26 = vadd.f32 %v2128_v25, %v5312_v20  ;;  %v2130_v29 = vpop.f32.mrb[89].mxu0 }
 0x3dd   : > { %v2131_v30 = vadd.f32 %v2130_v29, %v5315_v21  ;;  %v2132_v31 = vpop.f32.mrb[90].mxu0  ;;  %4138 = vmatprep.mubr.msk.bf16.mxu1 %vm1615_vm4, %v2302_v24 }
 0x3de   : > { %v2133_v32 = vadd.f32 %v2132_v31, %v5312_v20  ;;  %v2134_v33 = vpop.f32.mrb[91].mxu0  ;;  %2578 = vmatmul.mubr.bf16.gmra.mrb[148].mxu1 %v2301_v23  ;;  %v2251_v35 = vmax.f32 %v2129_v26, 0.0 }
 0x3df   : > { %v2135_v34 = vadd.f32 %v2134_v33, %v5315_v21  ;;  %v2252_v28 = vmax.f32 %v2131_v30, 0.0 }
 0x3e0   : > { %v2253_v27 = vmax.f32 %v2133_v32, 0.0 }
 0x3e1   : > { %v2254_v36 = vmax.f32 %v2135_v34, 0.0 }
 0x3e2   : > { %v2303_v38 = vpack.c.bf16 %v2253_v27, %v2251_v35 }
 0x3e3   : > { %v2304_v39 = vpack.c.bf16 %v2254_v36, %v2252_v28  ;;  %v2138_v40 = vpop.f32.mrb[92].mxu0 }
 0x3e4   : > { %v2139_v41 = vadd.f32 %v2138_v40, %v5312_v20  ;;  %v2140_v42 = vpop.f32.mrb[93].mxu0 }
 0x3e5   : > { %v2141_v43 = vadd.f32 %v2140_v42, %v5315_v21  ;;  %v2142_v44 = vpop.f32.mrb[94].mxu0  ;;  %4139 = vmatprep.mubr.msk.bf16.mxu1 %vm1615_vm4, %v2304_v39 }
 0x3e6   : > { %v2143_v45 = vadd.f32 %v2142_v44, %v5312_v20  ;;  %v2144_v46 = vpop.f32.mrb[95].mxu0  ;;  %2588 = vmatmul.mubr.bf16.gmra.mrb[152].mxu1 %v2303_v38  ;;  %v2255_v48 = vmax.f32 %v2139_v41, 0.0 }
 0x3e7   : > { %v2145_v47 = vadd.f32 %v2144_v46, %v5315_v21  ;;  %v2256_v50 = vmax.f32 %v2141_v43, 0.0 }
 0x3e8   : > { %v2257_v49 = vmax.f32 %v2143_v45, 0.0 }
 0x3e9   : > { %v2258_v51 = vmax.f32 %v2145_v47, 0.0 }
 0x3ea   : > { %v2305_v52 = vpack.c.bf16 %v2257_v49, %v2255_v48 }
 0x3eb   : > { %v2306_v53 = vpack.c.bf16 %v2258_v51, %v2256_v50  ;;  %v2148_v54 = vpop.f32.mrb[96].mxu0  ;;  %v4480_v51 = vld [vmem:[%s6282_s11 + $0x14c] ss:$20 sps:$4 sm:$0xff]  }
 0x3ec   : > { %v2149_v55 = vadd.f32 %v2148_v54, %v5312_v20  ;;  %v2150_v56 = vpop.f32.mrb[97].mxu0  ;;  %v4478_v54 = vld [vmem:[%s6282_s11 + $0x148] ss:$20 sps:$4 sm:$0xff]   ;;  %3388 = vmatprep.subr.bf16.mxu1 %v4480_v51 }
 0x3ed   : > { %v2151_v57 = vadd.f32 %v2150_v56, %v5315_v21  ;;  %v2152_v58 = vpop.f32.mrb[98].mxu0  ;;  %4140 = vmatprep.mubr.msk.bf16.mxu1 %vm1615_vm4, %v2306_v53  ;;  %3389 = vmatpush1.bf16.msra.mxu1 %v4478_v54  ;;  %v2341_v54 = vld [vmem:[%s6281_s10] sm:$0x3] }
 0x3ee   : > { %v2153_v59 = vadd.f32 %v2152_v58, %v5312_v20  ;;  %v2154_v60 = vpop.f32.mrb[99].mxu0  ;;  %2598 = vmatmul.mubr.bf16.gmra.mrb[156].mxu1 %v2305_v52  ;;  %v2259_v62 = vmax.f32 %v2149_v55, 0.0 }
 0x3ef   : > { %v2155_v61 = vadd.f32 %v2154_v60, %v5315_v21  ;;  %v2260_v0 = vmax.f32 %v2151_v57, 0.0 }
 0x3f0   : > { %v2261_v63 = vmax.f32 %v2153_v59, 0.0 }
 0x3f1   : > { %v2262_v1 = vmax.f32 %v2155_v61, 0.0  ;;  %v4483_v61 = vld [vmem:[%s6282_s11 + $0x174] ss:$20 sps:$4 sm:$0xff]  }
 0x3f2   : > { %v2307_v2 = vpack.c.bf16 %v2261_v63, %v2259_v62  ;;  %v4481_v63 = vld [vmem:[%s6282_s11 + $0x170] ss:$20 sps:$4 sm:$0xff]   ;;  %3390 = vmatprep.subr.bf16.mxu1 %v4483_v61 }
 0x3f3   : > { %v2308_v3 = vpack.c.bf16 %v2262_v1, %v2260_v0  ;;  %v2158_v4 = vpop.f32.mrb[100].mxu0  ;;  %3391 = vmatpush1.bf16.msra.mxu1 %v4481_v63 }
 0x3f4   : > { %v2159_v5 = vadd.f32 %v2158_v4, %v5312_v20  ;;  %v2160_v6 = vpop.f32.mrb[101].mxu0 }
 0x3f5   : > { %v2161_v7 = vadd.f32 %v2160_v6, %v5315_v21  ;;  %v2162_v8 = vpop.f32.mrb[102].mxu0  ;;  %4141 = vmatprep.mubr.msk.bf16.mxu1 %vm1615_vm4, %v2308_v3 }
 0x3f6   : > { %v2163_v9 = vadd.f32 %v2162_v8, %v5312_v20  ;;  %v2164_v10 = vpop.f32.mrb[103].mxu0  ;;  %2608 = vmatmul.mubr.bf16.gmra.mrb[160].mxu1 %v2307_v2  ;;  %v2263_v12 = vmax.f32 %v2159_v5, 0.0 }
 0x3f7   : > { %v2165_v11 = vadd.f32 %v2164_v10, %v5315_v21  ;;  %v2264_v15 = vmax.f32 %v2161_v7, 0.0 }
 0x3f8   : > { %v2265_v13 = vmax.f32 %v2163_v9, 0.0 }
 0x3f9   : > { %v2266_v18 = vmax.f32 %v2165_v11, 0.0 }
 0x3fa   : > { %v2309_v22 = vpack.c.bf16 %v2265_v13, %v2263_v12 }
 0x3fb   : > { %v2310_v37 = vpack.c.bf16 %v2266_v18, %v2264_v15  ;;  %v2168_v23 = vpop.f32.mrb[104].mxu0 }
 0x3fc   : > { %v2169_v24 = vadd.f32 %v2168_v23, %v5312_v20  ;;  %v2170_v25 = vpop.f32.mrb[105].mxu0 }
 0x3fd   : > { %v2171_v26 = vadd.f32 %v2170_v25, %v5315_v21  ;;  %v2172_v29 = vpop.f32.mrb[106].mxu0  ;;  %4142 = vmatprep.mubr.msk.bf16.mxu1 %vm1615_vm4, %v2310_v37 }
 0x3fe   : > { %v2173_v30 = vadd.f32 %v2172_v29, %v5312_v20  ;;  %v2174_v31 = vpop.f32.mrb[107].mxu0  ;;  %2618 = vmatmul.mubr.bf16.gmra.mrb[164].mxu1 %v2309_v22  ;;  %v2267_v33 = vmax.f32 %v2169_v24, 0.0 }
 0x3ff   : > { %v2175_v32 = vadd.f32 %v2174_v31, %v5315_v21  ;;  %v2268_v35 = vmax.f32 %v2171_v26, 0.0 }
 0x400   : > { %v2269_v34 = vmax.f32 %v2173_v30, 0.0 }
 0x401   : > { %v2270_v27 = vmax.f32 %v2175_v32, 0.0 }
 0x402   : > { %v2311_v28 = vpack.c.bf16 %v2269_v34, %v2267_v33 }
 0x403   : > { %v2312_v36 = vpack.c.bf16 %v2270_v27, %v2268_v35  ;;  %v2178_v38 = vpop.f32.mrb[108].mxu0 }
 0x404   : > { %v2179_v39 = vadd.f32 %v2178_v38, %v5312_v20  ;;  %v2180_v40 = vpop.f32.mrb[109].mxu0 }
 0x405   : > { %v2181_v41 = vadd.f32 %v2180_v40, %v5315_v21  ;;  %v2182_v42 = vpop.f32.mrb[110].mxu0  ;;  %4143 = vmatprep.mubr.msk.bf16.mxu1 %vm1615_vm4, %v2312_v36 }
 0x406   : > { %v2183_v43 = vadd.f32 %v2182_v42, %v5312_v20  ;;  %v2184_v44 = vpop.f32.mrb[111].mxu0  ;;  %2628 = vmatmul.mubr.bf16.gmra.mrb[168].mxu1 %v2311_v28  ;;  %v2271_v46 = vmax.f32 %v2179_v39, 0.0 }
 0x407   : > { %v2185_v45 = vadd.f32 %v2184_v44, %v5315_v21  ;;  %v2272_v48 = vmax.f32 %v2181_v41, 0.0 }
 0x408   : > { %v2273_v47 = vmax.f32 %v2183_v43, 0.0 }
 0x409   : > { %v2274_v49 = vmax.f32 %v2185_v45, 0.0 }
 0x40a   : > { %v2313_v50 = vpack.c.bf16 %v2273_v47, %v2271_v46 }
 0x40b   : > { %v2314_v52 = vpack.c.bf16 %v2274_v49, %v2272_v48  ;;  %v2188_v53 = vpop.f32.mrb[112].mxu0 }
 0x40c   : > { %v2189_v55 = vadd.f32 %v2188_v53, %v5312_v20  ;;  %v2190_v56 = vpop.f32.mrb[113].mxu0 }
 0x40d   : > { %v2191_v57 = vadd.f32 %v2190_v56, %v5315_v21  ;;  %v2192_v58 = vpop.f32.mrb[114].mxu0  ;;  %4144 = vmatprep.mubr.msk.bf16.mxu1 %vm1615_vm4, %v2314_v52 }
 0x40e   : > { %v2193_v59 = vadd.f32 %v2192_v58, %v5312_v20  ;;  %v2194_v60 = vpop.f32.mrb[115].mxu0  ;;  %2638 = vmatmul.mubr.bf16.gmra.mrb[172].mxu1 %v2313_v50  ;;  %v2275_v0 = vmax.f32 %v2189_v55, 0.0  ;;  %v5510_v55 = vrot.slane %v2341_v54, %v4906_v17 }
 0x40f   : > { %v2195_v62 = vadd.f32 %v2194_v60, %v5315_v21  ;;  %v2276_v2 = vmax.f32 %v2191_v57, 0.0 }
 0x410   : > { %v2277_v1 = vmax.f32 %v2193_v59, 0.0 }
 0x411   : > { %v2278_v3 = vmax.f32 %v2195_v62, 0.0 }
 0x412   : > { %v2315_v4 = vpack.c.bf16 %v2277_v1, %v2275_v0 }
 0x413   : > { %v2316_v5 = vpack.c.bf16 %v2278_v3, %v2276_v2  ;;  %v2198_v6 = vpop.f32.mrb[116].mxu0 }
 0x414   : > { %v2199_v7 = vadd.f32 %v2198_v6, %v5312_v20  ;;  %v2200_v8 = vpop.f32.mrb[117].mxu0  ;;  %v4484_v6 = vld [vmem:[%s6282_s11 + $0x10] ss:$20 sps:$4 sm:$0xff]  }
 0x415   : > { %v2201_v9 = vadd.f32 %v2200_v8, %v5315_v21  ;;  %v2202_v10 = vpop.f32.mrb[118].mxu0  ;;  %4145 = vmatprep.mubr.msk.bf16.mxu1 %vm1615_vm4, %v2316_v5 }
 0x416   : > { %v2203_v11 = vadd.f32 %v2202_v10, %v5312_v20  ;;  %v2204_v12 = vpop.f32.mrb[119].mxu0  ;;  %2648 = vmatmul.mubr.bf16.gmra.mrb[176].mxu1 %v2315_v4  ;;  %v2279_v15 = vmax.f32 %v2199_v7, 0.0 }
 0x417   : > { %v2205_v13 = vadd.f32 %v2204_v12, %v5315_v21  ;;  %v2280_v22 = vmax.f32 %v2201_v9, 0.0 }
 0x418   : > { %v2281_v18 = vmax.f32 %v2203_v11, 0.0 }
 0x419   : > { %v2282_v37 = vmax.f32 %v2205_v13, 0.0 }
 0x41a   : > { %v2317_v23 = vpack.c.bf16 %v2281_v18, %v2279_v15  ;;  %v4485_v15 = vld [vmem:[%s6282_s11 + $0x38] ss:$20 sps:$4 sm:$0xff]  }
 0x41b   : > { %v2318_v24 = vpack.c.bf16 %v2282_v37, %v2280_v22  ;;  %v2208_v25 = vpop.f32.mrb[120].mxu0 }
 0x41c   : > { %v2209_v26 = vadd.f32 %v2208_v25, %v5312_v20  ;;  %v2210_v29 = vpop.f32.mrb[121].mxu0 }
 0x41d   : > { %v2211_v30 = vadd.f32 %v2210_v29, %v5315_v21  ;;  %v2212_v31 = vpop.f32.mrb[122].mxu0  ;;  %4146 = vmatprep.mubr.msk.bf16.mxu1 %vm1615_vm4, %v2318_v24  ;;  %v4486_v29 = vld [vmem:[%s6282_s11 + $0x60] ss:$20 sps:$4 sm:$0xff]  }
 0x41e   : > { %v2213_v32 = vadd.f32 %v2212_v31, %v5312_v20  ;;  %v2214_v33 = vpop.f32.mrb[123].mxu0  ;;  %2658 = vmatmul.mubr.bf16.gmra.mrb[180].mxu1 %v2317_v23  ;;  %v2283_v35 = vmax.f32 %v2209_v26, 0.0 }
 0x41f   : > { %v2215_v34 = vadd.f32 %v2214_v33, %v5315_v21  ;;  %v2284_v28 = vmax.f32 %v2211_v30, 0.0 }
 0x420   : > { %v2285_v27 = vmax.f32 %v2213_v32, 0.0 }
 0x421   : > { %v2286_v36 = vmax.f32 %v2215_v34, 0.0 }
 0x422   : > { %v2319_v38 = vpack.c.bf16 %v2285_v27, %v2283_v35 }
 0x423   : > { %v2320_v39 = vpack.c.bf16 %v2286_v36, %v2284_v28  ;;  %v2218_v40 = vpop.f32.mrb[124].mxu0  ;;  %v4487_v28 = vld [vmem:[%s6282_s11 + $0x88] ss:$20 sps:$4 sm:$0xff]  }
 0x424   : > { %v2219_v41 = vadd.f32 %v2218_v40, %v5312_v20  ;;  %v2220_v42 = vpop.f32.mrb[125].mxu0 }
 0x425   : > { %v2221_v43 = vadd.f32 %v2220_v42, %v5315_v21  ;;  %v2222_v44 = vpop.f32.mrb[126].mxu0  ;;  %4147 = vmatprep.mubr.msk.bf16.mxu1 %vm1615_vm4, %v2320_v39 }
 0x426   : > { %v2223_v45 = vadd.f32 %v2222_v44, %v5312_v20  ;;  %v2224_v46 = vpop.f32.mrb[127].mxu0  ;;  %2668 = vmatmul.mubr.bf16.gmra.mrb[184].mxu1 %v2319_v38  ;;  %v2287_v48 = vmax.f32 %v2219_v41, 0.0  ;;  %v5513_v20 = vrot.slane %v2341_v54, %v4912_v19  ;;  %v4488_v44 = vld [vmem:[%s6282_s11 + $0xb0] ss:$20 sps:$4 sm:$0xff]  }
 0x427   : > { %v2225_v47 = vadd.f32 %v2224_v46, %v5315_v21  ;;  %v2288_v50 = vmax.f32 %v2221_v43, 0.0 }
 0x428   : > { %v2289_v49 = vmax.f32 %v2223_v45, 0.0 }
 0x429   : > { %v2290_v51 = vmax.f32 %v2225_v47, 0.0 }
 0x42a   : > { %v2321_v52 = vpack.c.bf16 %v2289_v49, %v2287_v48 }
 0x42b   : > { %v2322_v53 = vpack.c.bf16 %v2290_v51, %v2288_v50 }
 0x42d   : > { %4148 = vmatprep.mubr.msk.bf16.mxu1 %vm1615_vm4, %v2322_v53 }
 0x42e   : > { %2678 = vmatmul.mubr.bf16.gmra.mrb[188].mxu1 %v2321_v52  ;;  %v4489_v52 = vld [vmem:[%s6282_s11 + $0xd8] ss:$20 sps:$4 sm:$0xff]  }
 0x489   : > { %v2529_v21 = vpop.f32.mrb[128].mxu1 }
 0x48a   : > { %v2530_v56 = vadd.f32 %v2529_v21, %v5510_v55  ;;  %v2531_v57 = vpop.f32.mrb[129].mxu1 }
 0x48b   : > { %v2532_v58 = vadd.f32 %v2531_v57, %v5513_v20  ;;  %v2533_v59 = vpop.f32.mrb[130].mxu1 }
 0x48c   : > { %v2534_v60 = vadd.f32 %v2533_v59, %v5510_v55  ;;  %v2535_v61 = vpop.f32.mrb[131].mxu1  ;;  %v2688_v63 = vmax.f32 %v2530_v56, 0.0 }
 0x48d   : > { %v2536_v62 = vadd.f32 %v2535_v61, %v5513_v20  ;;  %v2689_v1 = vmax.f32 %v2532_v58, 0.0 }
 0x48e   : > { %v2690_v0 = vmax.f32 %v2534_v60, 0.0  ;;  %v4490_v60 = vld [vmem:[%s6282_s11 + $0x100] ss:$20 sps:$4 sm:$0xff]  }
 0x48f   : > { %v2691_v2 = vmax.f32 %v2536_v62, 0.0 }
 0x490   : > { %v5519_v3 = vpack.c.bf16 %v2690_v0, %v2688_v63 }
 0x491   : > { %v5521_v4 = vpack.c.bf16 %v2691_v2, %v2689_v1  ;;  %v2539_v5 = vpop.f32.mrb[132].mxu1 }
 0x492   : > { %v2540_v7 = vadd.f32 %v2539_v5, %v5510_v55  ;;  %v2541_v8 = vpop.f32.mrb[133].mxu1 }
 0x493   : > { %v2542_v9 = vadd.f32 %v2541_v8, %v5513_v20  ;;  %v2543_v10 = vpop.f32.mrb[134].mxu1  ;;  %4199 = vmatprep.mubr.msk.bf16.mxu0 %vm1199_vm2, %v5521_v4  ;;  %4215 = vmatprep.mubr.msk.bf16.mxu1 %vm1199_vm2, %v5521_v4 }
 0x494   : > { %v2544_v11 = vadd.f32 %v2543_v10, %v5510_v55  ;;  %v2545_v12 = vpop.f32.mrb[135].mxu1  ;;  %3212 = vmatmul.mubr.bf16.vlgmr.msra.gmra.mrb[128].mxu0 %v5519_v3  ;;  %3405 = vmatmul.mubr.bf16.vlgmr.msra.gmra.mrb[192].mxu1 %v5519_v3  ;;  %v2692_v18 = vmax.f32 %v2540_v7, 0.0 }
 0x495   : > { %v2546_v13 = vadd.f32 %v2545_v12, %v5513_v20  ;;  %3566 = vmatpush1.bf16.msra.mxu0 %v4484_v6  ;;  %v2693_v37 = vmax.f32 %v2542_v9, 0.0  ;;  %v4491_v6 = vld [vmem:[%s6282_s11 + $0x128] ss:$20 sps:$4 sm:$0xff]  }
 0x496   : > { %v2694_v22 = vmax.f32 %v2544_v11, 0.0  ;;  %3567 = vmatprep.subr.bf16.mxu0 %v4558_v14 }
 0x497   : > { %v2695_v23 = vmax.f32 %v2546_v13, 0.0 }
 0x498   : > { %v5540_v24 = vpack.c.bf16 %v2694_v22, %v2692_v18 }
 0x499   : > { %v5542_v25 = vpack.c.bf16 %v2695_v23, %v2693_v37  ;;  %v2549_v26 = vpop.f32.mrb[136].mxu1  ;;  %3568 = vmatpush1.bf16.msra.mxu0 %v4485_v15  ;;  %v4492_v15 = vld [vmem:[%s6282_s11 + $0x150] ss:$20 sps:$4 sm:$0xff]  }
 0x49a   : > { %v2550_v30 = vadd.f32 %v2549_v26, %v5510_v55  ;;  %v2551_v31 = vpop.f32.mrb[137].mxu1  ;;  %3569 = vmatprep.subr.bf16.mxu0 %v4558_v14 }
 0x49b   : > { %v2552_v32 = vadd.f32 %v2551_v31, %v5513_v20  ;;  %v2553_v33 = vpop.f32.mrb[138].mxu1  ;;  %4200 = vmatprep.mubr.msk.bf16.mxu0 %vm1199_vm2, %v5542_v25  ;;  %4216 = vmatprep.mubr.msk.bf16.mxu1 %vm1199_vm2, %v5542_v25  ;;  %v4493_v31 = vld [vmem:[%s6282_s11 + $0x178] ss:$20 sps:$4 sm:$0xff]  }
 0x49c   : > { %v2554_v34 = vadd.f32 %v2553_v33, %v5510_v55  ;;  %v2555_v35 = vpop.f32.mrb[139].mxu1  ;;  %3222 = vmatmul.mubr.bf16.gmra.mrb[132].mxu0 %v5540_v24  ;;  %3415 = vmatmul.mubr.bf16.gmra.mrb[196].mxu1 %v5540_v24  ;;  %v2696_v36 = vmax.f32 %v2550_v30, 0.0 }
 0x49d   : > { %v2556_v27 = vadd.f32 %v2555_v35, %v5513_v20  ;;  %3570 = vmatpush1.bf16.msra.mxu0 %v4486_v29  ;;  %v2697_v39 = vmax.f32 %v2552_v32, 0.0 }
 0x49e   : > { %v2698_v38 = vmax.f32 %v2554_v34, 0.0  ;;  %3571 = vmatprep.subr.bf16.mxu0 %v4558_v14 }
 0x49f   : > { %v2699_v40 = vmax.f32 %v2556_v27, 0.0 }
 0x4a0   : > { %v5562_v41 = vpack.c.bf16 %v2698_v38, %v2696_v36 }
 0x4a1   : > { %v5564_v42 = vpack.c.bf16 %v2699_v40, %v2697_v39  ;;  %v2559_v43 = vpop.f32.mrb[140].mxu1  ;;  %3572 = vmatpush1.bf16.msra.mxu0 %v4487_v28 }
 0x4a2   : > { %v2560_v45 = vadd.f32 %v2559_v43, %v5510_v55  ;;  %v2561_v46 = vpop.f32.mrb[141].mxu1  ;;  %3573 = vmatprep.subr.bf16.mxu0 %v4558_v14 }
 0x4a3   : > { %v2562_v47 = vadd.f32 %v2561_v46, %v5513_v20  ;;  %v2563_v48 = vpop.f32.mrb[142].mxu1  ;;  %4201 = vmatprep.mubr.msk.bf16.mxu0 %vm1199_vm2, %v5564_v42  ;;  %4217 = vmatprep.mubr.msk.bf16.mxu1 %vm1199_vm2, %v5564_v42 }
 0x4a4   : > { %v2564_v49 = vadd.f32 %v2563_v48, %v5510_v55  ;;  %v2565_v50 = vpop.f32.mrb[143].mxu1  ;;  %3232 = vmatmul.mubr.bf16.gmra.mrb[136].mxu0 %v5562_v41  ;;  %3425 = vmatmul.mubr.bf16.gmra.mrb[200].mxu1 %v5562_v41  ;;  %v2700_v53 = vmax.f32 %v2560_v45, 0.0 }
 0x4a5   : > { %v2566_v51 = vadd.f32 %v2565_v50, %v5513_v20  ;;  %3574 = vmatpush1.bf16.msra.mxu0 %v4488_v44  ;;  %v2701_v21 = vmax.f32 %v2562_v47, 0.0 }
 0x4a6   : > { %v2702_v54 = vmax.f32 %v2564_v49, 0.0  ;;  %3575 = vmatprep.subr.bf16.mxu0 %v4558_v14 }
 0x4a7   : > { %v2703_v56 = vmax.f32 %v2566_v51, 0.0 }
 0x4a8   : > { %v5584_v57 = vpack.c.bf16 %v2702_v54, %v2700_v53 }
 0x4a9   : > { %v5586_v58 = vpack.c.bf16 %v2703_v56, %v2701_v21  ;;  %v2569_v59 = vpop.f32.mrb[144].mxu1  ;;  %3576 = vmatpush1.bf16.msra.mxu0 %v4489_v52 }
 0x4aa   : > { %v2570_v61 = vadd.f32 %v2569_v59, %v5510_v55  ;;  %v2571_v62 = vpop.f32.mrb[145].mxu1  ;;  %3577 = vmatprep.subr.bf16.mxu0 %v4558_v14 }
 0x4ab   : > { %v2572_v63 = vadd.f32 %v2571_v62, %v5513_v20  ;;  %v2573_v0 = vpop.f32.mrb[146].mxu1  ;;  %4202 = vmatprep.mubr.msk.bf16.mxu0 %vm1199_vm2, %v5586_v58  ;;  %4218 = vmatprep.mubr.msk.bf16.mxu1 %vm1199_vm2, %v5586_v58 }
 0x4ac   : > { %v2574_v1 = vadd.f32 %v2573_v0, %v5510_v55  ;;  %v2575_v2 = vpop.f32.mrb[147].mxu1  ;;  %3242 = vmatmul.mubr.bf16.gmra.mrb[140].mxu0 %v5584_v57  ;;  %3435 = vmatmul.mubr.bf16.gmra.mrb[204].mxu1 %v5584_v57  ;;  %v2704_v7 = vmax.f32 %v2570_v61, 0.0 }
 0x4ad   : > { %v2576_v5 = vadd.f32 %v2575_v2, %v5513_v20  ;;  %3578 = vmatpush1.bf16.msra.mxu0 %v4490_v60  ;;  %v2705_v9 = vmax.f32 %v2572_v63, 0.0 }
 0x4ae   : > { %v2706_v8 = vmax.f32 %v2574_v1, 0.0  ;;  %3579 = vmatprep.subr.bf16.mxu0 %v4558_v14 }
 0x4af   : > { %v2707_v10 = vmax.f32 %v2576_v5, 0.0 }
 0x4b0   : > { %v5606_v11 = vpack.c.bf16 %v2706_v8, %v2704_v7 }
 0x4b1   : > { %v5608_v12 = vpack.c.bf16 %v2707_v10, %v2705_v9  ;;  %v2579_v13 = vpop.f32.mrb[148].mxu1  ;;  %3580 = vmatpush1.bf16.msra.mxu0 %v4491_v6 }
 0x4b2   : > { %v2580_v18 = vadd.f32 %v2579_v13, %v5510_v55  ;;  %v2581_v22 = vpop.f32.mrb[149].mxu1  ;;  %3581 = vmatprep.subr.bf16.mxu0 %v4558_v14 }
 0x4b3   : > { %v2582_v37 = vadd.f32 %v2581_v22, %v5513_v20  ;;  %v2583_v23 = vpop.f32.mrb[150].mxu1  ;;  %4203 = vmatprep.mubr.msk.bf16.mxu0 %vm1199_vm2, %v5608_v12  ;;  %4219 = vmatprep.mubr.msk.bf16.mxu1 %vm1199_vm2, %v5608_v12 }
 0x4b4   : > { %v2584_v26 = vadd.f32 %v2583_v23, %v5510_v55  ;;  %v2585_v29 = vpop.f32.mrb[151].mxu1  ;;  %3252 = vmatmul.mubr.bf16.gmra.mrb[144].mxu0 %v5606_v11  ;;  %3445 = vmatmul.mubr.bf16.gmra.mrb[208].mxu1 %v5606_v11  ;;  %v2708_v32 = vmax.f32 %v2580_v18, 0.0 }
 0x4b5   : > { %v2586_v30 = vadd.f32 %v2585_v29, %v5513_v20  ;;  %3582 = vmatpush1.bf16.msra.mxu0 %v4492_v15  ;;  %v2709_v34 = vmax.f32 %v2582_v37, 0.0 }
 0x4b6   : > { %v2710_v33 = vmax.f32 %v2584_v26, 0.0  ;;  %3583 = vmatprep.subr.bf16.mxu0 %v4558_v14 }
 0x4b7   : > { %v2711_v35 = vmax.f32 %v2586_v30, 0.0 }
 0x4b8   : > { %v5628_v27 = vpack.c.bf16 %v2710_v33, %v2708_v32 }
 0x4b9   : > { %v5630_v28 = vpack.c.bf16 %v2711_v35, %v2709_v34  ;;  %v2589_v36 = vpop.f32.mrb[152].mxu1  ;;  %3584 = vmatpush1.bf16.msra.mxu0 %v4493_v31 }
 0x4ba   : > { %v2590_v38 = vadd.f32 %v2589_v36, %v5510_v55  ;;  %v2591_v39 = vpop.f32.mrb[153].mxu1 }
 0x4bb   : > { %v2592_v40 = vadd.f32 %v2591_v39, %v5513_v20  ;;  %v2593_v43 = vpop.f32.mrb[154].mxu1  ;;  %4204 = vmatprep.mubr.msk.bf16.mxu0 %vm1199_vm2, %v5630_v28  ;;  %4220 = vmatprep.mubr.msk.bf16.mxu1 %vm1199_vm2, %v5630_v28 }
 0x4bc   : > { %v2594_v14 = vadd.f32 %v2593_v43, %v5510_v55  ;;  %v2595_v44 = vpop.f32.mrb[155].mxu1  ;;  %3262 = vmatmul.mubr.bf16.gmra.mrb[148].mxu0 %v5628_v27  ;;  %3455 = vmatmul.mubr.bf16.gmra.mrb[212].mxu1 %v5628_v27  ;;  %v2712_v46 = vmax.f32 %v2590_v38, 0.0 }
 0x4bd   : > { %v2596_v45 = vadd.f32 %v2595_v44, %v5513_v20  ;;  %v2713_v48 = vmax.f32 %v2592_v40, 0.0 }
 0x4be   : > { %v2714_v47 = vmax.f32 %v2594_v14, 0.0 }
 0x4bf   : > { %v2715_v49 = vmax.f32 %v2596_v45, 0.0 }
 0x4c0   : > { %v5642_v50 = vpack.c.bf16 %v2714_v47, %v2712_v46 }
 0x4c1   : > { %v5644_v51 = vpack.c.bf16 %v2715_v49, %v2713_v48  ;;  %v2599_v52 = vpop.f32.mrb[156].mxu1 }
 0x4c2   : > { %v2600_v53 = vadd.f32 %v2599_v52, %v5510_v55  ;;  %v2601_v54 = vpop.f32.mrb[157].mxu1 }
 0x4c3   : > { %v2602_v21 = vadd.f32 %v2601_v54, %v5513_v20  ;;  %v2603_v56 = vpop.f32.mrb[158].mxu1  ;;  %4205 = vmatprep.mubr.msk.bf16.mxu0 %vm1199_vm2, %v5644_v51  ;;  %4221 = vmatprep.mubr.msk.bf16.mxu1 %vm1199_vm2, %v5644_v51 }
 0x4c4   : > { %v2604_v59 = vadd.f32 %v2603_v56, %v5510_v55  ;;  %v2605_v60 = vpop.f32.mrb[159].mxu1  ;;  %3272 = vmatmul.mubr.bf16.gmra.mrb[152].mxu0 %v5642_v50  ;;  %3465 = vmatmul.mubr.bf16.gmra.mrb[216].mxu1 %v5642_v50  ;;  %v2716_v62 = vmax.f32 %v2600_v53, 0.0 }
 0x4c5   : > { %v2606_v61 = vadd.f32 %v2605_v60, %v5513_v20  ;;  %v2717_v0 = vmax.f32 %v2602_v21, 0.0 }
 0x4c6   : > { %v2718_v63 = vmax.f32 %v2604_v59, 0.0 }
 0x4c7   : > { %v2719_v1 = vmax.f32 %v2606_v61, 0.0 }
 0x4c8   : > { %v5656_v2 = vpack.c.bf16 %v2718_v63, %v2716_v62 }
 0x4c9   : > { %v5658_v5 = vpack.c.bf16 %v2719_v1, %v2717_v0  ;;  %v2609_v6 = vpop.f32.mrb[160].mxu1 }
 0x4ca   : > { %v2610_v7 = vadd.f32 %v2609_v6, %v5510_v55  ;;  %v2611_v8 = vpop.f32.mrb[161].mxu1 }
 0x4cb   : > { %v2612_v9 = vadd.f32 %v2611_v8, %v5513_v20  ;;  %v2613_v10 = vpop.f32.mrb[162].mxu1  ;;  %4206 = vmatprep.mubr.msk.bf16.mxu0 %vm1199_vm2, %v5658_v5  ;;  %4222 = vmatprep.mubr.msk.bf16.mxu1 %vm1199_vm2, %v5658_v5 }
 0x4cc   : > { %v2614_v13 = vadd.f32 %v2613_v10, %v5510_v55  ;;  %v2615_v15 = vpop.f32.mrb[163].mxu1  ;;  %3282 = vmatmul.mubr.bf16.gmra.mrb[156].mxu0 %v5656_v2  ;;  %3475 = vmatmul.mubr.bf16.gmra.mrb[220].mxu1 %v5656_v2  ;;  %v2720_v22 = vmax.f32 %v2610_v7, 0.0 }
 0x4cd   : > { %v2616_v18 = vadd.f32 %v2615_v15, %v5513_v20  ;;  %v2721_v23 = vmax.f32 %v2612_v9, 0.0 }
 0x4ce   : > { %v2722_v37 = vmax.f32 %v2614_v13, 0.0 }
 0x4cf   : > { %v2723_v26 = vmax.f32 %v2616_v18, 0.0 }
 0x4d0   : > { %v5670_v29 = vpack.c.bf16 %v2722_v37, %v2720_v22 }
 0x4d1   : > { %v5672_v30 = vpack.c.bf16 %v2723_v26, %v2721_v23  ;;  %v2619_v31 = vpop.f32.mrb[164].mxu1 }
 0x4d2   : > { %v2620_v32 = vadd.f32 %v2619_v31, %v5510_v55  ;;  %v2621_v33 = vpop.f32.mrb[165].mxu1 }
 0x4d3   : > { %v2622_v34 = vadd.f32 %v2621_v33, %v5513_v20  ;;  %v2623_v35 = vpop.f32.mrb[166].mxu1  ;;  %4207 = vmatprep.mubr.msk.bf16.mxu0 %vm1199_vm2, %v5672_v30  ;;  %4223 = vmatprep.mubr.msk.bf16.mxu1 %vm1199_vm2, %v5672_v30 }
 0x4d4   : > { %v2624_v36 = vadd.f32 %v2623_v35, %v5510_v55  ;;  %v2625_v38 = vpop.f32.mrb[167].mxu1  ;;  %3292 = vmatmul.mubr.bf16.gmra.mrb[160].mxu0 %v5670_v29  ;;  %3485 = vmatmul.mubr.bf16.gmra.mrb[224].mxu1 %v5670_v29  ;;  %v2724_v40 = vmax.f32 %v2620_v32, 0.0 }
 0x4d5   : > { %v2626_v39 = vadd.f32 %v2625_v38, %v5513_v20  ;;  %v2725_v14 = vmax.f32 %v2622_v34, 0.0 }
 0x4d6   : > { %v2726_v43 = vmax.f32 %v2624_v36, 0.0 }
 0x4d7   : > { %v2727_v44 = vmax.f32 %v2626_v39, 0.0 }
 0x4d8   : > { %v5684_v45 = vpack.c.bf16 %v2726_v43, %v2724_v40 }
 0x4d9   : > { %v5686_v46 = vpack.c.bf16 %v2727_v44, %v2725_v14  ;;  %v2629_v47 = vpop.f32.mrb[168].mxu1 }
 0x4da   : > { %v2630_v48 = vadd.f32 %v2629_v47, %v5510_v55  ;;  %v2631_v49 = vpop.f32.mrb[169].mxu1 }
 0x4db   : > { %v2632_v52 = vadd.f32 %v2631_v49, %v5513_v20  ;;  %v2633_v53 = vpop.f32.mrb[170].mxu1  ;;  %4208 = vmatprep.mubr.msk.bf16.mxu0 %vm1199_vm2, %v5686_v46  ;;  %4224 = vmatprep.mubr.msk.bf16.mxu1 %vm1199_vm2, %v5686_v46 }
 0x4dc   : > { %v2634_v54 = vadd.f32 %v2633_v53, %v5510_v55  ;;  %v2635_v21 = vpop.f32.mrb[171].mxu1  ;;  %3302 = vmatmul.mubr.bf16.gmra.mrb[164].mxu0 %v5684_v45  ;;  %3495 = vmatmul.mubr.bf16.gmra.mrb[228].mxu1 %v5684_v45  ;;  %v2728_v59 = vmax.f32 %v2630_v48, 0.0 }
 0x4dd   : > { %v2636_v56 = vadd.f32 %v2635_v21, %v5513_v20  ;;  %v2729_v61 = vmax.f32 %v2632_v52, 0.0 }
 0x4de   : > { %v2730_v60 = vmax.f32 %v2634_v54, 0.0 }
 0x4df   : > { %v2731_v62 = vmax.f32 %v2636_v56, 0.0 }
 0x4e0   : > { %v5698_v63 = vpack.c.bf16 %v2730_v60, %v2728_v59 }
 0x4e1   : > { %v5700_v0 = vpack.c.bf16 %v2731_v62, %v2729_v61  ;;  %v2639_v1 = vpop.f32.mrb[172].mxu1 }
 0x4e2   : > { %v2640_v6 = vadd.f32 %v2639_v1, %v5510_v55  ;;  %v2641_v7 = vpop.f32.mrb[173].mxu1 }
 0x4e3   : > { %v2642_v8 = vadd.f32 %v2641_v7, %v5513_v20  ;;  %v2643_v9 = vpop.f32.mrb[174].mxu1  ;;  %4209 = vmatprep.mubr.msk.bf16.mxu0 %vm1199_vm2, %v5700_v0  ;;  %4225 = vmatprep.mubr.msk.bf16.mxu1 %vm1199_vm2, %v5700_v0 }
 0x4e4   : > { %v2644_v10 = vadd.f32 %v2643_v9, %v5510_v55  ;;  %v2645_v13 = vpop.f32.mrb[175].mxu1  ;;  %3312 = vmatmul.mubr.bf16.gmra.mrb[168].mxu0 %v5698_v63  ;;  %3505 = vmatmul.mubr.bf16.gmra.mrb[232].mxu1 %v5698_v63  ;;  %v2732_v18 = vmax.f32 %v2640_v6, 0.0 }
 0x4e5   : > { %v2646_v15 = vadd.f32 %v2645_v13, %v5513_v20  ;;  %v2733_v37 = vmax.f32 %v2642_v8, 0.0 }
 0x4e6   : > { %v2734_v22 = vmax.f32 %v2644_v10, 0.0 }
 0x4e7   : > { %v2735_v23 = vmax.f32 %v2646_v15, 0.0 }
 0x4e8   : > { %v5712_v26 = vpack.c.bf16 %v2734_v22, %v2732_v18 }
 0x4e9   : > { %v5714_v31 = vpack.c.bf16 %v2735_v23, %v2733_v37  ;;  %v2649_v32 = vpop.f32.mrb[176].mxu1 }
 0x4ea   : > { %v2650_v33 = vadd.f32 %v2649_v32, %v5510_v55  ;;  %v2651_v34 = vpop.f32.mrb[177].mxu1 }
 0x4eb   : > { %v2652_v35 = vadd.f32 %v2651_v34, %v5513_v20  ;;  %v2653_v36 = vpop.f32.mrb[178].mxu1  ;;  %4210 = vmatprep.mubr.msk.bf16.mxu0 %vm1199_vm2, %v5714_v31  ;;  %4226 = vmatprep.mubr.msk.bf16.mxu1 %vm1199_vm2, %v5714_v31 }
 0x4ec   : > { %v2654_v38 = vadd.f32 %v2653_v36, %v5510_v55  ;;  %v2655_v39 = vpop.f32.mrb[179].mxu1  ;;  %3322 = vmatmul.mubr.bf16.gmra.mrb[172].mxu0 %v5712_v26  ;;  %3515 = vmatmul.mubr.bf16.gmra.mrb[236].mxu1 %v5712_v26  ;;  %v2736_v43 = vmax.f32 %v2650_v33, 0.0 }
 0x4ed   : > { %v2656_v40 = vadd.f32 %v2655_v39, %v5513_v20  ;;  %v2737_v44 = vmax.f32 %v2652_v35, 0.0 }
 0x4ee   : > { %v2738_v14 = vmax.f32 %v2654_v38, 0.0 }
 0x4ef   : > { %v2739_v47 = vmax.f32 %v2656_v40, 0.0 }
 0x4f0   : > { %v5726_v48 = vpack.c.bf16 %v2738_v14, %v2736_v43 }
 0x4f1   : > { %v5728_v49 = vpack.c.bf16 %v2739_v47, %v2737_v44  ;;  %v2659_v52 = vpop.f32.mrb[180].mxu1 }
 0x4f2   : > { %v2660_v53 = vadd.f32 %v2659_v52, %v5510_v55  ;;  %v2661_v54 = vpop.f32.mrb[181].mxu1 }
 0x4f3   : > { %v2662_v21 = vadd.f32 %v2661_v54, %v5513_v20  ;;  %v2663_v56 = vpop.f32.mrb[182].mxu1  ;;  %4211 = vmatprep.mubr.msk.bf16.mxu0 %vm1199_vm2, %v5728_v49  ;;  %4227 = vmatprep.mubr.msk.bf16.mxu1 %vm1199_vm2, %v5728_v49 }
 0x4f4   : > { %v2664_v59 = vadd.f32 %v2663_v56, %v5510_v55  ;;  %v2665_v60 = vpop.f32.mrb[183].mxu1  ;;  %3332 = vmatmul.mubr.bf16.gmra.mrb[176].mxu0 %v5726_v48  ;;  %3525 = vmatmul.mubr.bf16.gmra.mrb[240].mxu1 %v5726_v48  ;;  %v2740_v62 = vmax.f32 %v2660_v53, 0.0 }
 0x4f5   : > { %v2666_v61 = vadd.f32 %v2665_v60, %v5513_v20  ;;  %v2741_v6 = vmax.f32 %v2662_v21, 0.0 }
 0x4f6   : > { %v2742_v1 = vmax.f32 %v2664_v59, 0.0 }
 0x4f7   : > { %v2743_v7 = vmax.f32 %v2666_v61, 0.0 }
 0x4f8   : > { %v5740_v8 = vpack.c.bf16 %v2742_v1, %v2740_v62 }
 0x4f9   : > { %v5742_v9 = vpack.c.bf16 %v2743_v7, %v2741_v6  ;;  %v2669_v10 = vpop.f32.mrb[184].mxu1 }
 0x4fa   : > { %v2670_v13 = vadd.f32 %v2669_v10, %v5510_v55  ;;  %v2671_v15 = vpop.f32.mrb[185].mxu1 }
 0x4fb   : > { %v2672_v18 = vadd.f32 %v2671_v15, %v5513_v20  ;;  %v2673_v22 = vpop.f32.mrb[186].mxu1  ;;  %4212 = vmatprep.mubr.msk.bf16.mxu0 %vm1199_vm2, %v5742_v9  ;;  %4228 = vmatprep.mubr.msk.bf16.mxu1 %vm1199_vm2, %v5742_v9 }
 0x4fc   : > { %v2674_v37 = vadd.f32 %v2673_v22, %v5510_v55  ;;  %v2675_v23 = vpop.f32.mrb[187].mxu1  ;;  %3342 = vmatmul.mubr.bf16.gmra.mrb[180].mxu0 %v5740_v8  ;;  %3535 = vmatmul.mubr.bf16.gmra.mrb[244].mxu1 %v5740_v8  ;;  %v2744_v33 = vmax.f32 %v2670_v13, 0.0 }
 0x4fd   : > { %v2676_v32 = vadd.f32 %v2675_v23, %v5513_v20  ;;  %v2745_v35 = vmax.f32 %v2672_v18, 0.0 }
 0x4fe   : > { %v2746_v34 = vmax.f32 %v2674_v37, 0.0 }
 0x4ff   : > { %v2747_v36 = vmax.f32 %v2676_v32, 0.0 }
 0x500   : > { %v5754_v38 = vpack.c.bf16 %v2746_v34, %v2744_v33 }
 0x501   : > { %v5756_v39 = vpack.c.bf16 %v2747_v36, %v2745_v35  ;;  %v2679_v40 = vpop.f32.mrb[188].mxu1 }
 0x502   : > { %v2680_v43 = vadd.f32 %v2679_v40, %v5510_v55  ;;  %v2681_v14 = vpop.f32.mrb[189].mxu1 }
 0x503   : > { %v2682_v44 = vadd.f32 %v2681_v14, %v5513_v20  ;;  %v2683_v47 = vpop.f32.mrb[190].mxu1  ;;  %4213 = vmatprep.mubr.msk.bf16.mxu0 %vm1199_vm2, %v5756_v39  ;;  %4229 = vmatprep.mubr.msk.bf16.mxu1 %vm1199_vm2, %v5756_v39 }
 0x504   : > { %v2684_v52 = vadd.f32 %v2683_v47, %v5510_v55  ;;  %v2685_v53 = vpop.f32.mrb[191].mxu1  ;;  %3352 = vmatmul.mubr.bf16.gmra.mrb[184].mxu0 %v5754_v38  ;;  %3545 = vmatmul.mubr.bf16.gmra.mrb[248].mxu1 %v5754_v38  ;;  %v2748_v21 = vmax.f32 %v2680_v43, 0.0  ;;  %v2856_v55 = vsub.s32 2, %v4903_v16 }
 0x505   : > { %v2686_v54 = vadd.f32 %v2685_v53, %v5513_v20  ;;  %v2749_v59 = vmax.f32 %v2682_v44, 0.0  ;;  %v5815_v20 = vld [vmem:[%s6283_s12] sm:$0x1f] }
 0x506   : > { %v2750_v56 = vmax.f32 %v2684_v52, 0.0 }
 0x507   : > { %v2751_v60 = vmax.f32 %v2686_v54, 0.0 }
 0x508   : > { %v5768_v61 = vpack.c.bf16 %v2750_v56, %v2748_v21 }
 0x509   : > { %v5770_v62 = vpack.c.bf16 %v2751_v60, %v2749_v59 }
 0x50b   : > { %4214 = vmatprep.mubr.msk.bf16.mxu0 %vm1199_vm2, %v5770_v62  ;;  %4230 = vmatprep.mubr.msk.bf16.mxu1 %vm1199_vm2, %v5770_v62 }
 0x50c   : > { %3362 = vmatmul.mubr.bf16.gmra.mrb[188].mxu0 %v5768_v61  ;;  %3555 = vmatmul.mubr.bf16.gmra.mrb[252].mxu1 %v5768_v61 }
 0x50d   : > { %4231 = vmatprep.mubr.msk.bf16.mxu0 %vm1199_vm2, %v5521_v4  ;;  %v5823_v4 = vrot.slane %v5815_v20, %v4906_v17 }
 0x514   : > { %3598 = vmatmul.mubr.bf16.vlgmr.msra.gmra.mrb[192].mxu0 %v5519_v3  ;;  %v2860_v3 = vsub.s32 3, %v4903_v16 }
 0x515   : > { %4232 = vmatprep.mubr.msk.bf16.mxu0 %vm1199_vm2, %v5542_v25  ;;  %v5832_v25 = vrot.slane %v5815_v20, %v4912_v19 }
 0x51c   : > { %3606 = vmatmul.mubr.bf16.gmra.mrb[196].mxu0 %v5540_v24  ;;  %v5826_v24 = vrot.slane %v5815_v20, %v2856_v55 }
 0x51d   : > { %4233 = vmatprep.mubr.msk.bf16.mxu0 %vm1199_vm2, %v5564_v42 }
 0x524   : > { %3614 = vmatmul.mubr.bf16.gmra.mrb[200].mxu0 %v5562_v41  ;;  %v5835_v41 = vrot.slane %v5815_v20, %v2860_v3 }
 0x525   : > { %4234 = vmatprep.mubr.msk.bf16.mxu0 %vm1199_vm2, %v5586_v58 }
 0x52c   : > { %3622 = vmatmul.mubr.bf16.gmra.mrb[204].mxu0 %v5584_v57 }
 0x52d   : > { %4235 = vmatprep.mubr.msk.bf16.mxu0 %vm1199_vm2, %v5608_v12 }
 0x534   : > { %3630 = vmatmul.mubr.bf16.gmra.mrb[208].mxu0 %v5606_v11 }
 0x535   : > { %4236 = vmatprep.mubr.msk.bf16.mxu0 %vm1199_vm2, %v5630_v28 }
 0x53c   : > { %3638 = vmatmul.mubr.bf16.gmra.mrb[212].mxu0 %v5628_v27 }
 0x53d   : > { %4237 = vmatprep.mubr.msk.bf16.mxu0 %vm1199_vm2, %v5644_v51 }
 0x544   : > { %3646 = vmatmul.mubr.bf16.gmra.mrb[216].mxu0 %v5642_v50 }
 0x545   : > { %4238 = vmatprep.mubr.msk.bf16.mxu0 %vm1199_vm2, %v5658_v5 }
 0x54c   : > { %3654 = vmatmul.mubr.bf16.gmra.mrb[220].mxu0 %v5656_v2 }
 0x54d   : > { %4239 = vmatprep.mubr.msk.bf16.mxu0 %vm1199_vm2, %v5672_v30 }
 0x554   : > { %3662 = vmatmul.mubr.bf16.gmra.mrb[224].mxu0 %v5670_v29 }
 0x555   : > { %4240 = vmatprep.mubr.msk.bf16.mxu0 %vm1199_vm2, %v5686_v46 }
 0x55c   : > { %3670 = vmatmul.mubr.bf16.gmra.mrb[228].mxu0 %v5684_v45 }
 0x55d   : > { %4241 = vmatprep.mubr.msk.bf16.mxu0 %vm1199_vm2, %v5700_v0 }
 0x564   : > { %3678 = vmatmul.mubr.bf16.gmra.mrb[232].mxu0 %v5698_v63 }
 0x565   : > { %4242 = vmatprep.mubr.msk.bf16.mxu0 %vm1199_vm2, %v5714_v31 }
 0x567   : > { %v3213_v42 = vpop.f32.mrb[128].mxu0  ;;  %v3406_v57 = vpop.f32.mrb[192].mxu1 }
 0x568   : > { %v3214_v58 = vadd.f32 %v3213_v42, %v5823_v4  ;;  %v3407_v17 = vadd.f32 %v3406_v57, %v5826_v24  ;;  %v3215_v11 = vpop.f32.mrb[129].mxu0  ;;  %v3408_v12 = vpop.f32.mrb[193].mxu1 }
 0x569   : > { %v3216_v27 = vadd.f32 %v3215_v11, %v5832_v25  ;;  %v3409_v28 = vadd.f32 %v3408_v12, %v5835_v41  ;;  %v3217_v50 = vpop.f32.mrb[130].mxu0  ;;  %v3410_v51 = vpop.f32.mrb[194].mxu1 }
 0x56a   : > { %3726 = vst [vmem:[%s5841_s17] sm:$0xff] %v3214_v58  ;;  %3728 = vst [vmem:[%s5841_s17 + $0x10] sm:$0xff] %v3407_v17  ;;  %v3218_v19 = vadd.f32 %v3217_v50, %v5823_v4  ;;  %v3411_v2 = vadd.f32 %v3410_v51, %v5826_v24  ;;  %v3219_v5 = vpop.f32.mrb[131].mxu0  ;;  %v3412_v29 = vpop.f32.mrb[195].mxu1 }
 0x56b   : > { %3727 = vst [vmem:[%s5841_s17 + $0x8] sm:$0xff] %v3216_v27  ;;  %3729 = vst [vmem:[%s5841_s17 + $0x18] sm:$0xff] %v3409_v28  ;;  %v3220_v30 = vadd.f32 %v3219_v5, %v5832_v25  ;;  %v3413_v45 = vadd.f32 %v3412_v29, %v5835_v41 }
 0x56c   : > { %3732 = vst [vmem:[%s5841_s17 + $0x28] sm:$0xff] %v3218_v19  ;;  %3734 = vst [vmem:[%s5841_s17 + $0x38] sm:$0xff] %v3411_v2  ;;  %3686 = vmatmul.mubr.bf16.gmra.mrb[236].mxu0 %v5712_v26 }
 0x56d   : > { %3733 = vst [vmem:[%s5841_s17 + $0x30] sm:$0xff] %v3220_v30  ;;  %3735 = vst [vmem:[%s5841_s17 + $0x40] sm:$0xff] %v3413_v45  ;;  %4243 = vmatprep.mubr.msk.bf16.mxu0 %vm1199_vm2, %v5728_v49 }
 0x56f   : > { %v3223_v46 = vpop.f32.mrb[132].mxu0  ;;  %v3416_v63 = vpop.f32.mrb[196].mxu1 }
 0x570   : > { %v3224_v0 = vadd.f32 %v3223_v46, %v5823_v4  ;;  %v3417_v31 = vadd.f32 %v3416_v63, %v5826_v24  ;;  %v3225_v1 = vpop.f32.mrb[133].mxu0  ;;  %v3418_v6 = vpop.f32.mrb[197].mxu1 }
 0x571   : > { %v3226_v7 = vadd.f32 %v3225_v1, %v5832_v25  ;;  %v3419_v26 = vadd.f32 %v3418_v6, %v5835_v41  ;;  %v3227_v10 = vpop.f32.mrb[134].mxu0  ;;  %v3420_v49 = vpop.f32.mrb[198].mxu1 }
 0x572   : > { %3737 = vst [vmem:[%s5841_s17 + $0x50] sm:$0xff] %v3224_v0  ;;  %3739 = vst [vmem:[%s5841_s17 + $0x60] sm:$0xff] %v3417_v31  ;;  %v3228_v13 = vadd.f32 %v3227_v10, %v5823_v4  ;;  %v3421_v15 = vadd.f32 %v3420_v49, %v5826_v24  ;;  %v3229_v18 = vpop.f32.mrb[135].mxu0  ;;  %v3422_v22 = vpop.f32.mrb[199].mxu1 }
 0x573   : > { %3738 = vst [vmem:[%s5841_s17 + $0x58] sm:$0xff] %v3226_v7  ;;  %3740 = vst [vmem:[%s5841_s17 + $0x68] sm:$0xff] %v3419_v26  ;;  %v3230_v37 = vadd.f32 %v3229_v18, %v5832_v25  ;;  %v3423_v23 = vadd.f32 %v3422_v22, %v5835_v41 }
 0x574   : > { %3742 = vst [vmem:[%s5841_s17 + $0x78] sm:$0xff] %v3228_v13  ;;  %3744 = vst [vmem:[%s5841_s17 + $0x88] sm:$0xff] %v3421_v15  ;;  %3694 = vmatmul.mubr.bf16.gmra.mrb[240].mxu0 %v5726_v48 }
 0x575   : > { %3743 = vst [vmem:[%s5841_s17 + $0x80] sm:$0xff] %v3230_v37  ;;  %3745 = vst [vmem:[%s5841_s17 + $0x90] sm:$0xff] %v3423_v23  ;;  %4244 = vmatprep.mubr.msk.bf16.mxu0 %vm1199_vm2, %v5742_v9 }
 0x577   : > { %v3233_v32 = vpop.f32.mrb[136].mxu0  ;;  %v3426_v33 = vpop.f32.mrb[200].mxu1 }
 0x578   : > { %v3234_v34 = vadd.f32 %v3233_v32, %v5823_v4  ;;  %v3427_v35 = vadd.f32 %v3426_v33, %v5826_v24  ;;  %v3235_v36 = vpop.f32.mrb[137].mxu0  ;;  %v3428_v40 = vpop.f32.mrb[201].mxu1 }
 0x579   : > { %v3236_v43 = vadd.f32 %v3235_v36, %v5832_v25  ;;  %v3429_v48 = vadd.f32 %v3428_v40, %v5835_v41  ;;  %v3237_v14 = vpop.f32.mrb[138].mxu0  ;;  %v3430_v9 = vpop.f32.mrb[202].mxu1 }
 0x57a   : > { %3747 = vst [vmem:[%s5841_s17 + $0xa0] sm:$0xff] %v3234_v34  ;;  %3749 = vst [vmem:[%s5841_s17 + $0xb0] sm:$0xff] %v3427_v35  ;;  %v3238_v44 = vadd.f32 %v3237_v14, %v5823_v4  ;;  %v3431_v47 = vadd.f32 %v3430_v9, %v5826_v24  ;;  %v3239_v52 = vpop.f32.mrb[139].mxu0  ;;  %v3432_v53 = vpop.f32.mrb[203].mxu1 }
 0x57b   : > { %3748 = vst [vmem:[%s5841_s17 + $0xa8] sm:$0xff] %v3236_v43  ;;  %3750 = vst [vmem:[%s5841_s17 + $0xb8] sm:$0xff] %v3429_v48  ;;  %v3240_v54 = vadd.f32 %v3239_v52, %v5832_v25  ;;  %v3433_v21 = vadd.f32 %v3432_v53, %v5835_v41 }
 0x57c   : > { %3752 = vst [vmem:[%s5841_s17 + $0xc8] sm:$0xff] %v3238_v44  ;;  %3754 = vst [vmem:[%s5841_s17 + $0xd8] sm:$0xff] %v3431_v47  ;;  %3702 = vmatmul.mubr.bf16.gmra.mrb[244].mxu0 %v5740_v8 }
 0x57d   : > { %3753 = vst [vmem:[%s5841_s17 + $0xd0] sm:$0xff] %v3240_v54  ;;  %3755 = vst [vmem:[%s5841_s17 + $0xe0] sm:$0xff] %v3433_v21  ;;  %4245 = vmatprep.mubr.msk.bf16.mxu0 %vm1199_vm2, %v5756_v39 }
 0x57f   : > { %v3243_v56 = vpop.f32.mrb[140].mxu0  ;;  %v3436_v59 = vpop.f32.mrb[204].mxu1 }
 0x580   : > { %v3244_v60 = vadd.f32 %v3243_v56, %v5823_v4  ;;  %v3437_v55 = vadd.f32 %v3436_v59, %v5826_v24  ;;  %v3245_v3 = vpop.f32.mrb[141].mxu0  ;;  %v3438_v42 = vpop.f32.mrb[205].mxu1 }
 0x581   : > { %v3246_v57 = vadd.f32 %v3245_v3, %v5832_v25  ;;  %v3439_v8 = vadd.f32 %v3438_v42, %v5835_v41  ;;  %v3247_v58 = vpop.f32.mrb[142].mxu0  ;;  %v3440_v39 = vpop.f32.mrb[206].mxu1 }
 0x582   : > { %3757 = vst [vmem:[%s5841_s17 + $0xf0] sm:$0xff] %v3244_v60  ;;  %3759 = vst [vmem:[%s5841_s17 + $0x100] sm:$0xff] %v3437_v55  ;;  %v3248_v17 = vadd.f32 %v3247_v58, %v5823_v4  ;;  %v3441_v11 = vadd.f32 %v3440_v39, %v5826_v24  ;;  %v3249_v12 = vpop.f32.mrb[143].mxu0  ;;  %v3442_v27 = vpop.f32.mrb[207].mxu1 }
 0x583   : > { %3758 = vst [vmem:[%s5841_s17 + $0xf8] sm:$0xff] %v3246_v57  ;;  %3760 = vst [vmem:[%s5841_s17 + $0x108] sm:$0xff] %v3439_v8  ;;  %v3250_v28 = vadd.f32 %v3249_v12, %v5832_v25  ;;  %v3443_v50 = vadd.f32 %v3442_v27, %v5835_v41 }
 0x584   : > { %3762 = vst [vmem:[%s5841_s17 + $0x118] sm:$0xff] %v3248_v17  ;;  %3764 = vst [vmem:[%s5841_s17 + $0x128] sm:$0xff] %v3441_v11  ;;  %3710 = vmatmul.mubr.bf16.gmra.mrb[248].mxu0 %v5754_v38 }
 0x585   : > { %3763 = vst [vmem:[%s5841_s17 + $0x120] sm:$0xff] %v3250_v28  ;;  %3765 = vst [vmem:[%s5841_s17 + $0x130] sm:$0xff] %v3443_v50  ;;  %4246 = vmatprep.mubr.msk.bf16.mxu0 %vm1199_vm2, %v5770_v62 }
 0x587   : > { %v3253_v51 = vpop.f32.mrb[144].mxu0  ;;  %v3446_v19 = vpop.f32.mrb[208].mxu1 }
 0x588   : > { %v3254_v2 = vadd.f32 %v3253_v51, %v5823_v4  ;;  %v3447_v5 = vadd.f32 %v3446_v19, %v5826_v24  ;;  %v3255_v29 = vpop.f32.mrb[145].mxu0  ;;  %v3448_v30 = vpop.f32.mrb[209].mxu1 }
 0x589   : > { %v3256_v45 = vadd.f32 %v3255_v29, %v5832_v25  ;;  %v3449_v38 = vadd.f32 %v3448_v30, %v5835_v41  ;;  %v3257_v46 = vpop.f32.mrb[146].mxu0  ;;  %v3450_v62 = vpop.f32.mrb[210].mxu1 }
 0x58a   : > { %3767 = vst [vmem:[%s5841_s17 + $0x140] sm:$0xff] %v3254_v2  ;;  %3769 = vst [vmem:[%s5841_s17 + $0x150] sm:$0xff] %v3447_v5  ;;  %v3258_v63 = vadd.f32 %v3257_v46, %v5823_v4  ;;  %v3451_v0 = vadd.f32 %v3450_v62, %v5826_v24  ;;  %v3259_v31 = vpop.f32.mrb[147].mxu0  ;;  %v3452_v1 = vpop.f32.mrb[211].mxu1 }
 0x58b   : > { %3768 = vst [vmem:[%s5841_s17 + $0x148] sm:$0xff] %v3256_v45  ;;  %3770 = vst [vmem:[%s5841_s17 + $0x158] sm:$0xff] %v3449_v38  ;;  %v3260_v6 = vadd.f32 %v3259_v31, %v5832_v25  ;;  %v3453_v7 = vadd.f32 %v3452_v1, %v5835_v41 }
 0x58c   : > { %3772 = vst [vmem:[%s5841_s17 + $0x168] sm:$0xff] %v3258_v63  ;;  %3774 = vst [vmem:[%s5841_s17 + $0x178] sm:$0xff] %v3451_v0  ;;  %3718 = vmatmul.mubr.bf16.gmra.mrb[252].mxu0 %v5768_v61 }
 0x58d   : > { %3773 = vst [vmem:[%s5841_s17 + $0x170] sm:$0xff] %v3260_v6  ;;  %3775 = vst [vmem:[%s5841_s17 + $0x180] sm:$0xff] %v3453_v7 }
 0x58f   : > { %v3263_v26 = vpop.f32.mrb[148].mxu0  ;;  %v3456_v10 = vpop.f32.mrb[212].mxu1 }
 0x590   : > { %v3264_v49 = vadd.f32 %v3263_v26, %v5823_v4  ;;  %v3457_v13 = vadd.f32 %v3456_v10, %v5826_v24  ;;  %v3265_v15 = vpop.f32.mrb[149].mxu0  ;;  %v3458_v18 = vpop.f32.mrb[213].mxu1 }
 0x591   : > { %v3266_v22 = vadd.f32 %v3265_v15, %v5832_v25  ;;  %v3459_v37 = vadd.f32 %v3458_v18, %v5835_v41  ;;  %v3267_v61 = vpop.f32.mrb[150].mxu0  ;;  %v3460_v23 = vpop.f32.mrb[214].mxu1 }
 0x592   : > { %3777 = vst [vmem:[%s5841_s17 + $0x190] sm:$0xff] %v3264_v49  ;;  %3779 = vst [vmem:[%s5841_s17 + $0x1a0] sm:$0xff] %v3457_v13  ;;  %v3268_v32 = vadd.f32 %v3267_v61, %v5823_v4  ;;  %v3461_v33 = vadd.f32 %v3460_v23, %v5826_v24  ;;  %v3269_v34 = vpop.f32.mrb[151].mxu0  ;;  %v3462_v35 = vpop.f32.mrb[215].mxu1 }
 0x593   : > { %3778 = vst [vmem:[%s5841_s17 + $0x198] sm:$0xff] %v3266_v22  ;;  %3780 = vst [vmem:[%s5841_s17 + $0x1a8] sm:$0xff] %v3459_v37  ;;  %v3270_v36 = vadd.f32 %v3269_v34, %v5832_v25  ;;  %v3463_v40 = vadd.f32 %v3462_v35, %v5835_v41 }
 0x594   : > { %3782 = vst [vmem:[%s5841_s17 + $0x1b8] sm:$0xff] %v3268_v32  ;;  %3784 = vst [vmem:[%s5841_s17 + $0x1c8] sm:$0xff] %v3461_v33 }
 0x595   : > { %3783 = vst [vmem:[%s5841_s17 + $0x1c0] sm:$0xff] %v3270_v36  ;;  %3785 = vst [vmem:[%s5841_s17 + $0x1d0] sm:$0xff] %v3463_v40 }
 0x597   : > { %v3273_v43 = vpop.f32.mrb[152].mxu0  ;;  %v3466_v48 = vpop.f32.mrb[216].mxu1 }
 0x598   : > { %v3274_v14 = vadd.f32 %v3273_v43, %v5823_v4  ;;  %v3467_v9 = vadd.f32 %v3466_v48, %v5826_v24  ;;  %v3275_v44 = vpop.f32.mrb[153].mxu0  ;;  %v3468_v47 = vpop.f32.mrb[217].mxu1 }
 0x599   : > { %v3276_v52 = vadd.f32 %v3275_v44, %v5832_v25  ;;  %v3469_v53 = vadd.f32 %v3468_v47, %v5835_v41  ;;  %v3277_v54 = vpop.f32.mrb[154].mxu0  ;;  %v3470_v21 = vpop.f32.mrb[218].mxu1 }
 0x59a   : > { %3787 = vst [vmem:[%s5841_s17 + $0x1e0] sm:$0xff] %v3274_v14  ;;  %3789 = vst [vmem:[%s5841_s17 + $0x1f0] sm:$0xff] %v3467_v9  ;;  %v3278_v56 = vadd.f32 %v3277_v54, %v5823_v4  ;;  %v3471_v59 = vadd.f32 %v3470_v21, %v5826_v24  ;;  %v3279_v60 = vpop.f32.mrb[155].mxu0  ;;  %v3472_v55 = vpop.f32.mrb[219].mxu1 }
 0x59b   : > { %3788 = vst [vmem:[%s5841_s17 + $0x1e8] sm:$0xff] %v3276_v52  ;;  %3790 = vst [vmem:[%s5841_s17 + $0x1f8] sm:$0xff] %v3469_v53  ;;  %v3280_v3 = vadd.f32 %v3279_v60, %v5832_v25  ;;  %v3473_v42 = vadd.f32 %v3472_v55, %v5835_v41 }
 0x59c   : > { %3792 = vst [vmem:[%s5841_s17 + $0x208] sm:$0xff] %v3278_v56  ;;  %3794 = vst [vmem:[%s5841_s17 + $0x218] sm:$0xff] %v3471_v59 }
 0x59d   : > { %3793 = vst [vmem:[%s5841_s17 + $0x210] sm:$0xff] %v3280_v3  ;;  %3795 = vst [vmem:[%s5841_s17 + $0x220] sm:$0xff] %v3473_v42 }
 0x59f   : > { %v3283_v57 = vpop.f32.mrb[156].mxu0  ;;  %v3476_v8 = vpop.f32.mrb[220].mxu1 }
 0x5a0   : > { %v3284_v58 = vadd.f32 %v3283_v57, %v5823_v4  ;;  %v3477_v39 = vadd.f32 %v3476_v8, %v5826_v24  ;;  %v3285_v17 = vpop.f32.mrb[157].mxu0  ;;  %v3478_v11 = vpop.f32.mrb[221].mxu1 }
 0x5a1   : > { %v3286_v12 = vadd.f32 %v3285_v17, %v5832_v25  ;;  %v3479_v27 = vadd.f32 %v3478_v11, %v5835_v41  ;;  %v3287_v28 = vpop.f32.mrb[158].mxu0  ;;  %v3480_v50 = vpop.f32.mrb[222].mxu1 }
 0x5a2   : > { %3797 = vst [vmem:[%s5841_s17 + $0x230] sm:$0xff] %v3284_v58  ;;  %3799 = vst [vmem:[%s5841_s17 + $0x240] sm:$0xff] %v3477_v39  ;;  %v3288_v51 = vadd.f32 %v3287_v28, %v5823_v4  ;;  %v3481_v19 = vadd.f32 %v3480_v50, %v5826_v24  ;;  %v3289_v2 = vpop.f32.mrb[159].mxu0  ;;  %v3482_v5 = vpop.f32.mrb[223].mxu1 }
 0x5a3   : > { %3798 = vst [vmem:[%s5841_s17 + $0x238] sm:$0xff] %v3286_v12  ;;  %3800 = vst [vmem:[%s5841_s17 + $0x248] sm:$0xff] %v3479_v27  ;;  %v3290_v29 = vadd.f32 %v3289_v2, %v5832_v25  ;;  %v3483_v30 = vadd.f32 %v3482_v5, %v5835_v41 }
 0x5a4   : > { %3802 = vst [vmem:[%s5841_s17 + $0x258] sm:$0xff] %v3288_v51  ;;  %3804 = vst [vmem:[%s5841_s17 + $0x268] sm:$0xff] %v3481_v19 }
 0x5a5   : > { %3803 = vst [vmem:[%s5841_s17 + $0x260] sm:$0xff] %v3290_v29  ;;  %3805 = vst [vmem:[%s5841_s17 + $0x270] sm:$0xff] %v3483_v30 }
 0x5a7   : > { %v3293_v45 = vpop.f32.mrb[160].mxu0  ;;  %v3486_v38 = vpop.f32.mrb[224].mxu1 }
 0x5a8   : > { %v3294_v46 = vadd.f32 %v3293_v45, %v5823_v4  ;;  %v3487_v62 = vadd.f32 %v3486_v38, %v5826_v24  ;;  %v3295_v63 = vpop.f32.mrb[161].mxu0  ;;  %v3488_v0 = vpop.f32.mrb[225].mxu1 }
 0x5a9   : > { %v3296_v31 = vadd.f32 %v3295_v63, %v5832_v25  ;;  %v3489_v1 = vadd.f32 %v3488_v0, %v5835_v41  ;;  %v3297_v6 = vpop.f32.mrb[162].mxu0  ;;  %v3490_v7 = vpop.f32.mrb[226].mxu1 }
 0x5aa   : > { %3807 = vst [vmem:[%s5841_s17 + $0x280] sm:$0xff] %v3294_v46  ;;  %3809 = vst [vmem:[%s5841_s17 + $0x290] sm:$0xff] %v3487_v62  ;;  %v3298_v26 = vadd.f32 %v3297_v6, %v5823_v4  ;;  %v3491_v10 = vadd.f32 %v3490_v7, %v5826_v24  ;;  %v3299_v49 = vpop.f32.mrb[163].mxu0  ;;  %v3492_v13 = vpop.f32.mrb[227].mxu1 }
 0x5ab   : > { %3808 = vst [vmem:[%s5841_s17 + $0x288] sm:$0xff] %v3296_v31  ;;  %3810 = vst [vmem:[%s5841_s17 + $0x298] sm:$0xff] %v3489_v1  ;;  %v3300_v15 = vadd.f32 %v3299_v49, %v5832_v25  ;;  %v3493_v18 = vadd.f32 %v3492_v13, %v5835_v41 }
 0x5ac   : > { %3812 = vst [vmem:[%s5841_s17 + $0x2a8] sm:$0xff] %v3298_v26  ;;  %3814 = vst [vmem:[%s5841_s17 + $0x2b8] sm:$0xff] %v3491_v10 }
 0x5ad   : > { %3813 = vst [vmem:[%s5841_s17 + $0x2b0] sm:$0xff] %v3300_v15  ;;  %3815 = vst [vmem:[%s5841_s17 + $0x2c0] sm:$0xff] %v3493_v18 }
 0x5af   : > { %v3303_v22 = vpop.f32.mrb[164].mxu0  ;;  %v3496_v37 = vpop.f32.mrb[228].mxu1 }
 0x5b0   : > { %v3304_v61 = vadd.f32 %v3303_v22, %v5823_v4  ;;  %v3497_v23 = vadd.f32 %v3496_v37, %v5826_v24  ;;  %v3305_v32 = vpop.f32.mrb[165].mxu0  ;;  %v3498_v33 = vpop.f32.mrb[229].mxu1 }
 0x5b1   : > { %v3306_v34 = vadd.f32 %v3305_v32, %v5832_v25  ;;  %v3499_v35 = vadd.f32 %v3498_v33, %v5835_v41  ;;  %v3307_v36 = vpop.f32.mrb[166].mxu0  ;;  %v3500_v40 = vpop.f32.mrb[230].mxu1 }
 0x5b2   : > { %3817 = vst [vmem:[%s5841_s17 + $0x2d0] sm:$0xff] %v3304_v61  ;;  %3819 = vst [vmem:[%s5841_s17 + $0x2e0] sm:$0xff] %v3497_v23  ;;  %v3308_v43 = vadd.f32 %v3307_v36, %v5823_v4  ;;  %v3501_v48 = vadd.f32 %v3500_v40, %v5826_v24  ;;  %v3309_v14 = vpop.f32.mrb[167].mxu0  ;;  %v3502_v9 = vpop.f32.mrb[231].mxu1 }
 0x5b3   : > { %3818 = vst [vmem:[%s5841_s17 + $0x2d8] sm:$0xff] %v3306_v34  ;;  %3820 = vst [vmem:[%s5841_s17 + $0x2e8] sm:$0xff] %v3499_v35  ;;  %v3310_v44 = vadd.f32 %v3309_v14, %v5832_v25  ;;  %v3503_v47 = vadd.f32 %v3502_v9, %v5835_v41 }
 0x5b4   : > { %3822 = vst [vmem:[%s5841_s17 + $0x2f8] sm:$0xff] %v3308_v43  ;;  %3824 = vst [vmem:[%s5841_s17 + $0x308] sm:$0xff] %v3501_v48 }
 0x5b5   : > { %3823 = vst [vmem:[%s5841_s17 + $0x300] sm:$0xff] %v3310_v44  ;;  %3825 = vst [vmem:[%s5841_s17 + $0x310] sm:$0xff] %v3503_v47 }
 0x5b7   : > { %v3313_v52 = vpop.f32.mrb[168].mxu0  ;;  %v3506_v53 = vpop.f32.mrb[232].mxu1 }
 0x5b8   : > { %v3314_v54 = vadd.f32 %v3313_v52, %v5823_v4  ;;  %v3507_v21 = vadd.f32 %v3506_v53, %v5826_v24  ;;  %v3315_v56 = vpop.f32.mrb[169].mxu0  ;;  %v3508_v59 = vpop.f32.mrb[233].mxu1 }
 0x5b9   : > { %v3316_v60 = vadd.f32 %v3315_v56, %v5832_v25  ;;  %v3509_v55 = vadd.f32 %v3508_v59, %v5835_v41  ;;  %v3317_v3 = vpop.f32.mrb[170].mxu0  ;;  %v3510_v42 = vpop.f32.mrb[234].mxu1 }
 0x5ba   : > { %3827 = vst [vmem:[%s5841_s17 + $0x320] sm:$0xff] %v3314_v54  ;;  %3829 = vst [vmem:[%s5841_s17 + $0x330] sm:$0xff] %v3507_v21  ;;  %v3318_v57 = vadd.f32 %v3317_v3, %v5823_v4  ;;  %v3511_v8 = vadd.f32 %v3510_v42, %v5826_v24  ;;  %v3319_v58 = vpop.f32.mrb[171].mxu0  ;;  %v3512_v39 = vpop.f32.mrb[235].mxu1 }
 0x5bb   : > { %3828 = vst [vmem:[%s5841_s17 + $0x328] sm:$0xff] %v3316_v60  ;;  %3830 = vst [vmem:[%s5841_s17 + $0x338] sm:$0xff] %v3509_v55  ;;  %v3320_v17 = vadd.f32 %v3319_v58, %v5832_v25  ;;  %v3513_v11 = vadd.f32 %v3512_v39, %v5835_v41 }
 0x5bc   : > { %3832 = vst [vmem:[%s5841_s17 + $0x348] sm:$0xff] %v3318_v57  ;;  %3834 = vst [vmem:[%s5841_s17 + $0x358] sm:$0xff] %v3511_v8 }
 0x5bd   : > { %3833 = vst [vmem:[%s5841_s17 + $0x350] sm:$0xff] %v3320_v17  ;;  %3835 = vst [vmem:[%s5841_s17 + $0x360] sm:$0xff] %v3513_v11 }
 0x5bf   : > { %v3323_v12 = vpop.f32.mrb[172].mxu0  ;;  %v3516_v27 = vpop.f32.mrb[236].mxu1 }
 0x5c0   : > { %v3324_v28 = vadd.f32 %v3323_v12, %v5823_v4  ;;  %v3517_v50 = vadd.f32 %v3516_v27, %v5826_v24  ;;  %v3325_v51 = vpop.f32.mrb[173].mxu0  ;;  %v3518_v19 = vpop.f32.mrb[237].mxu1 }
 0x5c1   : > { %v3326_v2 = vadd.f32 %v3325_v51, %v5832_v25  ;;  %v3519_v5 = vadd.f32 %v3518_v19, %v5835_v41  ;;  %v3327_v29 = vpop.f32.mrb[174].mxu0  ;;  %v3520_v30 = vpop.f32.mrb[238].mxu1 }
 0x5c2   : > { %3837 = vst [vmem:[%s5841_s17 + $0x370] sm:$0xff] %v3324_v28  ;;  %3839 = vst [vmem:[%s5841_s17 + $0x380] sm:$0xff] %v3517_v50  ;;  %v3328_v45 = vadd.f32 %v3327_v29, %v5823_v4  ;;  %v3521_v38 = vadd.f32 %v3520_v30, %v5826_v24  ;;  %v3329_v46 = vpop.f32.mrb[175].mxu0  ;;  %v3522_v62 = vpop.f32.mrb[239].mxu1 }
 0x5c3   : > { %3838 = vst [vmem:[%s5841_s17 + $0x378] sm:$0xff] %v3326_v2  ;;  %3840 = vst [vmem:[%s5841_s17 + $0x388] sm:$0xff] %v3519_v5  ;;  %v3330_v63 = vadd.f32 %v3329_v46, %v5832_v25  ;;  %v3523_v0 = vadd.f32 %v3522_v62, %v5835_v41  ;;  %v2864_v46 = vsub.s32 4, %v4903_v16 }
 0x5c4   : > { %3842 = vst [vmem:[%s5841_s17 + $0x398] sm:$0xff] %v3328_v45  ;;  %3844 = vst [vmem:[%s5841_s17 + $0x3a8] sm:$0xff] %v3521_v38 }
 0x5c5   : > { %3843 = vst [vmem:[%s5841_s17 + $0x3a0] sm:$0xff] %v3330_v63  ;;  %3845 = vst [vmem:[%s5841_s17 + $0x3b0] sm:$0xff] %v3523_v0 }
 0x5c7   : > { %v3333_v31 = vpop.f32.mrb[176].mxu0  ;;  %v3526_v1 = vpop.f32.mrb[240].mxu1 }
 0x5c8   : > { %v3334_v6 = vadd.f32 %v3333_v31, %v5823_v4  ;;  %v3527_v7 = vadd.f32 %v3526_v1, %v5826_v24  ;;  %v3335_v26 = vpop.f32.mrb[177].mxu0  ;;  %v3528_v10 = vpop.f32.mrb[241].mxu1 }
 0x5c9   : > { %v3336_v49 = vadd.f32 %v3335_v26, %v5832_v25  ;;  %v3529_v13 = vadd.f32 %v3528_v10, %v5835_v41  ;;  %v3337_v15 = vpop.f32.mrb[178].mxu0  ;;  %v3530_v18 = vpop.f32.mrb[242].mxu1 }
 0x5ca   : > { %3847 = vst [vmem:[%s5841_s17 + $0x3c0] sm:$0xff] %v3334_v6  ;;  %3849 = vst [vmem:[%s5841_s17 + $0x3d0] sm:$0xff] %v3527_v7  ;;  %v3338_v22 = vadd.f32 %v3337_v15, %v5823_v4  ;;  %v3531_v37 = vadd.f32 %v3530_v18, %v5826_v24  ;;  %v3339_v61 = vpop.f32.mrb[179].mxu0  ;;  %v3532_v23 = vpop.f32.mrb[243].mxu1 }
 0x5cb   : > { %3848 = vst [vmem:[%s5841_s17 + $0x3c8] sm:$0xff] %v3336_v49  ;;  %3850 = vst [vmem:[%s5841_s17 + $0x3d8] sm:$0xff] %v3529_v13  ;;  %v3340_v32 = vadd.f32 %v3339_v61, %v5832_v25  ;;  %v3533_v33 = vadd.f32 %v3532_v23, %v5835_v41  ;;  %v6108_v49 = vrot.slane %v5815_v20, %v2864_v46 }
 0x5cc   : > { %3852 = vst [vmem:[%s5841_s17 + $0x3e8] sm:$0xff] %v3338_v22  ;;  %3854 = vst [vmem:[%s5841_s17 + $0x3f8] sm:$0xff] %v3531_v37 }
 0x5cd   : > { %3853 = vst [vmem:[%s5841_s17 + $0x3f0] sm:$0xff] %v3340_v32  ;;  %3855 = vst [vmem:[%s5841_s17 + $0x400] sm:$0xff] %v3533_v33 }
 0x5cf   : > { %v3343_v34 = vpop.f32.mrb[180].mxu0  ;;  %v3536_v35 = vpop.f32.mrb[244].mxu1 }
 0x5d0   : > { %v3344_v36 = vadd.f32 %v3343_v34, %v5823_v4  ;;  %v3537_v40 = vadd.f32 %v3536_v35, %v5826_v24  ;;  %v3345_v43 = vpop.f32.mrb[181].mxu0  ;;  %v3538_v48 = vpop.f32.mrb[245].mxu1 }
 0x5d1   : > { %v3346_v14 = vadd.f32 %v3345_v43, %v5832_v25  ;;  %v3539_v9 = vadd.f32 %v3538_v48, %v5835_v41  ;;  %v3347_v44 = vpop.f32.mrb[182].mxu0  ;;  %v3540_v47 = vpop.f32.mrb[246].mxu1 }
 0x5d2   : > { %3857 = vst [vmem:[%s5841_s17 + $0x410] sm:$0xff] %v3344_v36  ;;  %3859 = vst [vmem:[%s5841_s17 + $0x420] sm:$0xff] %v3537_v40  ;;  %v3348_v52 = vadd.f32 %v3347_v44, %v5823_v4  ;;  %v3541_v53 = vadd.f32 %v3540_v47, %v5826_v24  ;;  %v3349_v54 = vpop.f32.mrb[183].mxu0  ;;  %v3542_v21 = vpop.f32.mrb[247].mxu1 }
 0x5d3   : > { %3858 = vst [vmem:[%s5841_s17 + $0x418] sm:$0xff] %v3346_v14  ;;  %3860 = vst [vmem:[%s5841_s17 + $0x428] sm:$0xff] %v3539_v9  ;;  %v3350_v56 = vadd.f32 %v3349_v54, %v5832_v25  ;;  %v3543_v59 = vadd.f32 %v3542_v21, %v5835_v41 }
 0x5d4   : > { %3862 = vst [vmem:[%s5841_s17 + $0x438] sm:$0xff] %v3348_v52  ;;  %3864 = vst [vmem:[%s5841_s17 + $0x448] sm:$0xff] %v3541_v53 }
 0x5d5   : > { %3863 = vst [vmem:[%s5841_s17 + $0x440] sm:$0xff] %v3350_v56  ;;  %3865 = vst [vmem:[%s5841_s17 + $0x450] sm:$0xff] %v3543_v59 }
 0x5d7   : > { %v3353_v60 = vpop.f32.mrb[184].mxu0  ;;  %v3546_v55 = vpop.f32.mrb[248].mxu1 }
 0x5d8   : > { %v3354_v3 = vadd.f32 %v3353_v60, %v5823_v4  ;;  %v3547_v42 = vadd.f32 %v3546_v55, %v5826_v24  ;;  %v3355_v57 = vpop.f32.mrb[185].mxu0  ;;  %v3548_v8 = vpop.f32.mrb[249].mxu1 }
 0x5d9   : > { %v3356_v58 = vadd.f32 %v3355_v57, %v5832_v25  ;;  %v3549_v39 = vadd.f32 %v3548_v8, %v5835_v41  ;;  %v3357_v17 = vpop.f32.mrb[186].mxu0  ;;  %v3550_v11 = vpop.f32.mrb[250].mxu1 }
 0x5da   : > { %3867 = vst [vmem:[%s5841_s17 + $0x460] sm:$0xff] %v3354_v3  ;;  %3869 = vst [vmem:[%s5841_s17 + $0x470] sm:$0xff] %v3547_v42  ;;  %v3358_v12 = vadd.f32 %v3357_v17, %v5823_v4  ;;  %v3551_v27 = vadd.f32 %v3550_v11, %v5826_v24  ;;  %v3359_v28 = vpop.f32.mrb[187].mxu0  ;;  %v3552_v50 = vpop.f32.mrb[251].mxu1 }
 0x5db   : > { %3868 = vst [vmem:[%s5841_s17 + $0x468] sm:$0xff] %v3356_v58  ;;  %3870 = vst [vmem:[%s5841_s17 + $0x478] sm:$0xff] %v3549_v39  ;;  %v3360_v51 = vadd.f32 %v3359_v28, %v5832_v25  ;;  %v3553_v19 = vadd.f32 %v3552_v50, %v5835_v41 }
 0x5dc   : > { %3872 = vst [vmem:[%s5841_s17 + $0x488] sm:$0xff] %v3358_v12  ;;  %3874 = vst [vmem:[%s5841_s17 + $0x498] sm:$0xff] %v3551_v27 }
 0x5dd   : > { %3873 = vst [vmem:[%s5841_s17 + $0x490] sm:$0xff] %v3360_v51  ;;  %3875 = vst [vmem:[%s5841_s17 + $0x4a0] sm:$0xff] %v3553_v19 }
 0x5df   : > { %v3363_v2 = vpop.f32.mrb[188].mxu0  ;;  %v3556_v5 = vpop.f32.mrb[252].mxu1 }
 0x5e0   : > { %v3364_v29 = vadd.f32 %v3363_v2, %v5823_v4  ;;  %v3557_v30 = vadd.f32 %v3556_v5, %v5826_v24  ;;  %v3365_v45 = vpop.f32.mrb[189].mxu0  ;;  %v3558_v38 = vpop.f32.mrb[253].mxu1 }
 0x5e1   : > { %v3366_v62 = vadd.f32 %v3365_v45, %v5832_v25  ;;  %v3559_v63 = vadd.f32 %v3558_v38, %v5835_v41  ;;  %v3367_v0 = vpop.f32.mrb[190].mxu0  ;;  %v3560_v31 = vpop.f32.mrb[254].mxu1 }
 0x5e2   : > { %3877 = vst [vmem:[%s5841_s17 + $0x4b0] sm:$0xff] %v3364_v29  ;;  %3879 = vst [vmem:[%s5841_s17 + $0x4c0] sm:$0xff] %v3557_v30  ;;  %v3368_v1 = vadd.f32 %v3367_v0, %v5823_v4  ;;  %v3561_v6 = vadd.f32 %v3560_v31, %v5826_v24  ;;  %v3369_v7 = vpop.f32.mrb[191].mxu0  ;;  %v3562_v26 = vpop.f32.mrb[255].mxu1 }
 0x5e3   : > { %3878 = vst [vmem:[%s5841_s17 + $0x4b8] sm:$0xff] %v3366_v62  ;;  %3880 = vst [vmem:[%s5841_s17 + $0x4c8] sm:$0xff] %v3559_v63  ;;  %v3370_v16 = vadd.f32 %v3369_v7, %v5832_v25  ;;  %v3563_v10 = vadd.f32 %v3562_v26, %v5835_v41 }
 0x5e4   : > { %3882 = vst [vmem:[%s5841_s17 + $0x4d8] sm:$0xff] %v3368_v1  ;;  %3884 = vst [vmem:[%s5841_s17 + $0x4e8] sm:$0xff] %v3561_v6 }
 0x5e5   : > { %3883 = vst [vmem:[%s5841_s17 + $0x4e0] sm:$0xff] %v3370_v16  ;;  %3885 = vst [vmem:[%s5841_s17 + $0x4f0] sm:$0xff] %v3563_v10 }
 0x5e7   : > { %v3599_v4 = vpop.f32.mrb[192].mxu0 }
 0x5e8   : > { %v3600_v24 = vadd.f32 %v3599_v4, %v6108_v49  ;;  %v3601_v13 = vpop.f32.mrb[193].mxu0 }
 0x5e9   : > { %v3602_v15 = vpop.f32.mrb[194].mxu0 }
 0x5ea   : > { %3731 = vst.msk [vmem:[%s5841_s17 + $0x20] sm:$0xff] %vm3730_vm6, %v3600_v24  ;;  %v3603_v25 = vadd.f32 %v3602_v15, %v6108_v49  ;;  %v3604_v41 = vpop.f32.mrb[195].mxu0 }
 0x5ec   : > { %3736 = vst.msk [vmem:[%s5841_s17 + $0x48] sm:$0xff] %vm3730_vm6, %v3603_v25 }
 0x5ef   : > { %v3607_v20 = vpop.f32.mrb[196].mxu0 }
 0x5f0   : > { %v3608_v18 = vadd.f32 %v3607_v20, %v6108_v49  ;;  %v3609_v22 = vpop.f32.mrb[197].mxu0 }
 0x5f1   : > { %v3610_v37 = vpop.f32.mrb[198].mxu0 }
 0x5f2   : > { %3741 = vst.msk [vmem:[%s5841_s17 + $0x70] sm:$0xff] %vm3730_vm6, %v3608_v18  ;;  %v3611_v61 = vadd.f32 %v3610_v37, %v6108_v49  ;;  %v3612_v23 = vpop.f32.mrb[199].mxu0 }
 0x5f4   : > { %3746 = vst.msk [vmem:[%s5841_s17 + $0x98] sm:$0xff] %vm3730_vm6, %v3611_v61 }
 0x5f7   : > { %v3615_v32 = vpop.f32.mrb[200].mxu0 }
 0x5f8   : > { %v3616_v33 = vadd.f32 %v3615_v32, %v6108_v49  ;;  %v3617_v34 = vpop.f32.mrb[201].mxu0 }
 0x5f9   : > { %v3618_v35 = vpop.f32.mrb[202].mxu0 }
 0x5fa   : > { %3751 = vst.msk [vmem:[%s5841_s17 + $0xc0] sm:$0xff] %vm3730_vm6, %v3616_v33  ;;  %v3619_v36 = vadd.f32 %v3618_v35, %v6108_v49  ;;  %v3620_v40 = vpop.f32.mrb[203].mxu0 }
 0x5fc   : > { %3756 = vst.msk [vmem:[%s5841_s17 + $0xe8] sm:$0xff] %vm3730_vm6, %v3619_v36 }
 0x5ff   : > { %v3623_v43 = vpop.f32.mrb[204].mxu0 }
 0x600   : > { %v3624_v48 = vadd.f32 %v3623_v43, %v6108_v49  ;;  %v3625_v14 = vpop.f32.mrb[205].mxu0 }
 0x601   : > { %v3626_v9 = vpop.f32.mrb[206].mxu0 }
 0x602   : > { %3761 = vst.msk [vmem:[%s5841_s17 + $0x110] sm:$0xff] %vm3730_vm6, %v3624_v48  ;;  %v3627_v44 = vadd.f32 %v3626_v9, %v6108_v49  ;;  %v3628_v47 = vpop.f32.mrb[207].mxu0 }
 0x604   : > { %3766 = vst.msk [vmem:[%s5841_s17 + $0x138] sm:$0xff] %vm3730_vm6, %v3627_v44 }
 0x607   : > { %v3631_v52 = vpop.f32.mrb[208].mxu0 }
 0x608   : > { %v3632_v53 = vadd.f32 %v3631_v52, %v6108_v49  ;;  %v3633_v54 = vpop.f32.mrb[209].mxu0 }
 0x609   : > { %v3634_v21 = vpop.f32.mrb[210].mxu0 }
 0x60a   : > { %3771 = vst.msk [vmem:[%s5841_s17 + $0x160] sm:$0xff] %vm3730_vm6, %v3632_v53  ;;  %v3635_v56 = vadd.f32 %v3634_v21, %v6108_v49  ;;  %v3636_v59 = vpop.f32.mrb[211].mxu0 }
 0x60c   : > { %3776 = vst.msk [vmem:[%s5841_s17 + $0x188] sm:$0xff] %vm3730_vm6, %v3635_v56 }
 0x60f   : > { %v3639_v60 = vpop.f32.mrb[212].mxu0 }
 0x610   : > { %v3640_v55 = vadd.f32 %v3639_v60, %v6108_v49  ;;  %v3641_v3 = vpop.f32.mrb[213].mxu0 }
 0x611   : > { %v3642_v42 = vpop.f32.mrb[214].mxu0 }
 0x612   : > { %3781 = vst.msk [vmem:[%s5841_s17 + $0x1b0] sm:$0xff] %vm3730_vm6, %v3640_v55  ;;  %v3643_v57 = vadd.f32 %v3642_v42, %v6108_v49  ;;  %v3644_v8 = vpop.f32.mrb[215].mxu0 }
 0x614   : > { %3786 = vst.msk [vmem:[%s5841_s17 + $0x1d8] sm:$0xff] %vm3730_vm6, %v3643_v57 }
 0x617   : > { %v3647_v58 = vpop.f32.mrb[216].mxu0 }
 0x618   : > { %v3648_v39 = vadd.f32 %v3647_v58, %v6108_v49  ;;  %v3649_v17 = vpop.f32.mrb[217].mxu0 }
 0x619   : > { %v3650_v11 = vpop.f32.mrb[218].mxu0 }
 0x61a   : > { %3791 = vst.msk [vmem:[%s5841_s17 + $0x200] sm:$0xff] %vm3730_vm6, %v3648_v39  ;;  %v3651_v12 = vadd.f32 %v3650_v11, %v6108_v49  ;;  %v3652_v27 = vpop.f32.mrb[219].mxu0 }
 0x61c   : > { %3796 = vst.msk [vmem:[%s5841_s17 + $0x228] sm:$0xff] %vm3730_vm6, %v3651_v12 }
 0x61f   : > { %v3655_v28 = vpop.f32.mrb[220].mxu0 }
 0x620   : > { %v3656_v50 = vadd.f32 %v3655_v28, %v6108_v49  ;;  %v3657_v51 = vpop.f32.mrb[221].mxu0 }
 0x621   : > { %v3658_v19 = vpop.f32.mrb[222].mxu0 }
 0x622   : > { %3801 = vst.msk [vmem:[%s5841_s17 + $0x250] sm:$0xff] %vm3730_vm6, %v3656_v50  ;;  %v3659_v2 = vadd.f32 %v3658_v19, %v6108_v49  ;;  %v3660_v5 = vpop.f32.mrb[223].mxu0 }
 0x624   : > { %3806 = vst.msk [vmem:[%s5841_s17 + $0x278] sm:$0xff] %vm3730_vm6, %v3659_v2 }
 0x627   : > { %v3663_v29 = vpop.f32.mrb[224].mxu0 }
 0x628   : > { %v3664_v30 = vadd.f32 %v3663_v29, %v6108_v49  ;;  %v3665_v45 = vpop.f32.mrb[225].mxu0 }
 0x629   : > { %v3666_v38 = vpop.f32.mrb[226].mxu0 }
 0x62a   : > { %3811 = vst.msk [vmem:[%s5841_s17 + $0x2a0] sm:$0xff] %vm3730_vm6, %v3664_v30  ;;  %v3667_v46 = vadd.f32 %v3666_v38, %v6108_v49  ;;  %v3668_v62 = vpop.f32.mrb[227].mxu0 }
 0x62c   : > { %3816 = vst.msk [vmem:[%s5841_s17 + $0x2c8] sm:$0xff] %vm3730_vm6, %v3667_v46 }
 0x62f   : > { %v3671_v63 = vpop.f32.mrb[228].mxu0 }
 0x630   : > { %v3672_v0 = vadd.f32 %v3671_v63, %v6108_v49  ;;  %v3673_v31 = vpop.f32.mrb[229].mxu0 }
 0x631   : > { %v3674_v1 = vpop.f32.mrb[230].mxu0 }
 0x632   : > { %3821 = vst.msk [vmem:[%s5841_s17 + $0x2f0] sm:$0xff] %vm3730_vm6, %v3672_v0  ;;  %v3675_v6 = vadd.f32 %v3674_v1, %v6108_v49  ;;  %v3676_v7 = vpop.f32.mrb[231].mxu0 }
 0x634   : > { %3826 = vst.msk [vmem:[%s5841_s17 + $0x318] sm:$0xff] %vm3730_vm6, %v3675_v6 }
 0x637   : > { %v3679_v26 = vpop.f32.mrb[232].mxu0 }
 0x638   : > { %v3680_v16 = vadd.f32 %v3679_v26, %v6108_v49  ;;  %v3681_v10 = vpop.f32.mrb[233].mxu0 }
 0x639   : > { %v3682_v4 = vpop.f32.mrb[234].mxu0 }
 0x63a   : > { %3831 = vst.msk [vmem:[%s5841_s17 + $0x340] sm:$0xff] %vm3730_vm6, %v3680_v16  ;;  %v3683_v24 = vadd.f32 %v3682_v4, %v6108_v49  ;;  %v3684_v13 = vpop.f32.mrb[235].mxu0 }
 0x63c   : > { %3836 = vst.msk [vmem:[%s5841_s17 + $0x368] sm:$0xff] %vm3730_vm6, %v3683_v24 }
 0x63f   : > { %v3687_v15 = vpop.f32.mrb[236].mxu0 }
 0x640   : > { %v3688_v25 = vadd.f32 %v3687_v15, %v6108_v49  ;;  %v3689_v41 = vpop.f32.mrb[237].mxu0 }
 0x641   : > { %v3690_v20 = vpop.f32.mrb[238].mxu0 }
 0x642   : > { %3841 = vst.msk [vmem:[%s5841_s17 + $0x390] sm:$0xff] %vm3730_vm6, %v3688_v25  ;;  %v3691_v18 = vadd.f32 %v3690_v20, %v6108_v49  ;;  %v3692_v22 = vpop.f32.mrb[239].mxu0 }
 0x644   : > { %3846 = vst.msk [vmem:[%s5841_s17 + $0x3b8] sm:$0xff] %vm3730_vm6, %v3691_v18 }
 0x647   : > { %v3695_v37 = vpop.f32.mrb[240].mxu0 }
 0x648   : > { %v3696_v61 = vadd.f32 %v3695_v37, %v6108_v49  ;;  %v3697_v23 = vpop.f32.mrb[241].mxu0 }
 0x649   : > { %v3698_v32 = vpop.f32.mrb[242].mxu0 }
 0x64a   : > { %3851 = vst.msk [vmem:[%s5841_s17 + $0x3e0] sm:$0xff] %vm3730_vm6, %v3696_v61  ;;  %v3699_v33 = vadd.f32 %v3698_v32, %v6108_v49  ;;  %v3700_v34 = vpop.f32.mrb[243].mxu0 }
 0x64c   : > { %3856 = vst.msk [vmem:[%s5841_s17 + $0x408] sm:$0xff] %vm3730_vm6, %v3699_v33 }
 0x64f   : > { %v3703_v35 = vpop.f32.mrb[244].mxu0 }
 0x650   : > { %v3704_v36 = vadd.f32 %v3703_v35, %v6108_v49  ;;  %v3705_v40 = vpop.f32.mrb[245].mxu0 }
 0x651   : > { %v3706_v43 = vpop.f32.mrb[246].mxu0 }
 0x652   : > { %3861 = vst.msk [vmem:[%s5841_s17 + $0x430] sm:$0xff] %vm3730_vm6, %v3704_v36  ;;  %v3707_v48 = vadd.f32 %v3706_v43, %v6108_v49  ;;  %v3708_v14 = vpop.f32.mrb[247].mxu0 }
 0x654   : > { %3866 = vst.msk [vmem:[%s5841_s17 + $0x458] sm:$0xff] %vm3730_vm6, %v3707_v48 }
 0x657   : > { %v3711_v9 = vpop.f32.mrb[248].mxu0 }
 0x658   : > { %v3712_v44 = vadd.f32 %v3711_v9, %v6108_v49  ;;  %v3713_v47 = vpop.f32.mrb[249].mxu0 }
 0x659   : > { %v3714_v52 = vpop.f32.mrb[250].mxu0 }
 0x65a   : > { %3871 = vst.msk [vmem:[%s5841_s17 + $0x480] sm:$0xff] %vm3730_vm6, %v3712_v44  ;;  %v3715_v53 = vadd.f32 %v3714_v52, %v6108_v49  ;;  %v3716_v54 = vpop.f32.mrb[251].mxu0 }
 0x65c   : > { %3876 = vst.msk [vmem:[%s5841_s17 + $0x4a8] sm:$0xff] %vm3730_vm6, %v3715_v53 }
 0x65e   : > { %3894 = sbr.rel (!%p4670_p5) target bundleno = 1666 (0x682), region = 76 }
 0x65f   : > { %v3719_v21 = vpop.f32.mrb[252].mxu0 }
 0x660   : > { %v3720_v56 = vadd.f32 %v3719_v21, %v6108_v49  ;;  %v3721_v59 = vpop.f32.mrb[253].mxu0 }
 0x661   : > { %v3722_v60 = vpop.f32.mrb[254].mxu0 }
 0x662   : > { %3881 = vst.msk [vmem:[%s5841_s17 + $0x4d0] sm:$0xff] %vm3730_vm6, %v3720_v56  ;;  %v3723_v55 = vadd.f32 %v3722_v60, %v6108_v49  ;;  %v3724_v3 = vpop.f32.mrb[255].mxu0 }
 0x664   : > { %3886 = vst.msk [vmem:[%s5841_s17 + $0x4f8] sm:$0xff] %vm3730_vm6, %v3723_v55 }
 0x665   : > { %s6305_s20 = smov (!%p3897_p11, %s3896_s20), 32 }
 0x666   : > { %s6215_s21 = smul.u32 640, %s6305_s20 }
 0x668   : > { %s3902_s14 = ssub.s32 20480, %s6215_s21 }
 0x669   : > { %3903 = vsyncadd %s6210_s16, %s3902_s14  ;;  %p4250_p12 = scmp.ne.s32.totalorder %s6215_s21, 0  ;;  %s4258_s23 = smul.u32 20480, %s4653_s29 }
 0x66a   : > { %s3909_s24 = sshll.u32 %s5841_s17, 4  ;;  %s4559_s25 = smov [#allocation2]   ;;  %s6227_s24 = int_to_ptr.vmem [resolvable:$true] %s3909_s24 }
 0x66b   : > { %s6225_s27 = scalar_lea.hbm %s6284_s13, %s4258_s23  ;;  %s4494_s22 = scalar_lea.vmem %s6227_s24, %s6215_s21 }
 0x66c   : > { %p4495_p13 = scmp.ne.s32.totalorder %s6227_s24, %s4494_s22  ;;  %s4498_s19 = sshll.u32 %s4559_s25, 4  ;;  %s4499_s19 = int_to_ptr.vmem [resolvable:$false] %s4498_s19 }
 0x66d   : > { %s4500_s29 = scalar_lea.vmem %s4499_s19, 40960  ;;  %p4501_p2 = scmp.lt.s32.totalorder %s6227_s24, %s4499_s19 }
 0x66e   : > { %p4496_p0 = pnand %p4495_p13, %p4250_p12  ;;  %p4502_p3 = scmp.lt.s32.totalorder %s4500_s29, %s4494_s22 }
 0x670   : > { %p4497_p1 = pneg %p4496_p0  ;;  %p4503_p4 = por %p4502_p3, %p4501_p2 }
 0x672   : > { %p4504_p5 = pnand %p4503_p4, %p4497_p1 }
 0x674   : > { %4507 = shalt.err (!%p4504_p5)
}
 0x675   : > { %s4508_s15 = scalar_lea.hbm %s6225_s27, %s6215_s21  ;;  %s4512_s14 = scalar_lea.hbm %s6284_s13, 24320 }
 0x676   : > { %p4509_p7 = scmp.ne.s32.totalorder %s6225_s27, %s4508_s15  ;;  %p4513_p10 = scmp.lt.u32.totalorder %s6225_s27, %s6284_s13 }
 0x677   : > { %p4514_p11 = scmp.lt.u32.totalorder %s4512_s14, %s4508_s15  ;;  %p4516_p0 = scmp.lt.u32.totalorder %s4508_s15, %s6225_s27 }
 0x678   : > { %p4510_p8 = pnand %p4509_p7, %p4250_p12 }
 0x679   : > { %p4515_p13 = por %p4514_p11, %p4513_p10 }
 0x67a   : > { %p4511_p9 = pneg %p4510_p8 }
 0x67b   : > { %p4517_p1 = por %p4516_p0, %p4515_p13 }
 0x67d   : > { %p4518_p2 = pnand %p4517_p1, %p4511_p9 }
 0x67f   : > { %4521 = shalt.err (!%p4518_p2)
}
 0x680   : > { %s4560_s30 = smov 640   ;;  %s4561_s22 = smov 40  }
 0x681   : > { %3915 = dma.vmem_to_hbm [thread:$0]  (%p4250_p12), %s6227_s24, %s6215_s21, %s6225_s27, %s6210_s16, %s4560_s30, %s4560_s30, %s4561_s22  }
 0x682 PF: > { %s6297_s25 = sld [smem:[#allocation5_spill]]  ;;  %p4264_p3 = scmp.ge.s32.totalorder %s4556_s28, 2 }
 0x684   : > { %p4261_p4 = pnand %p4264_p3, %p4674_p6 }
 0x688   : > { %s3924_s29 = sand.u32 1, %s6297_s25  }
 0x689   : > { %s3925_s15 = scalar_lea.sflag [#allocation3], %s3924_s29 }
 0x68a   : > { %4539 = dma.done.wait (!%p4261_p4), %s3925_s15, 20480  }
 0x68b   : > { %4541 = vsyncadd (!%p4261_p4), %s3925_s15, 4294946816  ;;  %s6299_s28 = sld [smem:[#allocation7_spill]]  ;;  %s6300_s17 = sld [smem:[#allocation6_spill]] }
 0x68c   : > { %s6301_s27 = sld [smem:[#allocation8_spill]]  ;;  %s6302_s25 = smov %s4548_s26 }
 0x691   : > { %p23_p5 = scmp.ge.s32.totalorder %s6299_s28, 4   ;;  %s6303_s26 = smov %s6300_s17 }
 0x693   :  { %25 = sbr.rel (!%p23_p5) target bundleno = 3 (0x3), region = 107 }
 0x69a   :  { %3930 = vsyncpa [#allocation3], 1 }
 0x69b   :  { %3932 = vsyncpa [#allocation3 + $0x1], 1 }

</bundles_post_ra>
